<compile_context>
chip_gen: v6e
topology: v6e:2x2x1
jax: 0.10.0
libtpu: 0.0.40
codegen_flags: <defaults>
</compile_context>

<pallas_src>
import math
import functools

import jax
import jax.numpy as jnp
from jax.experimental import pallas as pl
from jax.experimental.pallas import tpu as pltpu


def _pos_embed_sine_kernel(y_ref, x_ref, inv_ref, phase_ref, out_ref, *, P):
    # y_ref / x_ref : (1, 1, T) f32  flattened (h*W + w) row/col cumulative embeds
    # inv_ref       : (P, 1)    f32  1 / dim_t  (per channel of one half)
    # phase_ref     : (P, 1)    f32  0 for even channels, pi/2 for odd channels
    # out_ref       : (1, 2P, T) f32 channel-major output tile (lane dim = spatial)
    y = y_ref[0]            # (1, T)
    x = x_ref[0]            # (1, T)
    inv = inv_ref[...]      # (P, 1)
    ph = phase_ref[...]     # (P, 1)

    # One fused mul + add + sin per half (cos folded into sin via the phase).
    out_ref[0, 0:P, :] = jnp.sin(y * inv + ph)          # pos_y -> channels [0, P)
    out_ref[0, P:2 * P, :] = jnp.sin(x * inv + ph)      # pos_x -> channels [P, 2P)


def _pick_spatial_tile(hw, max_tile=2048):
    """Largest multiple of 128 that divides hw (<= max_tile); else full extent."""
    if hw % 128 != 0:
        return hw
    best = 128
    cand = 128
    while cand <= min(hw, max_tile):
        if hw % cand == 0:
            best = cand
        cand += 128
    return best


def position_embedding_sine(mask, num_pos_feats=64, temperature=10000,
                            normalize=False, scale=None):
    """mask: (B, H, W) bool, True == padding. Returns (B, 2*num_pos_feats, H, W) f32."""
    if scale is not None and normalize is False:
        raise ValueError("normalize should be True if scale is passed")
    if scale is None:
        scale = 2 * math.pi
    P = num_pos_feats
    assert P % 2 == 0, "num_pos_feats must be even (as assumed by the PyTorch module)"

    B, H, W = mask.shape
    HW = H * W

    # --- tiny O(B*H*W) prologue in XLA (≈ 1/(2P) of the output HBM traffic) ---
    not_mask = (~mask).astype(jnp.float32)
    y_embed = jnp.cumsum(not_mask, axis=1)
    x_embed = jnp.cumsum(not_mask, axis=2)
    if normalize:
        eps = 1e-6
        y_embed = y_embed / (y_embed[:, -1:, :] + eps) * scale
        x_embed = x_embed / (x_embed[:, :, -1:] + eps) * scale
    y_flat = y_embed.reshape(B, 1, HW)   # free, row-major
    x_flat = x_embed.reshape(B, 1, HW)

    # Per-channel frequency (reciprocal) and phase: channel i uses
    # freq = 1/temperature^(2*floor(i/2)/P), sin if i even else cos (= sin(.+pi/2)).
    i = jnp.arange(P, dtype=jnp.float32)
    dim_t = jnp.asarray(temperature, jnp.float32) ** (2.0 * jnp.floor(i / 2.0) / P)
    inv_dim = (1.0 / dim_t).reshape(P, 1)
    phase = ((jnp.arange(P) % 2).astype(jnp.float32) * (math.pi / 2.0)).reshape(P, 1)

    # --- Pallas kernel: the heavy O(B*H*W*2P) sin + lane-dense store ---
    T = _pick_spatial_tile(HW)
    grid = (B, HW // T)

    kernel = functools.partial(_pos_embed_sine_kernel, P=P)
    out = pl.pallas_call(
        kernel,
        out_shape=jax.ShapeDtypeStruct((B, 2 * P, HW), jnp.float32),
        grid=grid,
        in_specs=[
            pl.BlockSpec((1, 1, T), lambda b, t: (b, 0, t)),   # y_flat
            pl.BlockSpec((1, 1, T), lambda b, t: (b, 0, t)),   # x_flat
            pl.BlockSpec((P, 1), lambda b, t: (0, 0)),         # inv_dim (resident)
            pl.BlockSpec((P, 1), lambda b, t: (0, 0)),         # phase   (resident)
        ],
        out_specs=pl.BlockSpec((1, 2 * P, T), lambda b, t: (b, 0, t)),
        compiler_params=pltpu.CompilerParams(
            dimension_semantics=("parallel", "parallel")),
    )(y_flat, x_flat, inv_dim, phase)

    # Free contiguous reshape -> NCHW (B, 2P, H, W); no transpose needed.
    return out.reshape(B, 2 * P, H, W)


def _reference(mask, num_pos_feats, temperature, normalize, scale):
    """Pure-JAX transliteration of the PyTorch forward, for correctness check."""
    if scale is None:
        scale = 2 * math.pi
    not_mask = (~mask).astype(jnp.float32)
    y_embed = jnp.cumsum(not_mask, axis=1)
    x_embed = jnp.cumsum(not_mask, axis=2)
    if normalize:
        eps = 1e-6
        y_embed = y_embed / (y_embed[:, -1:, :] + eps) * scale
        x_embed = x_embed / (x_embed[:, :, -1:] + eps) * scale
    i = jnp.arange(num_pos_feats, dtype=jnp.float32)
    dim_t = jnp.asarray(temperature, jnp.float32) ** (2.0 * jnp.floor(i / 2.0) / num_pos_feats)
    pos_x = x_embed[..., None] / dim_t
    pos_y = y_embed[..., None] / dim_t
    B, H, W = mask.shape
    pos_x = jnp.stack([jnp.sin(pos_x[..., 0::2]), jnp.cos(pos_x[..., 1::2])],
                      axis=4).reshape(B, H, W, -1)
    pos_y = jnp.stack([jnp.sin(pos_y[..., 0::2]), jnp.cos(pos_y[..., 1::2])],
                      axis=4).reshape(B, H, W, -1)
    pos = jnp.concatenate([pos_y, pos_x], axis=3)
    return jnp.transpose(pos, (0, 3, 1, 2))


if __name__ == "__main__":
    B, C, H, W = 2, 4, 16, 16          # x would be (B, C, H, W); only mask is used
    num_pos_feats = 64
    temperature = 10000
    normalize = True

    key = jax.random.PRNGKey(0)
    kh, kw = jax.random.split(key)
    # NestedTensor-style padding mask: each batch element valid in a top-left box
    h_valid = jax.random.randint(kh, (B,), H // 2, H + 1)
    w_valid = jax.random.randint(kw, (B,), W // 2, W + 1)
    hh = jnp.arange(H)[None, :, None]
    ww = jnp.arange(W)[None, None, :]
    mask = (hh >= h_valid[:, None, None]) | (ww >= w_valid[:, None, None])  # (B,H,W) bool

    pos = position_embedding_sine(mask, num_pos_feats=num_pos_feats,
                                  temperature=temperature, normalize=normalize)
    pos = jax.block_until_ready(pos)

    ref = _reference(mask, num_pos_feats, temperature, normalize, None)
    assert pos.shape == (B, 2 * num_pos_feats, H, W), pos.shape
    assert jnp.allclose(pos, ref, atol=1e-4, rtol=1e-5), \
        float(jnp.max(jnp.abs(pos - ref)))

    print("KERNEL_OK")
</pallas_src>

<mosaic_0001>
module attributes {stable_mosaic.version = 11 : i64} {
  func.func @_pos_embed_sine_kernel(%arg0: i32, %arg1: i32, %arg2: memref<1x1x256xf32, #tpu.memory_space<vmem>>, %arg3: memref<1x1x256xf32, #tpu.memory_space<vmem>>, %arg4: memref<64x1xf32, #tpu.memory_space<vmem>>, %arg5: memref<64x1xf32, #tpu.memory_space<vmem>>, %arg6: memref<1x128x256xf32, #tpu.memory_space<vmem>>) attributes {dimension_semantics = [#tpu.dimension_semantics<parallel>, #tpu.dimension_semantics<parallel>], iteration_bounds = array<i64: 2, 1>, scalar_prefetch = 0 : i64, scratch_operands = 0 : i64, tpu.core_type = #tpu.core_type<tc>, window_params = [{transform_indices = @transform_0, window_bounds = array<i64: 1, 1, 256>}, {transform_indices = @transform_1, window_bounds = array<i64: 1, 1, 256>}, {pipeline_mode = #tpu.pipeline_mode<synchronous>, transform_indices = @transform_2, window_bounds = array<i64: 64, 1>}, {pipeline_mode = #tpu.pipeline_mode<synchronous>, transform_indices = @transform_3, window_bounds = array<i64: 64, 1>}, {transform_indices = @transform_4, window_bounds = array<i64: 1, 128, 256>}]} {
    %c0 = arith.constant 0 : index
    %c0_0 = arith.constant 0 : index
    %c0_1 = arith.constant 0 : index
    %0 = vector.load %arg2[%c0, %c0_0, %c0_1] : memref<1x1x256xf32, #tpu.memory_space<vmem>>, vector<1x1x256xf32>
    %1 = vector.shape_cast %0 : vector<1x1x256xf32> to vector<1x256xf32>
    %c0_2 = arith.constant 0 : index
    %c0_3 = arith.constant 0 : index
    %c0_4 = arith.constant 0 : index
    %2 = vector.load %arg3[%c0_2, %c0_3, %c0_4] : memref<1x1x256xf32, #tpu.memory_space<vmem>>, vector<1x1x256xf32>
    %3 = vector.shape_cast %2 : vector<1x1x256xf32> to vector<1x256xf32>
    %c0_5 = arith.constant 0 : index
    %c0_6 = arith.constant 0 : index
    %4 = vector.load %arg4[%c0_5, %c0_6] : memref<64x1xf32, #tpu.memory_space<vmem>>, vector<64x1xf32>
    %c0_7 = arith.constant 0 : index
    %c0_8 = arith.constant 0 : index
    %5 = vector.load %arg5[%c0_7, %c0_8] : memref<64x1xf32, #tpu.memory_space<vmem>>, vector<64x1xf32>
    %6 = vector.broadcast %1 : vector<1x256xf32> to vector<64x256xf32>
    %7 = vector.broadcast %4 : vector<64x1xf32> to vector<64x256xf32>
    %8 = arith.mulf %6, %7 : vector<64x256xf32>
    %9 = vector.broadcast %5 : vector<64x1xf32> to vector<64x256xf32>
    %10 = arith.addf %8, %9 : vector<64x256xf32>
    %11 = math.sin %10 : vector<64x256xf32>
    %c0_9 = arith.constant 0 : index
    %c0_10 = arith.constant 0 : index
    %c0_11 = arith.constant 0 : index
    %12 = vector.load %arg6[%c0_9, %c0_10, %c0_11] : memref<1x128x256xf32, #tpu.memory_space<vmem>>, vector<1x64x256xf32>
    %13 = vector.shape_cast %12 : vector<1x64x256xf32> to vector<64x256xf32>
    %14 = vector.shape_cast %11 : vector<64x256xf32> to vector<1x64x256xf32>
    tpu.vector_store %arg6[%c0_9, %c0_10, %c0_11], %14 {strides = array<i32>} : memref<1x128x256xf32, #tpu.memory_space<vmem>>, vector<1x64x256xf32>,
    %15 = vector.broadcast %3 : vector<1x256xf32> to vector<64x256xf32>
    %16 = vector.broadcast %4 : vector<64x1xf32> to vector<64x256xf32>
    %17 = arith.mulf %15, %16 : vector<64x256xf32>
    %18 = vector.broadcast %5 : vector<64x1xf32> to vector<64x256xf32>
    %19 = arith.addf %17, %18 : vector<64x256xf32>
    %20 = math.sin %19 : vector<64x256xf32>
    %c0_12 = arith.constant 0 : index
    %c64 = arith.constant 64 : index
    %c0_13 = arith.constant 0 : index
    %21 = vector.load %arg6[%c0_12, %c64, %c0_13] : memref<1x128x256xf32, #tpu.memory_space<vmem>>, vector<1x64x256xf32>
    %22 = vector.shape_cast %21 : vector<1x64x256xf32> to vector<64x256xf32>
    %23 = vector.shape_cast %20 : vector<64x256xf32> to vector<1x64x256xf32>
    tpu.vector_store %arg6[%c0_12, %c64, %c0_13], %23 {strides = array<i32>} : memref<1x128x256xf32, #tpu.memory_space<vmem>>, vector<1x64x256xf32>,
    return
  }
  func.func @transform_0(%arg0: i32, %arg1: i32) -> (i32, i32, i32) {
    %c0_i32 = arith.constant 0 : i32
    %c0_i32_0 = arith.constant 0 : i32
    return %arg0, %c0_i32, %arg1 : i32, i32, i32
  }
  func.func @transform_1(%arg0: i32, %arg1: i32) -> (i32, i32, i32) {
    %c0_i32 = arith.constant 0 : i32
    %c0_i32_0 = arith.constant 0 : i32
    return %arg0, %c0_i32, %arg1 : i32, i32, i32
  }
  func.func @transform_2(%arg0: i32, %arg1: i32) -> (i32, i32) {
    %c0_i32 = arith.constant 0 : i32
    %c0_i32_0 = arith.constant 0 : i32
    %c0_i32_1 = arith.constant 0 : i32
    return %c0_i32, %c0_i32_0 : i32, i32
  }
  func.func @transform_3(%arg0: i32, %arg1: i32) -> (i32, i32) {
    %c0_i32 = arith.constant 0 : i32
    %c0_i32_0 = arith.constant 0 : i32
    %c0_i32_1 = arith.constant 0 : i32
    return %c0_i32, %c0_i32_0 : i32, i32
  }
  func.func @transform_4(%arg0: i32, %arg1: i32) -> (i32, i32, i32) {
    %c0_i32 = arith.constant 0 : i32
    %c0_i32_0 = arith.constant 0 : i32
    return %arg0, %c0_i32, %arg1 : i32, i32, i32
  }
}

</mosaic_0001>

<bundles_post_ra>
// kernel: tpu_custom_call.1
= control target key start
LH: loop header
LB: loop body
LE: loop exit
PB: predicated region body
PF: predicated region fallthrough
CT: control target
= control target key end

     0   :  { %9 = vsyncpa [#allocation3], 0  ;;  %s7191_s0 = inlined_call_operand.vmem [shape: f32[2,1,256], index: 0, kind: input, shape index: {}]   ;;  %s7192_s1 = inlined_call_operand.vmem [shape: f32[2,1,256], index: 1, kind: input, shape index: {}]   ;;  %s7193_s2 = inlined_call_operand.vmem [shape: f32[64,1], index: 2, kind: input, shape index: {}]   ;;  %s7194_s3 = inlined_call_operand.vmem [shape: f32[64,1], index: 3, kind: input, shape index: {}]   ;;  %s7195_s4 = inlined_call_operand.hbm [shape: f32[2,128,256], index: 4, kind: output, shape index: {}]  }
   0x1   :  { %11 = vsyncpa [#allocation3 + $0x1], 0  ;;  %s4485_s15 = smov 0   ;;  %s4487_s16 = smov 0  }
   0x2   :  { %s4489_s17 = smov 0   ;;  %s4491_s18 = smov 0  }
   0x3   :  { %s4493_s19 = smov 0   ;;  %s4495_s20 = smov 0  }
   0x4 LB: > { %s3908_s21 = sadd.s32 4294967295, %s4448_s20   ;;  %s3909_s22 = sadd.s32 4294967294, %s4448_s20   ;;  %s4448_s20 = sphi %s4495_s20, %s17_s20   ;;  %s4444_s19 = sphi %s4493_s19, %s7300_s19   ;;  %s4440_s18 = sphi %s4491_s18, %s7299_s18   ;;  %s4436_s17 = sphi %s4489_s17, %s7298_s17   ;;  %s4432_s16 = sphi %s4487_s16, %s7297_s16   ;;  %s4428_s15 = sphi %s4485_s15, %s7296_s15  }
   0x5   : > { %s29_s23 = sadd.s32 1, %s4444_s19  ;;  %s136_s24 = sadd.s32 1, %s4436_s17 }
   0x6   : > { %p31_p0 = scmp.ge.s32.totalorder %s29_s23, 2  ;;  %p146_p1 = scmp.ne.s32.totalorder %s4436_s17, %s4432_s16 }
   0x7   : > { %p147_p2 = scmp.eq.s32.totalorder %s3908_s21, 1  ;;  %p152_p3 = scmp.ne.s32.totalorder %s4432_s16, %s4428_s15 }
   0x8   : > { %s7302_s23 = smov (%p31_p0, %s29_s23), 0  ;;  %p153_p5 = scmp.eq.s32.totalorder %s3909_s22, 1 }
   0x9   : > { %p4525_p4 = por %p147_p2, %p146_p1  ;;  %s131_s26 = ssub.s32 %s4444_s19, %s7302_s23 }
   0xa   : > { %p3912_p6 = scmp.ge.s32.totalorder %s4448_s20, 1  ;;  %p134_p7 = scmp.eq.s32.totalorder %s131_s26, 0 }
   0xb   : > { %p4532_p8 = por %p153_p5, %p152_p3  ;;  %p201_p9 = scmp.lt.s32.totalorder %s4448_s20, 3 }
   0xc   : > { %s4538_s28 = scalar_select %p134_p7, %s4436_s17, %s136_s24  }
   0xd   : > { %p202_p10 = pnand %p3912_p6, %p201_p9 }
   0xe   : > { %p239_p11 = scmp.lt.s32.totalorder (!%p202_p10), %s4440_s18, 1  ;;  %s235_s8 = sand.u32 (!%p202_p10), 1, %s4432_s16  }
   0xf   : > { %205 = sbr.rel (%p202_p10) target bundleno = 1020 (0x3fc), region = 36  ;;  %s3913_s9 = sshll.u32 (!%p202_p10), %s235_s8, 8 }
  0x10   : > { %s4945_s10 = scalar_lea.vmem (!%p202_p10), [#allocation2], %s3913_s9  ;;  %s4049_s14 = sshll.u32 (!%p202_p10), %s4440_s18, 12 }
  0x11   : > { %s3817_s21 = sshll.u32 (!%p202_p10), %s4945_s10, 4  ;;  %s7138_s26 = scalar_lea.hbm (!%p202_p10), %s7195_s4, %s4049_s14  ;;  %s7140_s21 = int_to_ptr.vmem [resolvable:$true] %s3817_s21 }
  0x14   : > { %v261_v0 = vld [vmem:[%s7193_s2 + $0x10] sm:$0xff]  ;;  %v259_v1 = vld [vmem:[%s7193_s2] sm:$0xff]  ;;  %v4450_v2 = vmov 0   ;;  %v262_v3 = vld [vmem:[%s7193_s2 + $0x18] sm:$0xff]  ;;  %s4590_s29 = scalar_select %p239_p11, %s4440_s18, 1  ;;  %v276_v17 = vlaneseq }
  0x15   : > { %4243 = vset.pattern.permute.xlu1 %v4450_v2  ;;  %4242 = vset.pattern.permute.xlu0 %v4450_v2  ;;  %v260_v4 = vld [vmem:[%s7193_s2 + $0x8] sm:$0xff]  ;;  %v263_v6 = vld [vmem:[%s7193_s2 + $0x20] sm:$0xff]  ;;  %v266_v7 = vld [vmem:[%s7193_s2 + $0x38] sm:$0xff]  ;;  %s7146_s18 = scalar_lea.sflag [#allocation3], %s235_s8 }
  0x16   : > { %298 = vperm.xlu1 %4243, %v261_v0   ;;  %288 = vperm.xlu0 %4242, %v259_v1   ;;  %v264_v5 = vld [vmem:[%s7193_s2 + $0x28] sm:$0xff]  ;;  %v265_v8 = vld [vmem:[%s7193_s2 + $0x30] sm:$0xff]  ;;  %v267_v10 = vld [vmem:[%s7194_s3] sm:$0xff]  ;;  %s3914_s30 = sshll.u32 %s4590_s29, 1  ;;  %v4597_v20 = vshrl.u32 %v276_v17, 7  ;;  %s4372_s29 = scalar_lea.vmem %s7140_s21, 4096 }
  0x17   : > { %v268_v9 = vld [vmem:[%s7194_s3 + $0x8] sm:$0xff]  ;;  %v270_v11 = vld [vmem:[%s7194_s3 + $0x18] sm:$0xff]  ;;  %v269_v12 = vld [vmem:[%s7194_s3 + $0x10] sm:$0xff]  ;;  %s245_s7 = scalar_lea.vmem %s7191_s0, %s3914_s30  ;;  %s254_s13 = scalar_lea.vmem %s7192_s1, %s3914_s30 }
  0x18   : > { %v272_v13 = vld [vmem:[%s7194_s3 + $0x28] sm:$0xff]  ;;  %v271_v14 = vld [vmem:[%s7194_s3 + $0x20] sm:$0xff]  ;;  %v274_v15 = vld [vmem:[%s7194_s3 + $0x38] sm:$0xff]  ;;  %v7197_v23 = vsub.s32 0, %v4597_v20  ;;  %v7196_v24 = vsub.s32 1, %v4597_v20  ;;  %p4373_p12 = scmp.ne.s32.totalorder %s7140_s21, %s4372_s29  ;;  %s4457_s30 = smov [#allocation2]  }
  0x19   : > { %v273_v16 = vld [vmem:[%s7194_s3 + $0x30] sm:$0xff]  ;;  %v257_v27 = vld [vmem:[%s245_s7] sm:$0x3]  ;;  %s4376_s5 = sshll.u32 %s4457_s30, 4  ;;  %s4377_s5 = int_to_ptr.vmem [resolvable:$false] %s4376_s5 }
  0x1a   : > { %303 = vperm.xlu1 %4243, %v262_v3   ;;  %293 = vperm.xlu0 %4242, %v260_v4   ;;  %v4616_v28 = vrot.slane %v257_v27, %v7197_v23  ;;  %v4620_v29 = vrot.slane %v257_v27, %v7196_v24  ;;  %v7209_v4 = vmov 683565275   ;;  %p4374_p13 = pnand %p4373_p12, %p4525_p4  ;;  %s4378_s6 = scalar_lea.vmem %s4377_s5, 8192 }
  0x1b   : > { %p4379_p1 = scmp.lt.s32.totalorder %s7140_s21, %s4377_s5  ;;  %p4380_p2 = scmp.lt.s32.totalorder %s4378_s6, %s4372_s29 }
  0x1c   : > { %p4375_p0 = pneg %p4374_p13 }
  0x1d   : > { %p4381_p3 = por %p4380_p2, %p4379_p1 }
  0x1e   : > { %313 = vperm.xlu1 %4243, %v264_v5   ;;  %308 = vperm.xlu0 %4242, %v263_v6  }
  0x1f   : > { %p4382_p5 = pnand %p4381_p3, %p4375_p0 }
  0x22   : > { %323 = vperm.xlu1 %4243, %v266_v7   ;;  %318 = vperm.xlu0 %4242, %v265_v8   ;;  %v7215_v8 = vmov 2475754826  }
  0x26   : > { %349 = vperm.xlu1 %4243, %v268_v9   ;;  %344 = vperm.xlu0 %4242, %v267_v10   ;;  %v7212_v10 = vmov 2131351028  }
  0x2a   : > { %359 = vperm.xlu1 %4243, %v270_v11   ;;  %354 = vperm.xlu0 %4242, %v269_v12   ;;  %v7205_v12 = vmov 2102212464  }
  0x2e   : > { %369 = vperm.xlu1 %4243, %v272_v13   ;;  %364 = vperm.xlu0 %4242, %v271_v14   ;;  %v7202_v14 = vmov 920167782  }
  0x32   : > { %379 = vperm.xlu1 %4243, %v274_v15   ;;  %374 = vperm.xlu0 %4242, %v273_v16  }
  0x91   : > { %v4592_v18 = vpop.permute.xlu1 %298  ;;  %v4594_v19 = vpop.permute.xlu0 %288 }
  0x92   : > { %v326_v32 = vmul.f32 %v4594_v19, %v4616_v28  ;;  %v327_v33 = vmul.f32 %v4594_v19, %v4620_v29 }
  0x95   : > { %v4599_v21 = vpop.permute.xlu1 %303  ;;  %v4601_v22 = vpop.permute.xlu0 %293 }
  0x96   : > { %v328_v42 = vmul.f32 %v4601_v22, %v4616_v28  ;;  %v329_v56 = vmul.f32 %v4601_v22, %v4620_v29 }
  0x99   : > { %v4610_v25 = vpop.permute.xlu1 %313  ;;  %v4612_v26 = vpop.permute.xlu0 %308 }
  0x9d   : > { %v4622_v30 = vpop.permute.xlu0 %318  ;;  %v4624_v31 = vpop.permute.xlu1 %323 }
  0xa1   : > { %v4630_v34 = vpop.permute.xlu0 %344  ;;  %v4639_v38 = vpop.permute.xlu1 %349 }
  0xa2   : > { %v4633_v35 = vadd.f32 %v4630_v34, %v326_v32  ;;  %v4636_v36 = vadd.f32 %v4630_v34, %v327_v33  ;;  %v4647_v45 = vadd.f32 %v4639_v38, %v328_v42  ;;  %v4658_v60 = vadd.f32 %v4639_v38, %v329_v56 }
  0xa4   : > { %v401_v37 = vand.u32 2139095040, %v4633_v35  ;;  %v398_v39 = vand.u32 2147483647, %v4633_v35  ;;  %v502_v40 = vand.u32 2147483647, %v4636_v36  ;;  %v505_v41 = vand.u32 2139095040, %v4636_v36 }
  0xa5   : > { %v7199_v52 = vand.u32 2147483647, %v4647_v45  ;;  %v609_v53 = vand.u32 2139095040, %v4647_v45  ;;  %vm400_vm13 = vcmp.lt.s32.totalorder %v4633_v35, 0 }
  0xa6   : > { %v402_v43 = vshrl.u32 %v401_v37, 23  ;;  %v506_v44 = vshrl.u32 %v505_v41, 23  ;;  %v405_v47 = vand.u32 8388607, %v398_v39  ;;  %v509_v49 = vand.u32 8388607, %v502_v40 }
  0xa7   : > { %v610_v59 = vshrl.u32 %v609_v53, 23  ;;  %v4668_v2 = vand.u32 8388607, %v7199_v52  ;;  %v7200_v37 = vmov 1326507024  }
  0xa8   : > { %v3916_v46 = vadd.s32 4294967169, %v402_v43  ;;  %v3920_v48 = vadd.s32 4294967169, %v506_v44  ;;  %v406_v54 = vor.u32 8388608, %v405_v47  ;;  %v510_v55 = vor.u32 8388608, %v509_v49 }
  0xa9   : > { %v4671_v7 = vadd.s32 4294967169, %v610_v59  ;;  %vm4762_vm14 = vcmp.le.f32.partialorder %v398_v39, 0.7853982 }
  0xaa   : > { %v408_v50 = vadd.s32 1, %v3916_v46  ;;  %v512_v51 = vadd.s32 1, %v3920_v48  ;;  %v4660_v63 = vshll.u32 %v406_v54, 8  ;;  %v4664_v1 = vshll.u32 %v510_v55, 8 }
  0xac   : > { %vm409_vm0 = vcmp.gt.s32.totalorder %v408_v50, 0  ;;  %vm513_vm1 = vcmp.gt.s32.totalorder %v512_v51, 0 }
  0xad   : > { %v410_v57 = vsel %vm409_vm0, %v408_v50, 0  ;;  %v514_v58 = vsel %vm513_vm1, %v512_v51, 0  ;;  %vm504_vm1 = vcmp.lt.s32.totalorder %v4636_v36, 0 }
  0xae   : > { %v411_v61 = vshrl.u32 %v410_v57, 5  ;;  %v412_v62 = vand.u32 31, %v410_v57  ;;  %v4662_v0 = vshrl.u32 %v514_v58, 5  ;;  %v516_v6 = vand.u32 31, %v514_v58 }
  0xb0   : > { %v413_v3 = vsub.s32 32, %v412_v62  ;;  %v415_v5 = vshll.u32 %v7209_v4, %v412_v62  ;;  %v418_v9 = vshll.u32 %v7215_v8, %v412_v62  ;;  %v421_v11 = vshll.u32 %v7212_v10, %v412_v62 }
  0xb1   : > { %v424_v13 = vshll.u32 %v7205_v12, %v412_v62  ;;  %v427_v15 = vshll.u32 %v7202_v14, %v412_v62  ;;  %vm430_vm2 = vcmp.lt.s32.totalorder %v411_v61, 1  ;;  %vm431_vm3 = vcmp.lt.s32.totalorder %v411_v61, 2 }
  0xb2   : > { %v416_v16 = vshrl.u32 %v7215_v8, %v413_v3  ;;  %v419_v17 = vshrl.u32 %v7212_v10, %v413_v3  ;;  %v422_v27 = vshrl.u32 %v7205_v12, %v413_v3  ;;  %v414_v32 = vshrl.u32 %v7209_v4, %v413_v3 }
  0xb3   : > { %v425_v33 = vshrl.u32 %v7202_v14, %v413_v3  ;;  %v428_v41 = vshrl.u32 %v7200_v37, %v413_v3  ;;  %v517_v46 = vsub.s32 32, %v516_v6  ;;  %vm432_vm4 = vcmp.lt.s32.totalorder %v411_v61, 3 }
  0xb4   : > { %v417_v42 = vor.u32 %v416_v16, %v415_v5  ;;  %v420_v43 = vor.u32 %v419_v17, %v418_v9  ;;  %v423_v44 = vor.u32 %v422_v27, %v421_v11  ;;  %vm433_vm5 = vcmp.lt.s32.totalorder %v411_v61, 4 }
  0xb5   : > { %v426_v47 = vor.u32 %v425_v33, %v424_v13  ;;  %v429_v48 = vor.u32 %v428_v41, %v427_v15  ;;  %v519_v57 = vshll.u32 %v7209_v4, %v516_v6  ;;  %v520_v62 = vshrl.u32 %v7215_v8, %v517_v46 }
  0xb6   : > { %v434_v49 = vsel %vm430_vm2, %v414_v32, %v417_v42  ;;  %v435_v50 = vsel %vm433_vm5, %v423_v44, 2102212464  ;;  %v438_v51 = vsel %vm430_vm2, %v417_v42, %v420_v43  ;;  %v442_v53 = vsel %vm430_vm2, %v420_v43, %v423_v44 }
  0xb7   : > { %v436_v54 = vsel %vm432_vm4, %v420_v43, %v435_v50  ;;  %v439_v55 = vsel %vm433_vm5, %v426_v47, 920167782  ;;  %v443_v56 = vsel %vm433_vm5, %v429_v48, 1326507024  ;;  %v522_v3 = vshll.u32 %v7215_v8, %v516_v6 }
  0xb8   : > { %v440_v58 = vsel %vm432_vm4, %v423_v44, %v439_v55  ;;  %v444_v59 = vsel %vm432_vm4, %v426_v47, %v443_v56  ;;  %v437_v5 = vsel %vm431_vm3, %v434_v49, %v436_v54  ;;  %v523_v13 = vshrl.u32 %v7212_v10, %v517_v46 }
  0xb9   : > { %v441_v9 = vsel %vm431_vm3, %v438_v51, %v440_v58  ;;  %v445_v11 = vsel %vm431_vm3, %v442_v53, %v444_v59  ;;  %v521_v32 = vor.u32 %v520_v62, %v519_v57  ;;  %v525_v41 = vshll.u32 %v7212_v10, %v516_v6 }
  0xba   : > { %v4694_v15 = vmul.u32.u64.low %v4660_v63, %v445_v11  ;;  %v4695_v16 = vmul.u32.u64.high %v4660_v63, %v445_v11, %v4694_v15  ;;  %v4698_v17 = vmul.u32.u64.low %v4660_v63, %v441_v9  ;;  %v4699_v27 = vmul.u32.u64.high %v4660_v63, %v441_v9, %v4698_v17 }
  0xbb   : > { %v524_v33 = vor.u32 %v523_v13, %v522_v3  ;;  %v526_v42 = vshrl.u32 %v7205_v12, %v517_v46  ;;  %v518_v61 = vshrl.u32 %v7209_v4, %v517_v46  ;;  %v528_v43 = vshll.u32 %v7205_v12, %v516_v6 }
  0xbc   : > { %v529_v44 = vshrl.u32 %v7202_v14, %v517_v46  ;;  %v532_v47 = vshrl.u32 %v7200_v37, %v517_v46  ;;  %v453_v48 = vmul.u32 %v4660_v63, %v437_v5  ;;  %v531_v50 = vshll.u32 %v7202_v14, %v516_v6 }
  0xbd   : > { %v527_v49 = vor.u32 %v526_v42, %v525_v41  ;;  %vm534_vm6 = vcmp.lt.s32.totalorder %v4662_v0, 1  ;;  %vm455_vm7 = vc.u32 %v4695_v16, %v4698_v17  ;;  %v456_v51 = vadd.s32 1, %v4699_v27 }
  0xbe   : > { %v530_v53 = vor.u32 %v529_v44, %v528_v43  ;;  %vm535_vm8 = vcmp.lt.s32.totalorder %v4662_v0, 2  ;;  %v533_v54 = vor.u32 %v532_v47, %v531_v50  ;;  %vm536_vm9 = vcmp.lt.s32.totalorder %v4662_v0, 3  ;;  %v4736_v47 = vpop.permute.xlu0 %354 }
  0xbf   : > { %vm537_vm10 = vcmp.lt.s32.totalorder %v4662_v0, 4  ;;  %v542_v46 = vsel %vm534_vm6, %v521_v32, %v524_v33  ;;  %v457_v63 = vsel %vm455_vm7, %v456_v51, %v4699_v27  ;;  %v546_v56 = vsel %vm534_vm6, %v524_v33, %v527_v49 }
  0xc0   : > { %v539_v55 = vsel %vm537_vm10, %v527_v49, 2102212464  ;;  %v543_v6 = vsel %vm537_vm10, %v530_v53, 920167782  ;;  %v458_v57 = vadd.s32 %v457_v63, %v453_v48  ;;  %v538_v58 = vsel %vm534_vm6, %v518_v61, %v521_v32 }
  0xc1   : > { %v544_v59 = vsel %vm536_vm9, %v527_v49, %v543_v6  ;;  %v547_v62 = vsel %vm537_vm10, %v533_v54, 1326507024  ;;  %v540_v3 = vsel %vm536_vm9, %v524_v33, %v539_v55  ;;  %v616_v11 = vadd.s32 1, %v4671_v7 }
  0xc2   : > { %v545_v5 = vsel %vm535_vm8, %v542_v46, %v544_v59  ;;  %v548_v9 = vsel %vm536_vm9, %v530_v53, %v547_v62  ;;  %v459_v13 = vadd.s32 536870912, %v458_v57  ;;  %v541_v61 = vsel %vm535_vm8, %v538_v58, %v540_v3 }
  0xc3   : > { %v549_v15 = vsel %vm535_vm8, %v546_v56, %v548_v9  ;;  %v4724_v27 = vmul.u32.u64.low %v4664_v1, %v545_v5  ;;  %v4725_v41 = vmul.u32.u64.high %v4664_v1, %v545_v5, %v4724_v27  ;;  %vm617_vm11 = vcmp.gt.s32.totalorder %v616_v11, 0 }
  0xc4   : > { %v4729_v32 = vmul.u32.u64.low %v4664_v1, %v549_v15  ;;  %v4730_v42 = vmul.u32.u64.high %v4664_v1, %v549_v15, %v4729_v32  ;;  %v460_v33 = vshrl.u32 %v459_v13, 30  ;;  %v618_v43 = vsel %vm617_vm11, %v616_v11, 0 }
  0xc5   : > { %v330_v7 = vmul.f32 %v4592_v18, %v4616_v28  ;;  %v620_v44 = vand.u32 31, %v618_v43  ;;  %v560_v49 = vadd.s32 1, %v4725_v41  ;;  %v614_v50 = vor.u32 8388608, %v4668_v2 }
  0xc6   : > { %v461_v48 = vshll.u32 %v460_v33, 30  ;;  %v7198_v51 = vand.u32 2147483647, %v4658_v60  ;;  %v557_v53 = vmul.u32 %v4664_v1, %v541_v61  ;;  %vm559_vm12 = vc.u32 %v4730_v42, %v4724_v27 }
  0xc7   : > { %v621_v0 = vsub.s32 32, %v620_v44  ;;  %v713_v54 = vand.u32 2139095040, %v4658_v60  ;;  %v4747_v46 = vmul.f32 %v4592_v18, %v4620_v29  ;;  %v4751_v63 = vmul.f32 %v4599_v21, %v4616_v28 }
  0xc8   : > { %v4753_v55 = vsub.s32 %v458_v57, %v461_v48  ;;  %v561_v2 = vsel %vm559_vm12, %v560_v49, %v4725_v41  ;;  %v4757_v1 = vadd.f32 %v4736_v47, %v330_v7  ;;  %v484_v6 = vsub.s32 4, %v460_v33 }
  0xc9   : > { %v562_v56 = vadd.s32 %v561_v2, %v557_v53  ;;  %v454_v59 = vadd.s32 %v4698_v17, %v4695_v16  ;;  %v4769_v62 = vshll.u32 %v614_v50, 8  ;;  %v624_v5 = vshrl.u32 %v7215_v8, %v621_v0 }
  0xca   : > { %v464_v57 = vsub.s32 0, %v4753_v55  ;;  %v714_v9 = vshrl.u32 %v713_v54, 23  ;;  %v4774_v11 = vand.u32 8388607, %v7198_v51  ;;  %v619_v13 = vshrl.u32 %v618_v43, 5 }
  0xcb   : > { %v563_v3 = vadd.s32 536870912, %v562_v56  ;;  %v627_v15 = vshrl.u32 %v7212_v10, %v621_v0  ;;  %v630_v41 = vshrl.u32 %v7205_v12, %v621_v0  ;;  %v485_v16 = vsel %vm400_vm13, %v484_v6, %v460_v33 }
  0xcc   : > { %v3917_v39 = vmin.u32 %v464_v57, %v4753_v55  ;;  %v623_v32 = vshll.u32 %v7209_v4, %v620_v44  ;;  %v633_v61 = vshrl.u32 %v7202_v14, %v621_v0  ;;  %v626_v48 = vshll.u32 %v7215_v8, %v620_v44 }
  0xcd   : > { %v4781_v17 = vshrl.u32 %v563_v3, 30  ;;  %v629_v49 = vshll.u32 %v7212_v10, %v620_v44  ;;  %v636_v43 = vshrl.u32 %v7200_v37, %v621_v0  ;;  %v632_v54 = vshll.u32 %v7205_v12, %v620_v44 }
  0xce   : > { %v466_v7 = vclz %v3917_v39  ;;  %v625_v53 = vor.u32 %v624_v5, %v623_v32  ;;  %v3928_v2 = vadd.s32 4294967169, %v714_v9  ;;  %v628_v6 = vor.u32 %v627_v15, %v626_v48 }
  0xcf   : > { %v565_v50 = vshll.u32 %v4781_v17, 30  ;;  %v631_v57 = vor.u32 %v630_v41, %v629_v49  ;;  %v635_v3 = vshll.u32 %v7202_v14, %v620_v44  ;;  %v487_v39 = vsel %vm4762_vm14, 0, %v485_v16 }
  0xd0   : > { %v3918_v33 = vadd.s32 4294967294, %v466_v7  ;;  %v622_v23 = vshrl.u32 %v7209_v4, %v621_v0  ;;  %v634_v51 = vor.u32 %v633_v61, %v632_v54  ;;  %v588_v52 = vsub.s32 4, %v4781_v17 }
  0xd1   : > { %v4793_v24 = vsub.s32 %v562_v56, %v565_v50  ;;  %v637_v5 = vor.u32 %v636_v43, %v635_v3  ;;  %vm638_vm0 = vcmp.lt.s32.totalorder %v619_v13, 1  ;;  %vm640_vm2 = vcmp.lt.s32.totalorder %v619_v13, 3 }
  0xd2   : > { %vm3919_vm15 = vcmp.lt.s32.totalorder %v3918_v33, 0  ;;  %vm641_vm3 = vcmp.lt.s32.totalorder %v619_v13, 4  ;;  %v646_v56 = vsel %vm638_vm0, %v625_v53, %v628_v6  ;;  %v650_v7 = vsel %vm638_vm0, %v628_v6, %v631_v57 }
  0xd3   : > { %v469_v32 = vsel %vm3919_vm15, 0, %v3918_v33  ;;  %v568_v9 = vsub.s32 0, %v4793_v24  ;;  %v643_v41 = vsel %vm641_vm3, %v631_v57, 2102212464  ;;  %v647_v61 = vsel %vm641_vm3, %v634_v51, 920167782 }
  0xd4   : > { %v470_v44 = vsub.s32 32, %v469_v32  ;;  %v474_v15 = vsub.s32 4294967266, %v469_v32  ;;  %v471_v0 = vshll.u32 %v4753_v55, %v469_v32  ;;  %v648_v43 = vsel %vm640_vm2, %v631_v57, %v647_v61 }
  0xd5   : > { %v3921_v16 = vmin.u32 %v568_v9, %v4793_v24  ;;  %v651_v50 = vsel %vm641_vm3, %v637_v5, 1326507024  ;;  %vm4806_vm4 = vcmp.le.f32.partialorder %v502_v40, 0.7853982  ;;  %vm639_vm5 = vcmp.lt.s32.totalorder %v619_v13, 2 }
  0xd6   : > { %v472_v48 = vshrl.u32 %v454_v59, %v470_v44  ;;  %v475_v49 = vadd.s32 127, %v474_v15  ;;  %v642_v55 = vsel %vm638_vm0, %v622_v23, %v625_v53  ;;  %v644_v3 = vsel %vm640_vm2, %v628_v6, %v643_v41 }
  0xd7   : > { %v570_v33 = vclz %v3921_v16  ;;  %v649_v37 = vsel %vm639_vm5, %v646_v56, %v648_v43  ;;  %v652_v59 = vsel %vm640_vm2, %v634_v51, %v651_v50  ;;  %v645_v61 = vsel %vm639_vm5, %v642_v55, %v644_v3 }
  0xd8   : > { %v473_v32 = vor.u32 %v472_v48, %v471_v0  ;;  %v476_v9 = vshll.u32 %v475_v49, 23  ;;  %v653_v57 = vsel %vm639_vm5, %v650_v7, %v652_v59  ;;  %v491_v23 = vadd.s32 3, %v487_v39 }
  0xd9   : > { %v3922_v44 = vadd.s32 4294967294, %v570_v33  ;;  %v4814_v5 = vmul.u32.u64.low %v4769_v62, %v649_v37  ;;  %v4815_v15 = vmul.u32.u64.high %v4769_v62, %v649_v37, %v4814_v5  ;;  %v558_v53 = vadd.s32 %v4724_v27, %v4730_v42 }
  0xda   : > { %v477_v40 = vor.u32 4788187, %v476_v9  ;;  %v4818_v16 = vmul.u32.u64.low %v4769_v62, %v653_v57  ;;  %v4819_v14 = vmul.u32.u64.high %v4769_v62, %v653_v57, %v4818_v16  ;;  %v720_v6 = vadd.s32 1, %v3928_v2 }
  0xdb   : > { %vm3923_vm6 = vcmp.lt.s32.totalorder %v3922_v44, 0  ;;  %v480_v51 = vcvt.s32.f32 %v473_v32  ;;  %v589_v37 = vsel %vm504_vm1, %v588_v52, %v4781_v17  ;;  %v661_v7 = vmul.u32 %v4769_v62, %v645_v61 }
  0xdc   : > { %v478_v13 = vand.u32 2147483647, %v477_v40  ;;  %v573_v41 = vsel %vm3923_vm6, 0, %v3922_v44  ;;  %v664_v48 = vadd.s32 1, %v4815_v15  ;;  %vm663_vm7 = vc.u32 %v4819_v14, %v4814_v5 }
  0xdd   : > { %v574_v56 = vsub.s32 32, %v573_v41  ;;  %v578_v0 = vsub.s32 4294967266, %v573_v41  ;;  %v575_v39 = vshll.u32 %v4793_v24, %v573_v41  ;;  %vm721_vm8 = vcmp.gt.s32.totalorder %v720_v6, 0 }
  0xde   : > { %v481_v49 = vmul.f32 %v480_v51, %v478_v13  ;;  %v665_v2 = vsel %vm663_vm7, %v664_v48, %v4815_v15  ;;  %v722_v43 = vsel %vm721_vm8, %v720_v6, 0  ;;  %v591_v52 = vsel %vm4806_vm4, 0, %v589_v37 }
  0xdf   : > { %v576_v27 = vshrl.u32 %v558_v53, %v574_v56  ;;  %v579_v42 = vadd.s32 127, %v578_v0  ;;  %v666_v17 = vadd.s32 %v665_v2, %v661_v7  ;;  %v724_v33 = vand.u32 31, %v722_v43 }
  0xe0   : > { %v482_v50 = vxor.u32 2147483648, %v481_v49  ;;  %v4835_v62 = vmul.f32 %v4599_v21, %v4620_v29  ;;  %v4839_v24 = vmul.f32 %v4612_v26, %v4616_v28  ;;  %v814_v44 = vand.u32 2147483647, %v4757_v1 }
  0xe1   : > { %v577_v55 = vor.u32 %v576_v27, %v575_v39  ;;  %v580_v3 = vshll.u32 %v579_v42, 23  ;;  %v667_v9 = vadd.s32 536870912, %v666_v17  ;;  %v725_v59 = vsub.s32 32, %v724_v33 }
  0xe2   : > { %v483_v32 = vsel %vm400_vm13, %v482_v50, %v481_v49  ;;  %v4847_v15 = vand.u32 3, %v491_v23  ;;  %v4849_v61 = vadd.s32 3, %v591_v52  ;;  %v718_v53 = vor.u32 8388608, %v4774_v11 }
  0xe3   : > { %v486_v57 = vsel %vm4762_vm14, %v4633_v35, %v483_v32  ;;  %v581_v40 = vor.u32 4788187, %v580_v3  ;;  %v668_v16 = vshrl.u32 %v667_v9, 30  ;;  %v728_v6 = vshrl.u32 %v7215_v8, %v725_v59 }
  0xe4   : > { %4244 = vcosq.f32 %v486_v57  ;;  %v584_v51 = vcvt.s32.f32 %v577_v55  ;;  %v731_v41 = vshrl.u32 %v7212_v10, %v725_v59  ;;  %vm608_vm9 = vcmp.lt.s32.totalorder %v4647_v45, 0 }
  0xe5   : > { %4246 = vsinq.f32 %v486_v57  ;;  %v582_v13 = vand.u32 2147483647, %v581_v40  ;;  %v669_v58 = vshll.u32 %v668_v16, 30  ;;  %v4855_v37 = vshrl.u32 %v722_v43, 5 }
  0xe6   : > { %v727_v23 = vshll.u32 %v7209_v4, %v724_v33  ;;  %v734_v56 = vshrl.u32 %v7205_v12, %v725_v59  ;;  %v730_v7 = vshll.u32 %v7215_v8, %v724_v33  ;;  %v736_v11 = vshll.u32 %v7205_v12, %v724_v33 }
  0xe7   : > { %v585_v0 = vmul.f32 %v584_v51, %v582_v13  ;;  %v7223_v48 = vmov 920167782   ;;  %v4863_v39 = vadd.s32 %v4814_v5, %v4819_v14  ;;  %v4865_v27 = vsub.s32 %v666_v17, %v669_v58 }
  0xe8   : > { %v737_v49 = vshrl.u32 %v7223_v48, %v725_v59  ;;  %v729_v42 = vor.u32 %v728_v6, %v727_v23  ;;  %v733_v2 = vshll.u32 %v7212_v10, %v724_v33  ;;  %v732_v50 = vor.u32 %v731_v41, %v730_v7 }
  0xe9   : > { %v586_v43 = vxor.u32 2147483648, %v585_v0  ;;  %v7224_v55 = vmov 1326507024   ;;  %v672_v32 = vsub.s32 0, %v4865_v27  ;;  %v739_v57 = vshll.u32 %v7223_v48, %v724_v33 }
  0xea   : > { %v738_v52 = vor.u32 %v737_v49, %v736_v11  ;;  %v740_v3 = vshrl.u32 %v7224_v55, %v725_v59  ;;  %v735_v9 = vor.u32 %v734_v56, %v733_v2  ;;  %v4871_v40 = vshll.u32 %v718_v53, 8 }
  0xeb   : > { %vm497_vm10 = vcmp.eq.s32.totalorder %v4847_v15, 2  ;;  %v587_v14 = vsel %vm504_vm1, %v586_v43, %v585_v0  ;;  %v692_v5 = vsub.s32 4, %v668_v16  ;;  %vm742_vm11 = vcmp.lt.s32.totalorder %v4855_v37, 1 }
  0xec   : > { %v817_v17 = vand.u32 2139095040, %v4757_v1  ;;  %vm494_vm12 = vcmp.eq.s32.totalorder %v4847_v15, 0  ;;  %v590_v6 = vsel %vm4806_vm4, %v4636_v36, %v587_v14  ;;  %v3925_v33 = vmin.u32 %v672_v32, %v4865_v27 }
  0xed   : > { %v741_v53 = vor.u32 %v740_v3, %v739_v57  ;;  %vm745_vm13 = vcmp.lt.s32.totalorder %v4855_v37, 4  ;;  %vm493_vm14 = vcmp.lt.s32.totalorder %v4847_v15, 2  ;;  %4248 = vcosq.f32 %v590_v6 }
  0xee   : > { %v726_v13 = vshrl.u32 %v7209_v4, %v725_v59  ;;  %v750_v51 = vsel %vm742_vm11, %v729_v42, %v732_v50  ;;  %v751_v41 = vsel %vm745_vm13, %v738_v52, 920167782  ;;  %vm490_vm15 = vweird.f32 %v4633_v35 }
  0xef   : > { %4250 = vsinq.f32 %v590_v6  ;;  %v7225_v54 = vand.u32 2147483647, %v4647_v45  ;;  %v674_v23 = vclz %v3925_v33  ;;  %vm744_vm1 = vcmp.lt.s32.totalorder %v4855_v37, 3 }
  0xf0   : > { %v747_v59 = vsel %vm745_vm13, %v735_v9, 2102212464  ;;  %v693_v56 = vsel %vm608_vm9, %v692_v5, %v668_v16  ;;  %vm743_vm2 = vcmp.lt.s32.totalorder %v4855_v37, 2  ;;  %v752_v0 = vsel %vm744_vm1, %v735_v9, %v751_v41 }
  0xf1   : > { %vm4893_vm0 = vcmp.le.f32.partialorder %v7225_v54, 0.7853982  ;;  %v754_v7 = vsel %vm742_vm11, %v732_v50, %v735_v9  ;;  %v3926_v11 = vadd.s32 4294967294, %v674_v23  ;;  %v746_v49 = vsel %vm742_vm11, %v726_v13, %v729_v42  ;;  %v4245_v3 = vpop.eup %4244 }
  0xf2   : > { %v753_v2 = vsel %vm743_vm2, %v750_v51, %v752_v0  ;;  %v755_v43 = vsel %vm745_vm13, %v741_v53, 1326507024  ;;  %v748_v32 = vsel %vm744_vm1, %v732_v50, %v747_v59  ;;  %v4247_v5 = vpop.eup %4246  ;;  %v498_v9 = vxor.u32 2147483648, %v4245_v3 }
  0xf3   : > { %v756_v57 = vsel %vm744_vm1, %v738_v52, %v755_v43  ;;  %v4913_v16 = vmul.u32.u64.low %v4871_v40, %v753_v2  ;;  %v4914_v14 = vmul.u32.u64.high %v4871_v40, %v753_v2, %v4913_v16  ;;  %vm3927_vm3 = vcmp.lt.s32.totalorder %v3926_v11, 0 }
  0xf4   : > { %v757_v42 = vsel %vm743_vm2, %v754_v7, %v756_v57  ;;  %v818_v6 = vshrl.u32 %v817_v17, 23  ;;  %v495_v33 = vxor.u32 2147483648, %v4247_v5  ;;  %v677_v13 = vsel %vm3927_vm3, 0, %v3926_v11 }
  0xf5   : > { %v4922_v53 = vmul.u32.u64.low %v4871_v40, %v757_v42  ;;  %v4923_v50 = vmul.u32.u64.high %v4871_v40, %v757_v42, %v4922_v53  ;;  %v499_v52 = vsel %vm497_vm10, %v498_v9, %v4247_v5  ;;  %v678_v51 = vsub.s32 32, %v677_v13 }
  0xf6   : > { %v682_v41 = vsub.s32 4294967266, %v677_v13  ;;  %v749_v54 = vsel %vm743_vm2, %v746_v49, %v748_v32  ;;  %v496_v23 = vsel %vm494_vm12, %v4245_v3, %v495_v33  ;;  %v596_v59 = vand.u32 3, %v4849_v61  ;;  %v4962_v53 = vpop.permute.xlu1 %359 }
  0xf7   : > { %v768_v17 = vadd.s32 1, %v4914_v14  ;;  %v3932_v0 = vadd.s32 4294967169, %v818_v6  ;;  %v500_v7 = vsel %vm493_vm14, %v496_v23, %v499_v52  ;;  %v679_v11 = vshll.u32 %v4865_v27, %v677_v13 }
  0xf8   : > { %v680_v2 = vshrl.u32 %v4863_v39, %v678_v51  ;;  %v683_v43 = vadd.s32 127, %v682_v41  ;;  %v501_v37 = vsel %vm490_vm15, nan, %v500_v7  ;;  %v695_v49 = vsel %vm4893_vm0, 0, %v693_v56 }
  0xf9   : > { %v765_v3 = vmul.u32 %v4871_v40, %v749_v54  ;;  %vm767_vm4 = vc.u32 %v4923_v50, %v4913_v16  ;;  %v824_v57 = vadd.s32 1, %v3932_v0  ;;  %2062 = vst [vmem:[%s4945_s10] sm:$0xff] %v501_v37  ;;  %v4950_v35 = vmul.f32 %v4612_v26, %v4620_v29 }
  0xfa   : > { %v681_v61 = vor.u32 %v680_v2, %v679_v11  ;;  %v684_v32 = vshll.u32 %v683_v43, 23  ;;  %v769_v15 = vsel %vm767_vm4, %v768_v17, %v4914_v14  ;;  %v4954_v39 = vmul.f32 %v4610_v25, %v4616_v28  ;;  %v4249_v56 = vpop.eup %4248 }
  0xfb   : > { %v770_v27 = vadd.s32 %v769_v15, %v765_v3  ;;  %v821_v40 = vand.u32 8388607, %v814_v44  ;;  %v4960_v14 = vadd.f32 %v4736_v47, %v4747_v46  ;;  %vm601_vm5 = vcmp.eq.s32.totalorder %v596_v59, 2 }
  0xfc   : > { %v685_v5 = vor.u32 4788187, %v684_v32  ;;  %vm825_vm6 = vcmp.gt.s32.totalorder %v824_v57, 0  ;;  %v4251_v9 = vpop.eup %4250  ;;  %v602_v42 = vxor.u32 2147483648, %v4249_v56  ;;  %v699_v6 = vadd.s32 3, %v695_v49 }
  0xfd   : > { %v771_v33 = vadd.s32 536870912, %v770_v27  ;;  %v826_v13 = vsel %vm825_vm6, %v824_v57, 0  ;;  %v599_v52 = vxor.u32 2147483648, %v4251_v9  ;;  %v688_v41 = vcvt.s32.f32 %v681_v61 }
  0xfe   : > { %v686_v51 = vand.u32 2147483647, %v685_v5  ;;  %v828_v54 = vand.u32 31, %v826_v13  ;;  %vm598_vm7 = vcmp.eq.s32.totalorder %v596_v59, 0  ;;  %v603_v23 = vsel %vm601_vm5, %v602_v42, %v4251_v9 }
  0xff   : > { %v4964_v17 = vshrl.u32 %v771_v33, 30  ;;  %v822_v46 = vor.u32 8388608, %v821_v40  ;;  %vm597_vm8 = vcmp.lt.s32.totalorder %v596_v59, 2  ;;  %v600_v0 = vsel %vm598_vm7, %v4249_v56, %v599_v52 }
 0x100   : > { %v689_v7 = vmul.f32 %v688_v41, %v686_v51  ;;  %v829_v11 = vsub.s32 32, %v828_v54  ;;  %v4968_v2 = vadd.f32 %v4962_v53, %v4751_v63  ;;  %vm594_vm10 = vweird.f32 %v4636_v36 }
 0x101   : > { %v604_v43 = vsel %vm597_vm8, %v600_v0, %v603_v23  ;;  %v773_v37 = vshll.u32 %v4964_v17, 30  ;;  %v4972_v61 = vand.u32 3, %v699_v6  ;;  %v4978_v57 = vshll.u32 %v822_v46, 8 }
 0x102   : > { %v605_v49 = vsel %vm594_vm10, nan, %v604_v43  ;;  %v690_v3 = vxor.u32 2147483648, %v689_v7  ;;  %v832_v32 = vshrl.u32 %v7215_v8, %v829_v11  ;;  %v835_v15 = vshrl.u32 %v7212_v10, %v829_v11 }
 0x103   : > { %v4975_v59 = vsub.s32 %v770_v27, %v773_v37  ;;  %v921_v63 = vand.u32 2139095040, %v4960_v14  ;;  %2063 = vst [vmem:[%s4945_s10 + $0x8] sm:$0xff] %v605_v49  ;;  %v827_v40 = vshrl.u32 %v826_v13, 5  ;;  %v831_v56 = vshll.u32 %v7209_v4, %v828_v54 }
 0x104   : > { %v691_v36 = vsel %vm608_vm9, %v690_v3, %v689_v7  ;;  %v838_v5 = vshrl.u32 %v7205_v12, %v829_v11  ;;  %v834_v42 = vshll.u32 %v7215_v8, %v828_v54  ;;  %v837_v6 = vshll.u32 %v7212_v10, %v828_v54 }
 0x105   : > { %v694_v27 = vsel %vm4893_vm0, %v4647_v45, %v691_v36  ;;  %v776_v9 = vsub.s32 0, %v4975_v59  ;;  %v833_v33 = vor.u32 %v832_v32, %v831_v56  ;;  %v840_v52 = vshll.u32 %v7205_v12, %v828_v54 }
 0x106   : > { %4252 = vcosq.f32 %v694_v27  ;;  %v841_v13 = vshrl.u32 %v7223_v48, %v829_v11  ;;  %v836_v41 = vor.u32 %v835_v15, %v834_v42  ;;  %v839_v23 = vor.u32 %v838_v5, %v837_v6 }
 0x107   : > { %4254 = vsinq.f32 %v694_v27  ;;  %v3929_v51 = vmin.u32 %v776_v9, %v4975_v59  ;;  %v843_v58 = vshll.u32 %v7223_v48, %v828_v54  ;;  %v844_v0 = vshrl.u32 %v7224_v55, %v829_v11 }
 0x108   : > { %v842_v46 = vor.u32 %v841_v13, %v840_v52  ;;  %v922_v7 = vshrl.u32 %v921_v63, 23  ;;  %vm712_vm9 = vcmp.lt.s32.totalorder %v4658_v60, 0  ;;  %v796_v37 = vsub.s32 4, %v4964_v17 }
 0x109   : > { %v778_v43 = vclz %v3929_v51  ;;  %v830_v49 = vshrl.u32 %v7209_v4, %v829_v11  ;;  %vm846_vm11 = vcmp.lt.s32.totalorder %v827_v40, 1  ;;  %v845_v3 = vor.u32 %v844_v0, %v843_v58 }
 0x10a   : > { %vm847_vm12 = vcmp.lt.s32.totalorder %v827_v40, 2  ;;  %vm848_vm13 = vcmp.lt.s32.totalorder %v827_v40, 3  ;;  %vm849_vm14 = vcmp.lt.s32.totalorder %v827_v40, 4  ;;  %v854_v36 = vsel %vm846_vm11, %v833_v33, %v836_v41 }
 0x10b   : > { %v3930_v32 = vadd.s32 4294967294, %v778_v43  ;;  %v851_v15 = vsel %vm849_vm14, %v839_v23, 2102212464  ;;  %v855_v56 = vsel %vm849_vm14, %v842_v46, 920167782  ;;  %v850_v5 = vsel %vm846_vm11, %v830_v49, %v833_v33 }
 0x10c   : > { %v7228_v54 = vand.u32 2147483647, %v4658_v60  ;;  %v856_v27 = vsel %vm848_vm13, %v839_v23, %v855_v56  ;;  %v858_v9 = vsel %vm846_vm11, %v836_v41, %v839_v23  ;;  %v859_v42 = vsel %vm849_vm14, %v845_v3, 1326507024 }
 0x10d   : > { %vm3931_vm0 = vcmp.lt.s32.totalorder %v3930_v32, 0  ;;  %v852_v11 = vsel %vm848_vm13, %v836_v41, %v851_v15  ;;  %v857_v6 = vsel %vm847_vm12, %v854_v36, %v856_v27  ;;  %v860_v52 = vsel %vm848_vm13, %v842_v46, %v859_v42 }
 0x10e   : > { %vm5002_vm15 = vcmp.le.f32.partialorder %v7228_v54, 0.7853982  ;;  %v781_v13 = vsel %vm3931_vm0, 0, %v3930_v32  ;;  %v861_v51 = vsel %vm847_vm12, %v858_v9, %v860_v52  ;;  %v766_v43 = vadd.s32 %v4913_v16, %v4923_v50 }
 0x10f   : > { %v5009_v58 = vmul.u32.u64.low %v4978_v57, %v857_v6  ;;  %v5010_v0 = vmul.u32.u64.high %v4978_v57, %v857_v6, %v5009_v58  ;;  %v782_v33 = vsub.s32 32, %v781_v13  ;;  %v786_v49 = vsub.s32 4294967266, %v781_v13 }
 0x110   : > { %v918_v23 = vand.u32 2147483647, %v4960_v14  ;;  %vm701_vm1 = vcmp.lt.s32.totalorder %v4972_v61, 2  ;;  %v5018_v41 = vmul.u32.u64.low %v4978_v57, %v861_v51  ;;  %v5019_v46 = vmul.u32.u64.high %v4978_v57, %v861_v51, %v5018_v41 }
 0x111   : > { %v3936_v3 = vadd.s32 4294967169, %v922_v7  ;;  %v783_v32 = vshll.u32 %v4975_v59, %v781_v13  ;;  %v784_v15 = vshrl.u32 %v766_v43, %v782_v33  ;;  %v787_v36 = vadd.s32 127, %v786_v49 }
 0x112   : > { %v853_v56 = vsel %vm847_vm12, %v850_v5, %v852_v11  ;;  %vm702_vm2 = vcmp.eq.s32.totalorder %v4972_v61, 0  ;;  %v797_v16 = vsel %vm712_vm9, %v796_v37, %v4964_v17  ;;  %v872_v50 = vadd.s32 1, %v5010_v0 }
 0x113   : > { %v928_v54 = vadd.s32 1, %v3936_v3  ;;  %v4253_v27 = vpop.eup %4252  ;;  %vm705_vm3 = vcmp.eq.s32.totalorder %v4972_v61, 2  ;;  %v785_v9 = vor.u32 %v784_v15, %v783_v32  ;;  %v788_v7 = vshll.u32 %v787_v36, 23 }
 0x114   : > { %v925_v59 = vand.u32 8388607, %v918_v23  ;;  %v4255_v42 = vpop.eup %4254  ;;  %v706_v40 = vxor.u32 2147483648, %v4253_v27  ;;  %v869_v5 = vmul.u32 %v4978_v57, %v853_v56  ;;  %vm871_vm4 = vc.u32 %v5019_v46, %v5009_v58 }
 0x115   : > { %vm929_vm5 = vcmp.gt.s32.totalorder %v928_v54, 0  ;;  %v703_v17 = vxor.u32 2147483648, %v4255_v42  ;;  %v789_v37 = vor.u32 4788187, %v788_v7  ;;  %v799_v11 = vsel %vm5002_vm15, 0, %v797_v16 }
 0x116   : > { %v873_v6 = vsel %vm871_vm4, %v872_v50, %v5010_v0  ;;  %v707_v52 = vsel %vm705_vm3, %v706_v40, %v4255_v42  ;;  %v930_v51 = vsel %vm929_vm5, %v928_v54, 0  ;;  %v1025_v43 = vand.u32 2139095040, %v4968_v2 }
 0x117   : > { %v874_v13 = vadd.s32 %v873_v6, %v869_v5  ;;  %v704_v33 = vsel %vm702_vm2, %v4253_v27, %v703_v17  ;;  %v790_v57 = vand.u32 2147483647, %v789_v37  ;;  %v792_v49 = vcvt.s32.f32 %v785_v9 }
 0x118   : > { %v932_v41 = vand.u32 31, %v930_v51  ;;  %v5042_v3 = vmul.f32 %v4610_v25, %v4620_v29  ;;  %vm698_vm6 = vweird.f32 %v4647_v45  ;;  %v708_v0 = vsel %vm701_vm1, %v704_v33, %v707_v52 }
 0x119   : > { %v875_v32 = vadd.s32 536870912, %v874_v13  ;;  %v709_v15 = vsel %vm698_vm6, nan, %v708_v0  ;;  %v793_v36 = vmul.f32 %v792_v49, %v790_v57  ;;  %v803_v56 = vadd.s32 3, %v799_v11 }
 0x11a   : > { %v933_v16 = vsub.s32 32, %v932_v41  ;;  %v926_v54 = vor.u32 8388608, %v925_v59  ;;  %v935_v27 = vshll.u32 %v7209_v4, %v932_v41  ;;  %v1026_v9 = vshrl.u32 %v1025_v43, 23  ;;  %2064 = vst [vmem:[%s4945_s10 + $0x10] sm:$0xff] %v709_v15 }
 0x11b   : > { %v5047_v50 = vshrl.u32 %v875_v32, 30  ;;  %v794_v7 = vxor.u32 2147483648, %v793_v36  ;;  %v938_v45 = vshll.u32 %v7215_v8, %v932_v41  ;;  %v941_v5 = vshll.u32 %v7212_v10, %v932_v41 }
 0x11c   : > { %v936_v42 = vshrl.u32 %v7215_v8, %v933_v16  ;;  %v939_v61 = vshrl.u32 %v7212_v10, %v933_v16  ;;  %v942_v17 = vshrl.u32 %v7205_v12, %v933_v16  ;;  %v945_v37 = vshrl.u32 %v7223_v48, %v933_v16 }
 0x11d   : > { %v877_v40 = vshll.u32 %v5047_v50, 30  ;;  %v795_v59 = vsel %vm712_vm9, %v794_v7, %v793_v36  ;;  %v931_v11 = vshrl.u32 %v930_v51, 5  ;;  %v944_v52 = vshll.u32 %v7205_v12, %v932_v41 }
 0x11e   : > { %v937_v6 = vor.u32 %v936_v42, %v935_v27  ;;  %v798_v43 = vsel %vm5002_vm15, %v4658_v60, %v795_v59  ;;  %v940_v57 = vor.u32 %v939_v61, %v938_v45  ;;  %v943_v49 = vor.u32 %v942_v17, %v941_v5 }
 0x11f   : > { %v5064_v33 = vsub.s32 %v874_v13, %v877_v40  ;;  %4256 = vcosq.f32 %v798_v43  ;;  %v946_v0 = vor.u32 %v945_v37, %v944_v52  ;;  %v947_v32 = vshll.u32 %v7223_v48, %v932_v41 }
 0x120   : > { %v948_v15 = vshrl.u32 %v7224_v55, %v933_v16  ;;  %v5070_v51 = vmul.f32 %v4622_v30, %v4616_v28  ;;  %v5074_v36 = vmul.f32 %v4622_v30, %v4620_v29  ;;  %4258 = vsinq.f32 %v798_v43 }
 0x121   : > { %v880_v63 = vsub.s32 0, %v5064_v33  ;;  %v5079_v13 = vadd.f32 %v4962_v53, %v4835_v62  ;;  %v5081_v27 = vand.u32 3, %v803_v56  ;;  %vm953_vm7 = vcmp.lt.s32.totalorder %v931_v11, 4 }
 0x122   : > { %v949_v41 = vor.u32 %v948_v15, %v947_v32  ;;  %vm950_vm8 = vcmp.lt.s32.totalorder %v931_v11, 1  ;;  %v955_v42 = vsel %vm953_vm7, %v943_v49, 2102212464  ;;  %v966_v45 = vshll.u32 %v926_v54, 8 }
 0x123   : > { %v3933_v7 = vmin.u32 %v880_v63, %v5064_v33  ;;  %v934_v61 = vshrl.u32 %v7209_v4, %v933_v16  ;;  %v958_v40 = vsel %vm950_vm8, %v937_v6, %v940_v57  ;;  %v959_v5 = vsel %vm953_vm7, %v946_v0, 920167782 }
 0x124   : > { %v3940_v17 = vadd.s32 4294967169, %v1026_v9  ;;  %vm951_vm10 = vcmp.lt.s32.totalorder %v931_v11, 2  ;;  %vm952_vm9 = vcmp.lt.s32.totalorder %v931_v11, 3  ;;  %v962_v62 = vsel %vm950_vm8, %v940_v57, %v943_v49 }
 0x125   : > { %v882_v37 = vclz %v3933_v7  ;;  %v954_v56 = vsel %vm950_vm8, %v934_v61, %v937_v6  ;;  %v956_v59 = vsel %vm952_vm9, %v940_v57, %v955_v42  ;;  %v960_v52 = vsel %vm952_vm9, %v943_v49, %v959_v5 }
 0x126   : > { %v963_v43 = vsel %vm953_vm7, %v949_v41, 1326507024  ;;  %vm816_vm11 = vcmp.lt.s32.totalorder %v4757_v1, 0  ;;  %v961_v54 = vsel %vm951_vm10, %v958_v40, %v960_v52  ;;  %vm5092_vm12 = vcmp.le.f32.partialorder %v814_v44, 0.7853982 }
 0x127   : > { %v3934_v32 = vadd.s32 4294967294, %v882_v37  ;;  %v964_v15 = vsel %vm952_vm9, %v946_v0, %v963_v43  ;;  %v5097_v63 = vmul.u32.u64.low %v966_v45, %v961_v54  ;;  %v5098_v6 = vmul.u32.u64.high %v966_v45, %v961_v54, %v5097_v63 }
 0x128   : > { %v965_v9 = vsel %vm951_vm10, %v962_v62, %v964_v15  ;;  %v1032_v57 = vadd.s32 1, %v3940_v17  ;;  %v957_v49 = vsel %vm951_vm10, %v954_v56, %v956_v59  ;;  %vm802_vm14 = vweird.f32 %v4658_v60 }
 0x129   : > { %vm3935_vm13 = vcmp.lt.s32.totalorder %v3934_v32, 0  ;;  %v5102_v41 = vmul.u32.u64.low %v966_v45, %v965_v9  ;;  %v5103_v7 = vmul.u32.u64.high %v966_v45, %v965_v9, %v5102_v41  ;;  %vm809_vm15 = vcmp.eq.s32.totalorder %v5081_v27, 2 }
 0x12a   : > { %v885_v44 = vsel %vm3935_vm13, 0, %v3934_v32  ;;  %v900_v0 = vsub.s32 4, %v5047_v50  ;;  %vm1033_vm0 = vcmp.gt.s32.totalorder %v1032_v57, 0  ;;  %v870_v42 = vadd.s32 %v5009_v58, %v5019_v46 }
 0x12b   : > { %v886_v61 = vsub.s32 32, %v885_v44  ;;  %v890_v40 = vsub.s32 4294967266, %v885_v44  ;;  %v1034_v5 = vsel %vm1033_vm0, %v1032_v57, 0  ;;  %v973_v17 = vmul.u32 %v966_v45, %v957_v49 }
 0x12c   : > { %v976_v11 = vadd.s32 1, %v5098_v6  ;;  %v7204_v37 = vand.u32 2147483647, %v4968_v2  ;;  %v1036_v62 = vand.u32 31, %v1034_v5  ;;  %v4257_v56 = vpop.eup %4256  ;;  %v887_v59 = vshll.u32 %v5064_v33, %v885_v44 }
 0x12d   : > { %v888_v52 = vshrl.u32 %v870_v42, %v886_v61  ;;  %v891_v43 = vadd.s32 127, %v890_v40  ;;  %vm975_vm1 = vc.u32 %v5103_v7, %v5097_v63  ;;  %v4259_v32 = vpop.eup %4258  ;;  %v810_v54 = vxor.u32 2147483648, %v4257_v56 }
 0x12e   : > { %v901_v58 = vsel %vm816_vm11, %v900_v0, %v5047_v50  ;;  %v977_v46 = vsel %vm975_vm1, %v976_v11, %v5098_v6  ;;  %v1037_v45 = vsub.s32 32, %v1036_v62  ;;  %v807_v15 = vxor.u32 2147483648, %v4259_v32 }
 0x12f   : > { %v889_v9 = vor.u32 %v888_v52, %v887_v59  ;;  %v892_v57 = vshll.u32 %v891_v43, 23  ;;  %v978_v49 = vadd.s32 %v977_v46, %v973_v17  ;;  %vm805_vm2 = vcmp.lt.s32.totalorder %v5081_v27, 2 }
 0x130   : > { %vm806_vm3 = vcmp.eq.s32.totalorder %v5081_v27, 0  ;;  %v811_v33 = vsel %vm809_vm15, %v810_v54, %v4259_v32  ;;  %v1029_v41 = vand.u32 8388607, %v7204_v37  ;;  %v903_v6 = vsel %vm5092_vm12, 0, %v901_v58  ;;  %v5136_v58 = vpop.permute.xlu0 %364 }
 0x131   : > { %v808_v44 = vsel %vm806_vm3, %v4257_v56, %v807_v15  ;;  %v893_v50 = vor.u32 4788187, %v892_v57  ;;  %v979_v0 = vadd.s32 536870912, %v978_v49  ;;  %v896_v61 = vcvt.s32.f32 %v889_v9 }
 0x132   : > { %v812_v42 = vsel %vm805_vm2, %v808_v44, %v811_v33  ;;  %v1040_v40 = vshrl.u32 %v7215_v8, %v1037_v45  ;;  %v1043_v17 = vshrl.u32 %v7212_v10, %v1037_v45  ;;  %v1046_v52 = vshrl.u32 %v7205_v12, %v1037_v45 }
 0x133   : > { %v813_v27 = vsel %vm802_vm14, nan, %v812_v42  ;;  %v894_v11 = vand.u32 2147483647, %v893_v50  ;;  %v980_v59 = vshrl.u32 %v979_v0, 30  ;;  %v1035_v56 = vshrl.u32 %v1034_v5, 5 }
 0x134   : > { %v1039_v43 = vshll.u32 %v7209_v4, %v1036_v62  ;;  %v1048_v32 = vshll.u32 %v7205_v12, %v1036_v62  ;;  %v1049_v54 = vshrl.u32 %v7223_v48, %v1037_v45  ;;  %2065 = vst [vmem:[%s4945_s10 + $0x18] sm:$0xff] %v813_v27  ;;  %v1042_v9 = vshll.u32 %v7215_v8, %v1036_v62 }
 0x135   : > { %v897_v46 = vmul.f32 %v896_v61, %v894_v11  ;;  %v981_v15 = vshll.u32 %v980_v59, 30  ;;  %v1045_v60 = vshll.u32 %v7212_v10, %v1036_v62  ;;  %v1051_v44 = vshll.u32 %v7223_v48, %v1036_v62 }
 0x136   : > { %v1041_v57 = vor.u32 %v1040_v40, %v1039_v43  ;;  %v1050_v33 = vor.u32 %v1049_v54, %v1048_v32  ;;  %v1052_v5 = vshrl.u32 %v7224_v55, %v1037_v45  ;;  %v1044_v42 = vor.u32 %v1043_v17, %v1042_v9 }
 0x137   : > { %v898_v50 = vxor.u32 2147483648, %v897_v46  ;;  %v5142_v0 = vsub.s32 %v978_v49, %v981_v15  ;;  %v1047_v37 = vor.u32 %v1046_v52, %v1045_v60  ;;  %v5146_v27 = vadd.f32 %v5136_v58, %v4839_v24 }
 0x138   : > { %v907_v61 = vadd.s32 3, %v903_v6  ;;  %v1030_v11 = vor.u32 8388608, %v1029_v41  ;;  %v1053_v12 = vor.u32 %v1052_v5, %v1051_v44  ;;  %v1038_v62 = vshrl.u32 %v7209_v4, %v1037_v45 }
 0x139   : > { %v899_v40 = vsel %vm816_vm11, %v898_v50, %v897_v46  ;;  %v984_v43 = vsub.s32 0, %v5142_v0  ;;  %vm1057_vm4 = vcmp.lt.s32.totalorder %v1035_v56, 4  ;;  %vm1054_vm5 = vcmp.lt.s32.totalorder %v1035_v56, 1 }
 0x13a   : > { %v902_v49 = vsel %vm5092_vm12, %v4757_v1, %v899_v40  ;;  %vm1056_vm6 = vcmp.lt.s32.totalorder %v1035_v56, 3  ;;  %v1063_v17 = vsel %vm1057_vm4, %v1050_v33, 920167782  ;;  %v1059_v41 = vsel %vm1057_vm4, %v1047_v37, 2102212464 }
 0x13b   : > { %4260 = vcosq.f32 %v902_v49  ;;  %v3937_v24 = vmin.u32 %v984_v43, %v5142_v0  ;;  %v1062_v6 = vsel %vm1054_vm5, %v1041_v57, %v1044_v42  ;;  %v1064_v52 = vsel %vm1056_vm6, %v1047_v37, %v1063_v17 }
 0x13c   : > { %4262 = vsinq.f32 %v902_v49  ;;  %v1066_v32 = vsel %vm1054_vm5, %v1044_v42, %v1047_v37  ;;  %v1067_v54 = vsel %vm1057_vm4, %v1053_v12, 1326507024  ;;  %v1004_v45 = vsub.s32 4, %v980_v59 }
 0x13d   : > { %v986_v46 = vclz %v3937_v24  ;;  %vm1055_vm7 = vcmp.lt.s32.totalorder %v1035_v56, 2  ;;  %v1070_v15 = vshll.u32 %v1030_v11, 8  ;;  %v1058_v9 = vsel %vm1054_vm5, %v1038_v62, %v1041_v57 }
 0x13e   : > { %v1060_v16 = vsel %vm1056_vm6, %v1044_v42, %v1059_v41  ;;  %v1065_v60 = vsel %vm1055_vm7, %v1062_v6, %v1064_v52  ;;  %v1068_v44 = vsel %vm1056_vm6, %v1050_v33, %v1067_v54  ;;  %vm920_vm8 = vcmp.lt.s32.totalorder %v4960_v14, 0 }
 0x13f   : > { %v3938_v5 = vadd.s32 4294967294, %v986_v46  ;;  %v1069_v50 = vsel %vm1055_vm7, %v1066_v32, %v1068_v44  ;;  %v5159_v40 = vmul.u32.u64.low %v1070_v15, %v1065_v60  ;;  %v5160_v43 = vmul.u32.u64.high %v1070_v15, %v1065_v60, %v5159_v40 }
 0x140   : > { %v5163_v49 = vmul.u32.u64.low %v1070_v15, %v1069_v50  ;;  %v5164_v37 = vmul.u32.u64.high %v1070_v15, %v1069_v50, %v5163_v49  ;;  %v1129_v12 = vand.u32 2139095040, %v5079_v13  ;;  %vm5169_vm10 = vcmp.le.f32.partialorder %v918_v23, 0.7853982 }
 0x141   : > { %vm3939_vm9 = vcmp.lt.s32.totalorder %v3938_v5, 0  ;;  %v1005_v56 = vsel %vm920_vm8, %v1004_v45, %v980_v59  ;;  %v1061_v33 = vsel %vm1055_vm7, %v1058_v9, %v1060_v16  ;;  %v908_v42 = vand.u32 3, %v907_v61 }
 0x142   : > { %v989_v11 = vsel %vm3939_vm9, 0, %v3938_v5  ;;  %v7208_v62 = vand.u32 2147483647, %v5079_v13  ;;  %v1130_v17 = vshrl.u32 %v1129_v12, 23  ;;  %v974_v24 = vadd.s32 %v5097_v63, %v5103_v7 }
 0x143   : > { %v990_v41 = vsub.s32 32, %v989_v11  ;;  %v994_v6 = vsub.s32 4294967266, %v989_v11  ;;  %v1080_v23 = vadd.s32 1, %v5160_v43  ;;  %v1007_v52 = vsel %vm5169_vm10, 0, %v1005_v56 }
 0x144   : > { %v1077_v32 = vmul.u32 %v1070_v15, %v1061_v33  ;;  %vm1079_vm11 = vc.u32 %v5164_v37, %v5159_v40  ;;  %v3944_v59 = vadd.s32 4294967169, %v1130_v17  ;;  %v991_v61 = vshll.u32 %v5142_v0, %v989_v11 }
 0x145   : > { %v992_v54 = vshrl.u32 %v974_v24, %v990_v41  ;;  %v995_v46 = vadd.s32 127, %v994_v6  ;;  %v1081_v45 = vsel %vm1079_vm11, %v1080_v23, %v5160_v43  ;;  %v5186_v63 = vadd.f32 %v5136_v58, %v4950_v35 }
 0x146   : > { %vm906_vm12 = vweird.f32 %v4757_v1  ;;  %v1082_v7 = vadd.s32 %v1081_v45, %v1077_v32  ;;  %v1136_v9 = vadd.s32 1, %v3944_v59  ;;  %vm909_vm13 = vcmp.lt.s32.totalorder %v908_v42, 2 }
 0x147   : > { %v993_v16 = vor.u32 %v992_v54, %v991_v61  ;;  %v996_v15 = vshll.u32 %v995_v46, 23  ;;  %v1011_v60 = vadd.s32 3, %v1007_v52  ;;  %vm910_vm14 = vcmp.eq.s32.totalorder %v908_v42, 0 }
 0x148   : > { %v4261_v44 = vpop.eup %4260  ;;  %v1083_v5 = vadd.s32 536870912, %v1082_v7  ;;  %vm1137_vm15 = vcmp.gt.s32.totalorder %v1136_v9, 0  ;;  %v1233_v0 = vand.u32 2139095040, %v5146_v27  ;;  %v1133_v35 = vand.u32 8388607, %v7208_v62 }
 0x149   : > { %v4263_v50 = vpop.eup %4262  ;;  %v914_v43 = vxor.u32 2147483648, %v4261_v44  ;;  %v997_v49 = vor.u32 4788187, %v996_v15  ;;  %v1138_v12 = vsel %vm1137_vm15, %v1136_v9, 0  ;;  %vm913_vm0 = vcmp.eq.s32.totalorder %v908_v42, 2 }
 0x14a   : > { %v911_v56 = vxor.u32 2147483648, %v4263_v50  ;;  %v5192_v33 = vshrl.u32 %v1083_v5, 30  ;;  %v1140_v11 = vand.u32 31, %v1138_v12  ;;  %v1000_v41 = vcvt.s32.f32 %v993_v16 }
 0x14b   : > { %v915_v17 = vsel %vm913_vm0, %v914_v43, %v4263_v50  ;;  %v998_v24 = vand.u32 2147483647, %v997_v49  ;;  %v5194_v6 = vand.u32 3, %v1011_v60  ;;  %v1234_v59 = vshrl.u32 %v1233_v0, 23 }
 0x14c   : > { %v912_v23 = vsel %vm910_vm14, %v4261_v44, %v911_v56  ;;  %v1085_v52 = vshll.u32 %v5192_v33, 30  ;;  %v1141_v32 = vsub.s32 32, %v1140_v11  ;;  %v1134_v46 = vor.u32 8388608, %v1133_v35 }
 0x14d   : > { %v916_v61 = vsel %vm909_vm13, %v912_v23, %v915_v17  ;;  %v1001_v54 = vmul.f32 %v1000_v41, %v998_v24  ;;  %v7207_v45 = vand.u32 2147483647, %v5146_v27  ;;  %v1078_v16 = vadd.s32 %v5159_v40, %v5164_v37 }
 0x14e   : > { %v917_v9 = vsel %vm906_vm12, nan, %v916_v61  ;;  %v5203_v15 = vsub.s32 %v1082_v7, %v1085_v52  ;;  %v1143_v60 = vshll.u32 %v7209_v4, %v1140_v11  ;;  %v1144_v5 = vshrl.u32 %v7215_v8, %v1141_v32 }
 0x14f   : > { %v1002_v44 = vxor.u32 2147483648, %v1001_v54  ;;  %v1146_v0 = vshll.u32 %v7215_v8, %v1140_v11  ;;  %v1147_v42 = vshrl.u32 %v7212_v10, %v1141_v32  ;;  %2066 = vst [vmem:[%s4945_s10 + $0x20] sm:$0xff] %v917_v9  ;;  %v1149_v43 = vshll.u32 %v7212_v10, %v1140_v11 }
 0x150   : > { %v1088_v50 = vsub.s32 0, %v5203_v15  ;;  %v7235_v1 = vmov 2102212464   ;;  %v3948_v35 = vadd.s32 4294967169, %v1234_v59  ;;  %v1139_v37 = vshrl.u32 %v1138_v12, 5 }
 0x151   : > { %v1150_v49 = vshrl.u32 %v7235_v1, %v1141_v32  ;;  %v1003_v40 = vsel %vm920_vm8, %v1002_v44, %v1001_v54  ;;  %v1145_v7 = vor.u32 %v1144_v5, %v1143_v60  ;;  %v1148_v56 = vor.u32 %v1147_v42, %v1146_v0 }
 0x152   : > { %v1006_v17 = vsel %vm5169_vm10, %v4960_v14, %v1003_v40  ;;  %v3941_v24 = vmin.u32 %v1088_v50, %v5203_v15  ;;  %v1152_v23 = vshll.u32 %v7235_v1, %v1140_v11  ;;  %v1153_v52 = vshrl.u32 %v7223_v48, %v1141_v32 }
 0x153   : > { %v1151_v41 = vor.u32 %v1150_v49, %v1149_v43  ;;  %4264 = vcosq.f32 %v1006_v17  ;;  %v1155_v59 = vshll.u32 %v7223_v48, %v1140_v11  ;;  %v1156_v61 = vshrl.u32 %v7224_v55, %v1141_v32 }
 0x154   : > { %4266 = vsinq.f32 %v1006_v17  ;;  %v1090_v12 = vclz %v3941_v24  ;;  %v1174_v54 = vshll.u32 %v1134_v46, 8  ;;  %v5225_v9 = vand.u32 8388607, %v7207_v45 }
 0x155   : > { %vm1024_vm1 = vcmp.lt.s32.totalorder %v4968_v2, 0  ;;  %v1108_v57 = vsub.s32 4, %v5192_v33  ;;  %v1154_v60 = vor.u32 %v1153_v52, %v1152_v23  ;;  %v1157_v44 = vor.u32 %v1156_v61, %v1155_v59 }
 0x156   : > { %v1240_v5 = vadd.s32 1, %v3948_v35  ;;  %v3942_v0 = vadd.s32 4294967294, %v1090_v12  ;;  %v1142_v42 = vshrl.u32 %v7209_v4, %v1141_v32  ;;  %vm1158_vm2 = vcmp.lt.s32.totalorder %v1139_v37, 1 }
 0x157   : > { %vm1161_vm3 = vcmp.lt.s32.totalorder %v1139_v37, 4  ;;  %vm1160_vm4 = vcmp.lt.s32.totalorder %v1139_v37, 3  ;;  %v1166_v50 = vsel %vm1158_vm2, %v1145_v7, %v1148_v56  ;;  %vm1159_vm6 = vcmp.lt.s32.totalorder %v1139_v37, 2 }
 0x158   : > { %v1163_v11 = vsel %vm1161_vm3, %v1151_v41, 2102212464  ;;  %v1167_v46 = vsel %vm1161_vm3, %v1154_v60, 920167782  ;;  %vm3943_vm5 = vcmp.lt.s32.totalorder %v3942_v0, 0  ;;  %v1170_v49 = vsel %vm1158_vm2, %v1148_v56, %v1151_v41 }
 0x159   : > { %v1168_v43 = vsel %vm1160_vm4, %v1151_v41, %v1167_v46  ;;  %v1093_v40 = vsel %vm3943_vm5, 0, %v3942_v0  ;;  %v1162_v17 = vsel %vm1158_vm2, %v1142_v42, %v1145_v7  ;;  %v1171_v23 = vsel %vm1161_vm3, %v1157_v44, 1326507024 }
 0x15a   : > { %v1169_v24 = vsel %vm1159_vm6, %v1166_v50, %v1168_v43  ;;  %v1094_v52 = vsub.s32 32, %v1093_v40  ;;  %v1098_v35 = vsub.s32 4294967266, %v1093_v40  ;;  %v1164_v59 = vsel %vm1160_vm4, %v1148_v56, %v1163_v11 }
 0x15b   : > { %v1172_v61 = vsel %vm1160_vm4, %v1154_v60, %v1171_v23  ;;  %v1095_v32 = vshll.u32 %v5203_v15, %v1093_v40  ;;  %v5233_v45 = vmul.u32.u64.low %v1174_v54, %v1169_v24  ;;  %v5234_v62 = vmul.u32.u64.high %v1174_v54, %v1169_v24, %v5233_v45 }
 0x15c   : > { %v1173_v12 = vsel %vm1159_vm6, %v1170_v49, %v1172_v61  ;;  %v1096_v4 = vshrl.u32 %v1078_v16, %v1094_v52  ;;  %v1099_v46 = vadd.s32 127, %v1098_v35  ;;  %vm1010_vm7 = vweird.f32 %v4960_v14 }
 0x15d   : > { %v5237_v41 = vmul.u32.u64.low %v1174_v54, %v1173_v12  ;;  %v5238_v0 = vmul.u32.u64.high %v1174_v54, %v1173_v12, %v5237_v41  ;;  %vm1013_vm8 = vcmp.lt.s32.totalorder %v5194_v6, 2  ;;  %v7236_v7 = vand.u32 2147483647, %v4968_v2 }
 0x15e   : > { %v1165_v15 = vsel %vm1159_vm6, %v1162_v17, %v1164_v59  ;;  %vm1241_vm9 = vcmp.gt.s32.totalorder %v1240_v5, 0  ;;  %v1097_v60 = vor.u32 %v1096_v4, %v1095_v32  ;;  %v1100_v44 = vshll.u32 %v1099_v46, 23 }
 0x15f   : > { %vm5244_vm10 = vcmp.le.f32.partialorder %v7236_v7, 0.7853982  ;;  %v1109_v16 = vsel %vm1024_vm1, %v1108_v57, %v5192_v33  ;;  %v1242_v42 = vsel %vm1241_vm9, %v1240_v5, 0  ;;  %vm1014_vm11 = vcmp.eq.s32.totalorder %v5194_v6, 0 }
 0x160   : > { %vm1017_vm12 = vcmp.eq.s32.totalorder %v5194_v6, 2  ;;  %v1184_v11 = vadd.s32 1, %v5234_v62  ;;  %v1244_v50 = vand.u32 31, %v1242_v42  ;;  %v4265_v43 = vpop.eup %4264  ;;  %v1101_v49 = vor.u32 4788187, %v1100_v44 }
 0x161   : > { %v1181_v40 = vmul.u32 %v1174_v54, %v1165_v15  ;;  %vm1183_vm13 = vc.u32 %v5238_v0, %v5233_v45  ;;  %v1238_v4 = vor.u32 8388608, %v5225_v9  ;;  %v4267_v37 = vpop.eup %4266  ;;  %v1018_v17 = vxor.u32 2147483648, %v4265_v43 }
 0x162   : > { %v1111_v33 = vsel %vm5244_vm10, 0, %v1109_v16  ;;  %v1185_v57 = vsel %vm1183_vm13, %v1184_v11, %v5234_v62  ;;  %v1245_v5 = vsub.s32 32, %v1244_v50  ;;  %v1015_v24 = vxor.u32 2147483648, %v4267_v37 }
 0x163   : > { %v1102_v23 = vand.u32 2147483647, %v1101_v49  ;;  %v1104_v52 = vcvt.s32.f32 %v1097_v60  ;;  %v1186_v35 = vadd.s32 %v1185_v57, %v1181_v40  ;;  %v1019_v54 = vsel %vm1017_vm12, %v1018_v17, %v4267_v37 }
 0x164   : > { %v5263_v59 = vshrl.u32 %v1242_v42, 5  ;;  %v1248_v61 = vshrl.u32 %v7215_v8, %v1245_v5  ;;  %v1337_v9 = vand.u32 2139095040, %v5186_v63  ;;  %v1016_v32 = vsel %vm1014_vm11, %v4265_v43, %v1015_v24 }
 0x165   : > { %v1105_v12 = vmul.f32 %v1104_v52, %v1102_v23  ;;  %v1187_v62 = vadd.s32 536870912, %v1186_v35  ;;  %v1251_v46 = vshrl.u32 %v7212_v10, %v1245_v5  ;;  %v1020_v41 = vsel %vm1013_vm8, %v1016_v32, %v1019_v54 }
 0x166   : > { %v7239_v7 = vmov 683565275   ;;  %v1250_v60 = vshll.u32 %v7215_v8, %v1244_v50  ;;  %v1253_v44 = vshll.u32 %v7212_v10, %v1244_v50  ;;  %v1021_v16 = vsel %vm1010_vm7, nan, %v1020_v41 }
 0x167   : > { %v1247_v15 = vshll.u32 %v7239_v7, %v1244_v50  ;;  %v1106_v42 = vxor.u32 2147483648, %v1105_v12  ;;  %v5277_v11 = vshrl.u32 %v1187_v62, 30  ;;  %v1254_v43 = vshrl.u32 %v7235_v1, %v1245_v5  ;;  %2067 = vst [vmem:[%s4945_s10 + $0x28] sm:$0xff] %v1021_v16 }
 0x168   : > { %v1256_v49 = vshll.u32 %v7235_v1, %v1244_v50  ;;  %v1257_v40 = vshrl.u32 %v7223_v48, %v1245_v5  ;;  %v1259_v6 = vshll.u32 %v7223_v48, %v1244_v50  ;;  %v1260_v37 = vshrl.u32 %v7224_v55, %v1245_v5 }
 0x169   : > { %v1107_v17 = vsel %vm1024_vm1, %v1106_v42, %v1105_v12  ;;  %v1189_v14 = vshll.u32 %v5277_v11, 30  ;;  %v1249_v57 = vor.u32 %v1248_v61, %v1247_v15  ;;  %v1252_v24 = vor.u32 %v1251_v46, %v1250_v60 }
 0x16a   : > { %v5290_v23 = vmul.f32 %v4624_v31, %v4616_v28  ;;  %v1110_v52 = vsel %vm5244_vm10, %v4968_v2, %v1107_v17  ;;  %v1258_v54 = vor.u32 %v1257_v40, %v1256_v49  ;;  %v1261_v50 = vor.u32 %v1260_v37, %v1259_v6 }
 0x16b   : > { %4268 = vcosq.f32 %v1110_v52  ;;  %v5295_v32 = vsub.s32 %v1186_v35, %v1189_v14  ;;  %v1255_v62 = vor.u32 %v1254_v43, %v1253_v44  ;;  %v5297_v41 = vshll.u32 %v1238_v4, 8  ;;  %v5316_v43 = vpop.permute.xlu1 %369 }
 0x16c   : > { %4270 = vsinq.f32 %v1110_v52  ;;  %v1115_v12 = vadd.s32 3, %v1111_v33  ;;  %vm1262_vm14 = vcmp.lt.s32.totalorder %v5263_v59, 1  ;;  %v1338_v61 = vshrl.u32 %v1337_v9, 23 }
 0x16d   : > { %v1192_v28 = vsub.s32 0, %v5295_v32  ;;  %v1246_v46 = vshrl.u32 %v7239_v7, %v1245_v5  ;;  %vm1265_vm15 = vcmp.lt.s32.totalorder %v5263_v59, 4  ;;  %v1270_v56 = vsel %vm1262_vm14, %v1249_v57, %v1252_v24 }
 0x16e   : > { %vm1263_vm0 = vcmp.lt.s32.totalorder %v5263_v59, 2  ;;  %vm1264_vm1 = vcmp.lt.s32.totalorder %v5263_v59, 3  ;;  %v1271_v4 = vsel %vm1265_vm15, %v1258_v54, 920167782  ;;  %v1275_v35 = vsel %vm1265_vm15, %v1261_v50, 1326507024 }
 0x16f   : > { %v3945_v33 = vmin.u32 %v1192_v28, %v5295_v32  ;;  %v1267_v15 = vsel %vm1265_vm15, %v1255_v62, 2102212464  ;;  %v1272_v9 = vsel %vm1264_vm1, %v1255_v62, %v1271_v4  ;;  %v1274_v5 = vsel %vm1262_vm14, %v1252_v24, %v1255_v62 }
 0x170   : > { %v1116_v60 = vand.u32 3, %v1115_v12  ;;  %v1273_v44 = vsel %vm1263_vm0, %v1270_v56, %v1272_v9  ;;  %v1276_v16 = vsel %vm1264_vm1, %v1258_v54, %v1275_v35  ;;  %v3952_v42 = vadd.s32 4294967169, %v1338_v61 }
 0x171   : > { %v1194_v49 = vclz %v3945_v33  ;;  %v1212_v40 = vsub.s32 4, %v5277_v11  ;;  %v1266_v6 = vsel %vm1262_vm14, %v1246_v46, %v1249_v57  ;;  %v7211_v37 = vand.u32 2147483647, %v5186_v63 }
 0x172   : > { %v1268_v17 = vsel %vm1264_vm1, %v1252_v24, %v1267_v15  ;;  %v1277_v14 = vsel %vm1263_vm0, %v1274_v5, %v1276_v16  ;;  %v5327_v52 = vmul.u32.u64.low %v5297_v41, %v1273_v44  ;;  %v5328_v54 = vmul.u32.u64.high %v5297_v41, %v1273_v44, %v5327_v52 }
 0x173   : > { %v3946_v50 = vadd.s32 4294967294, %v1194_v49  ;;  %v5332_v62 = vmul.u32.u64.low %v5297_v41, %v1277_v14  ;;  %v5333_v12 = vmul.u32.u64.high %v5297_v41, %v1277_v14, %v5332_v62  ;;  %v1344_v61 = vadd.s32 1, %v3952_v42 }
 0x174   : > { %v5337_v57 = vadd.f32 %v5316_v43, %v4954_v39  ;;  %vm1117_vm2 = vcmp.lt.s32.totalorder %v1116_v60, 2  ;;  %v7240_v24 = vand.u32 2147483647, %v5079_v13  ;;  %vm1128_vm4 = vcmp.lt.s32.totalorder %v5079_v13, 0 }
 0x175   : > { %vm1114_vm5 = vweird.f32 %v4968_v2  ;;  %vm1118_vm6 = vcmp.eq.s32.totalorder %v1116_v60, 0  ;;  %vm3947_vm7 = vcmp.lt.s32.totalorder %v3946_v50, 0  ;;  %v1269_v46 = vsel %vm1263_vm0, %v1266_v6, %v1268_v17 }
 0x176   : > { %vm5341_vm3 = vcmp.le.f32.partialorder %v7240_v24, 0.7853982  ;;  %vm1345_vm8 = vcmp.gt.s32.totalorder %v1344_v61, 0  ;;  %v1197_v56 = vsel %vm3947_vm7, 0, %v3946_v50  ;;  %v1288_v39 = vadd.s32 1, %v5328_v54 }
 0x177   : > { %v1341_v4 = vand.u32 8388607, %v7211_v37  ;;  %v1346_v35 = vsel %vm1345_vm8, %v1344_v61, 0  ;;  %v1182_v33 = vadd.s32 %v5233_v45, %v5238_v0  ;;  %v1198_v15 = vsub.s32 32, %v1197_v56 }
 0x178   : > { %v1202_v9 = vsub.s32 4294967266, %v1197_v56  ;;  %v1213_v5 = vsel %vm1128_vm4, %v1212_v40, %v5277_v11  ;;  %v4269_v44 = vpop.eup %4268  ;;  %v1199_v59 = vshll.u32 %v5295_v32, %v1197_v56  ;;  %v1285_v16 = vmul.u32 %v5297_v41, %v1269_v46 }
 0x179   : > { %vm1287_vm10 = vc.u32 %v5333_v12, %v5327_v52  ;;  %v1348_v42 = vand.u32 31, %v1346_v35  ;;  %v4271_v49 = vpop.eup %4270  ;;  %v1122_v6 = vxor.u32 2147483648, %v4269_v44  ;;  %v1200_v17 = vshrl.u32 %v1182_v33, %v1198_v15 }
 0x17a   : > { %v1203_v14 = vadd.s32 127, %v1202_v9  ;;  %v1289_v45 = vsel %vm1287_vm10, %v1288_v39, %v5328_v54  ;;  %v1119_v0 = vxor.u32 2147483648, %v4271_v49  ;;  %vm1121_vm9 = vcmp.eq.s32.totalorder %v1116_v60, 2 }
 0x17b   : > { %v1290_v50 = vadd.s32 %v1289_v45, %v1285_v16  ;;  %v1349_v62 = vsub.s32 32, %v1348_v42  ;;  %v1123_v11 = vsel %vm1121_vm9, %v1122_v6, %v4271_v49  ;;  %v1201_v40 = vor.u32 %v1200_v17, %v1199_v59 }
 0x17c   : > { %v1204_v61 = vshll.u32 %v1203_v14, 23  ;;  %v1215_v32 = vsel %vm5341_vm3, 0, %v1213_v5  ;;  %v1120_v41 = vsel %vm1118_vm6, %v4269_v44, %v1119_v0  ;;  %v1342_v46 = vor.u32 8388608, %v1341_v4 }
 0x17d   : > { %v1291_v24 = vadd.s32 536870912, %v1290_v50  ;;  %v1441_v56 = vand.u32 2139095040, %v5337_v57  ;;  %v1124_v33 = vsel %vm1117_vm2, %v1120_v41, %v1123_v11  ;;  %v1347_v39 = vshrl.u32 %v1346_v35, 5 }
 0x17e   : > { %v1205_v54 = vor.u32 4788187, %v1204_v61  ;;  %v1352_v15 = vshrl.u32 %v7215_v8, %v1349_v62  ;;  %v1125_v9 = vsel %vm1114_vm5, nan, %v1124_v33  ;;  %v1351_v16 = vshll.u32 %v7239_v7, %v1348_v42 }
 0x17f   : > { %v1292_v59 = vshrl.u32 %v1291_v24, 30  ;;  %v1355_v5 = vshrl.u32 %v7212_v10, %v1349_v62  ;;  %v1208_v49 = vcvt.s32.f32 %v1201_v40  ;;  %v1354_v4 = vshll.u32 %v7215_v8, %v1348_v42  ;;  %2068 = vst [vmem:[%s4945_s10 + $0x30] sm:$0xff] %v1125_v9 }
 0x180   : > { %v1206_v44 = vand.u32 2147483647, %v1205_v54  ;;  %v1358_v6 = vshrl.u32 %v7235_v1, %v1349_v62  ;;  %v1357_v35 = vshll.u32 %v7212_v10, %v1348_v42  ;;  %v1360_v17 = vshll.u32 %v7235_v1, %v1348_v42 }
 0x181   : > { %v1293_v60 = vshll.u32 %v1292_v59, 30  ;;  %v1361_v2 = vshrl.u32 %v7223_v48, %v1349_v62  ;;  %v5380_v14 = vadd.f32 %v5316_v43, %v5042_v3  ;;  %v1353_v0 = vor.u32 %v1352_v15, %v1351_v16 }
 0x182   : > { %v1209_v45 = vmul.f32 %v1208_v49, %v1206_v44  ;;  %v1364_v11 = vshrl.u32 %v7224_v55, %v1349_v62  ;;  %vm1232_vm11 = vcmp.lt.s32.totalorder %v5146_v27, 0  ;;  %v1356_v61 = vor.u32 %v1355_v5, %v1354_v4 }
 0x183   : > { %v5384_v40 = vsub.s32 %v1290_v50, %v1293_v60  ;;  %v1359_v41 = vor.u32 %v1358_v6, %v1357_v35  ;;  %v1362_v24 = vor.u32 %v1361_v2, %v1360_v17  ;;  %v1219_v54 = vadd.s32 3, %v1215_v32 }
 0x184   : > { %v1210_v33 = vxor.u32 2147483648, %v1209_v45  ;;  %v1363_v9 = vshll.u32 %v7223_v48, %v1348_v42  ;;  %v1382_v37 = vshll.u32 %v1342_v46, 8  ;;  %vm1366_vm12 = vcmp.lt.s32.totalorder %v1347_v39, 1 }
 0x185   : > { %v1296_v10 = vsub.s32 0, %v5384_v40  ;;  %vm1369_vm13 = vcmp.lt.s32.totalorder %v1347_v39, 4  ;;  %v1442_v3 = vshrl.u32 %v1441_v56, 23  ;;  %vm1368_vm14 = vcmp.lt.s32.totalorder %v1347_v39, 3 }
 0x186   : > { %v1211_v15 = vsel %vm1128_vm4, %v1210_v33, %v1209_v45  ;;  %v1365_v16 = vor.u32 %v1364_v11, %v1363_v9  ;;  %v1375_v50 = vsel %vm1369_vm13, %v1362_v24, 920167782  ;;  %v1371_v42 = vsel %vm1369_vm13, %v1359_v41, 2102212464 }
 0x187   : > { %v1214_v5 = vsel %vm5341_vm3, %v5079_v13, %v1211_v15  ;;  %v3949_v32 = vmin.u32 %v1296_v10, %v5384_v40  ;;  %v1374_v46 = vsel %vm1366_vm12, %v1353_v0, %v1356_v61  ;;  %v1316_v44 = vsub.s32 4, %v1292_v59 }
 0x188   : > { %4272 = vcosq.f32 %v1214_v5  ;;  %v1350_v56 = vshrl.u32 %v7239_v7, %v1349_v62  ;;  %v1376_v49 = vsel %vm1368_vm14, %v1359_v41, %v1375_v50  ;;  %vm1367_vm15 = vcmp.lt.s32.totalorder %v1347_v39, 2 }
 0x189   : > { %4274 = vsinq.f32 %v1214_v5  ;;  %v1298_v4 = vclz %v3949_v32  ;;  %v1378_v6 = vsel %vm1366_vm12, %v1356_v61, %v1359_v41  ;;  %v1372_v60 = vsel %vm1368_vm14, %v1356_v61, %v1371_v42  ;;  %v5422_v5 = vpop.permute.xlu0 %374 }
 0x18a   : > { %v1370_v28 = vsel %vm1366_vm12, %v1350_v56, %v1353_v0  ;;  %v1377_v10 = vsel %vm1367_vm15, %v1374_v46, %v1376_v49  ;;  %v1379_v35 = vsel %vm1369_vm13, %v1365_v16, 1326507024  ;;  %v1317_v62 = vsel %vm1232_vm11, %v1316_v44, %v1292_v59 }
 0x18b   : > { %v3950_v17 = vadd.s32 4294967294, %v1298_v4  ;;  %v1380_v2 = vsel %vm1368_vm14, %v1362_v24, %v1379_v35  ;;  %v5404_v45 = vmul.u32.u64.low %v1382_v37, %v1377_v10  ;;  %v5405_v11 = vmul.u32.u64.high %v1382_v37, %v1377_v10, %v5404_v45 }
 0x18c   : > { %v1381_v33 = vsel %vm1367_vm15, %v1378_v6, %v1380_v2  ;;  %v1438_v41 = vand.u32 2147483647, %v5337_v57  ;;  %v3956_v9 = vadd.s32 4294967169, %v1442_v3  ;;  %v1373_v0 = vsel %vm1367_vm15, %v1370_v28, %v1372_v60 }
 0x18d   : > { %vm3951_vm0 = vcmp.lt.s32.totalorder %v3950_v17, 0  ;;  %v5411_v61 = vmul.u32.u64.low %v1382_v37, %v1381_v33  ;;  %v5412_v15 = vmul.u32.u64.high %v1382_v37, %v1381_v33, %v5411_v61  ;;  %v7243_v16 = vand.u32 2147483647, %v5146_v27 }
 0x18e   : > { %v1286_v24 = vadd.s32 %v5327_v52, %v5333_v12  ;;  %v1301_v50 = vsel %vm3951_vm0, 0, %v3950_v17  ;;  %v1448_v59 = vadd.s32 1, %v3956_v9  ;;  %v1392_v46 = vadd.s32 1, %v5405_v11 }
 0x18f   : > { %vm5416_vm1 = vcmp.le.f32.partialorder %v7243_v16, 0.7853982  ;;  %v1302_v32 = vsub.s32 32, %v1301_v50  ;;  %v1306_v3 = vsub.s32 4294967266, %v1301_v50  ;;  %v1220_v44 = vand.u32 3, %v1219_v54 }
 0x190   : > { %v1319_v42 = vsel %vm5416_vm1, 0, %v1317_v62  ;;  %v1389_v56 = vmul.u32 %v1382_v37, %v1373_v0  ;;  %v1445_v49 = vand.u32 8388607, %v1438_v41  ;;  %vm1449_vm2 = vcmp.gt.s32.totalorder %v1448_v59, 0 }
 0x191   : > { %v1303_v4 = vshll.u32 %v5384_v40, %v1301_v50  ;;  %v1304_v52 = vshrl.u32 %v1286_v24, %v1302_v32  ;;  %v1307_v12 = vadd.s32 127, %v1306_v3  ;;  %vm1391_vm3 = vc.u32 %v5412_v15, %v5404_v45 }
 0x192   : > { %v5434_v6 = vadd.f32 %v5422_v5, %v5070_v51  ;;  %v1323_v28 = vadd.s32 3, %v1319_v42  ;;  %v1393_v60 = vsel %vm1391_vm3, %v1392_v46, %v5405_v11  ;;  %v1450_v54 = vsel %vm1449_vm2, %v1448_v59, 0 }
 0x193   : > { %vm1218_vm4 = vweird.f32 %v5079_v13  ;;  %v1305_v37 = vor.u32 %v1304_v52, %v1303_v4  ;;  %v1308_v10 = vshll.u32 %v1307_v12, 23  ;;  %v1394_v35 = vadd.s32 %v1393_v60, %v1389_v56 }
 0x194   : > { %vm1221_vm5 = vcmp.lt.s32.totalorder %v1220_v44, 2  ;;  %v1446_v40 = vor.u32 8388608, %v1445_v49  ;;  %v1452_v17 = vand.u32 31, %v1450_v54  ;;  %v1545_v2 = vand.u32 2139095040, %v5380_v14 }
 0x195   : > { %v4273_v62 = vpop.eup %4272  ;;  %vm1222_vm6 = vcmp.eq.s32.totalorder %v1220_v44, 0  ;;  %vm1225_vm7 = vcmp.eq.s32.totalorder %v1220_v44, 2  ;;  %v1309_v33 = vor.u32 4788187, %v1308_v10  ;;  %v1395_v51 = vadd.s32 536870912, %v1394_v35 }
 0x196   : > { %v4275_v9 = vpop.eup %4274  ;;  %v1226_v0 = vxor.u32 2147483648, %v4273_v62  ;;  %v5439_v61 = vand.u32 3, %v1323_v28  ;;  %v1453_v11 = vsub.s32 32, %v1452_v17  ;;  %v1542_v16 = vand.u32 2147483647, %v5380_v14 }
 0x197   : > { %v1223_v24 = vxor.u32 2147483648, %v4275_v9  ;;  %v1310_v50 = vand.u32 2147483647, %v1309_v33  ;;  %v1312_v59 = vcvt.s32.f32 %v1305_v37  ;;  %v5442_v32 = vshrl.u32 %v1395_v51, 30 }
 0x198   : > { %v1227_v3 = vsel %vm1225_vm7, %v1226_v0, %v4275_v9  ;;  %v1456_v42 = vshrl.u32 %v7215_v8, %v1453_v11  ;;  %v5445_v46 = vshll.u32 %v1446_v40, 8  ;;  %v1546_v56 = vshrl.u32 %v1545_v2, 23 }
 0x199   : > { %v1224_v49 = vsel %vm1222_vm6, %v4273_v62, %v1223_v24  ;;  %v1313_v4 = vmul.f32 %v1312_v59, %v1310_v50  ;;  %v1397_v52 = vshll.u32 %v5442_v32, 30  ;;  %v7246_v12 = vmov 2131351028  }
 0x19a   : > { %v1459_v28 = vshrl.u32 %v7246_v12, %v1453_v11  ;;  %v1228_v60 = vsel %vm1221_vm5, %v1224_v49, %v1227_v3  ;;  %v1455_v37 = vshll.u32 %v7239_v7, %v1452_v17  ;;  %v1458_v10 = vshll.u32 %v7215_v8, %v1452_v17 }
 0x19b   : > { %v1462_v33 = vshrl.u32 %v7235_v1, %v1453_v11  ;;  %v1229_v40 = vsel %vm1218_vm4, nan, %v1228_v60  ;;  %v1314_v2 = vxor.u32 2147483648, %v1313_v4  ;;  %v5456_v51 = vsub.s32 %v1394_v35, %v1397_v52 }
 0x19c   : > { %v1461_v62 = vshll.u32 %v7246_v12, %v1452_v17  ;;  %v1451_v9 = vshrl.u32 %v1450_v54, 5  ;;  %v1457_v0 = vor.u32 %v1456_v42, %v1455_v37  ;;  %v1464_v24 = vshll.u32 %v7235_v1, %v1452_v17  ;;  %2069 = vst [vmem:[%s4945_s10 + $0x38] sm:$0xff] %v1229_v40 }
 0x19d   : > { %v1465_v44 = vshrl.u32 %v7223_v48, %v1453_v11  ;;  %v1315_v50 = vsel %vm1232_vm11, %v1314_v2, %v1313_v4  ;;  %v1400_v59 = vsub.s32 0, %v5456_v51  ;;  %v1460_v3 = vor.u32 %v1459_v28, %v1458_v10 }
 0x19e   : > { %v1463_v13 = vor.u32 %v1462_v33, %v1461_v62  ;;  %v1318_v35 = vsel %vm5416_vm1, %v5146_v27, %v1315_v50  ;;  %v1467_v54 = vshll.u32 %v7223_v48, %v1452_v17  ;;  %v1468_v42 = vshrl.u32 %v7224_v55, %v1453_v11 }
 0x19f   : > { %v1466_v49 = vor.u32 %v1465_v44, %v1464_v24  ;;  %4276 = vcosq.f32 %v1318_v35  ;;  %v3953_v52 = vmin.u32 %v1400_v59, %v5456_v51  ;;  %v3960_v60 = vadd.s32 4294967169, %v1546_v56 }
 0x1a0   : > { %v1549_v4 = vand.u32 8388607, %v1542_v16  ;;  %4278 = vsinq.f32 %v1318_v35  ;;  %v1454_v28 = vshrl.u32 %v7239_v7, %v1453_v11  ;;  %v1469_v37 = vor.u32 %v1468_v42, %v1467_v54 }
 0x1a1   : > { %vm1470_vm8 = vcmp.lt.s32.totalorder %v1451_v9, 1  ;;  %v1402_v10 = vclz %v3953_v52  ;;  %vm1471_vm10 = vcmp.lt.s32.totalorder %v1451_v9, 2  ;;  %vm1472_vm9 = vcmp.lt.s32.totalorder %v1451_v9, 3 }
 0x1a2   : > { %vm1473_vm11 = vcmp.lt.s32.totalorder %v1451_v9, 4  ;;  %v1478_v17 = vsel %vm1470_vm8, %v1457_v0, %v1460_v3  ;;  %v1482_v40 = vsel %vm1470_vm8, %v1460_v3, %v1463_v13  ;;  %v1474_v62 = vsel %vm1470_vm8, %v1454_v28, %v1457_v0 }
 0x1a3   : > { %v1475_v39 = vsel %vm1473_vm11, %v1463_v13, 2102212464  ;;  %v1479_v33 = vsel %vm1473_vm11, %v1466_v49, 920167782  ;;  %v3954_v2 = vadd.s32 4294967294, %v1402_v10  ;;  %v1552_v35 = vadd.s32 1, %v3960_v60 }
 0x1a4   : > { %v1480_v24 = vsel %vm1472_vm9, %v1463_v13, %v1479_v33  ;;  %v1483_v56 = vsel %vm1473_vm11, %v1469_v37, 1326507024  ;;  %v1476_v44 = vsel %vm1472_vm9, %v1460_v3, %v1475_v39  ;;  %v1390_v52 = vadd.s32 %v5404_v45, %v5412_v15 }
 0x1a5   : > { %v1481_v50 = vsel %vm1471_vm10, %v1478_v17, %v1480_v24  ;;  %v1484_v59 = vsel %vm1472_vm9, %v1466_v49, %v1483_v56  ;;  %vm3955_vm12 = vcmp.lt.s32.totalorder %v3954_v2, 0  ;;  %v1477_v49 = vsel %vm1471_vm10, %v1474_v62, %v1476_v44 }
 0x1a6   : > { %v1485_v11 = vsel %vm1471_vm10, %v1482_v40, %v1484_v59  ;;  %v5477_v54 = vmul.u32.u64.low %v5445_v46, %v1481_v50  ;;  %v5478_v42 = vmul.u32.u64.high %v5445_v46, %v1481_v50, %v5477_v54  ;;  %v1405_v10 = vsel %vm3955_vm12, 0, %v3954_v2 }
 0x1a7   : > { %v5484_v0 = vmul.u32.u64.low %v5445_v46, %v1485_v11  ;;  %v5485_v13 = vmul.u32.u64.high %v5445_v46, %v1485_v11, %v5484_v0  ;;  %v1406_v3 = vsub.s32 32, %v1405_v10  ;;  %v1410_v28 = vsub.s32 4294967266, %v1405_v10 }
 0x1a8   : > { %vm1553_vm13 = vcmp.gt.s32.totalorder %v1552_v35, 0  ;;  %v5490_v60 = vadd.f32 %v5422_v5, %v5074_v36  ;;  %v1420_v37 = vsub.s32 4, %v5442_v32  ;;  %v1550_v39 = vor.u32 8388608, %v1549_v4 }
 0x1a9   : > { %v1554_v17 = vsel %vm1553_vm13, %v1552_v35, 0  ;;  %vm1322_vm14 = vweird.f32 %v5146_v27  ;;  %v1407_v45 = vshll.u32 %v5456_v51, %v1405_v10  ;;  %v1408_v15 = vshrl.u32 %v1390_v52, %v1406_v3 }
 0x1aa   : > { %v1411_v33 = vadd.s32 127, %v1410_v28  ;;  %v1496_v40 = vadd.s32 1, %v5478_v42  ;;  %vm1336_vm15 = vcmp.lt.s32.totalorder %v5186_v63, 0  ;;  %v1493_v9 = vmul.u32 %v5445_v46, %v1477_v49 }
 0x1ab   : > { %vm1495_vm0 = vc.u32 %v5485_v13, %v5477_v54  ;;  %v1556_v36 = vand.u32 31, %v1554_v17  ;;  %vm1325_vm1 = vcmp.lt.s32.totalorder %v5439_v61, 2  ;;  %v1409_v4 = vor.u32 %v1408_v15, %v1407_v45 }
 0x1ac   : > { %v1412_v2 = vshll.u32 %v1411_v33, 23  ;;  %v1497_v62 = vsel %vm1495_vm0, %v1496_v40, %v5478_v42  ;;  %v4277_v24 = vpop.eup %4276  ;;  %vm1326_vm2 = vcmp.eq.s32.totalorder %v5439_v61, 0  ;;  %vm1329_vm3 = vcmp.eq.s32.totalorder %v5439_v61, 2 }
 0x1ad   : > { %v7247_v51 = vand.u32 2147483647, %v5186_v63  ;;  %v1498_v46 = vadd.s32 %v1497_v62, %v1493_v9  ;;  %v1557_v44 = vsub.s32 32, %v1556_v36  ;;  %v4279_v50 = vpop.eup %4278  ;;  %v1330_v59 = vxor.u32 2147483648, %v4277_v24 }
 0x1ae   : > { %v1413_v35 = vor.u32 4788187, %v1412_v2  ;;  %v1421_v11 = vsel %vm1336_vm15, %v1420_v37, %v5442_v32  ;;  %v5513_v42 = vshll.u32 %v1550_v39, 8  ;;  %v1327_v52 = vxor.u32 2147483648, %v4279_v50 }
 0x1af   : > { %vm5506_vm4 = vcmp.le.f32.partialorder %v7247_v51, 0.7853982  ;;  %v1499_v10 = vadd.s32 536870912, %v1498_v46  ;;  %v5515_v0 = vshrl.u32 %v1554_v17, 5  ;;  %v1559_v3 = vshll.u32 %v7239_v7, %v1556_v36 }
 0x1b0   : > { %v1331_v28 = vsel %vm1329_vm3, %v1330_v59, %v4279_v50  ;;  %v1414_v49 = vand.u32 2147483647, %v1413_v35  ;;  %v1416_v45 = vcvt.s32.f32 %v1409_v4  ;;  %v1560_v15 = vshrl.u32 %v7215_v8, %v1557_v44 }
 0x1b1   : > { %v1328_v33 = vsel %vm1326_vm2, %v4277_v24, %v1327_v52  ;;  %v5521_v40 = vshrl.u32 %v1499_v10, 30  ;;  %v1563_v32 = vshrl.u32 %v7246_v12, %v1557_v44  ;;  %v1566_v37 = vshrl.u32 %v7235_v1, %v1557_v44 }
 0x1b2   : > { %v1332_v39 = vsel %vm1325_vm1, %v1328_v33, %v1331_v28  ;;  %v1417_v17 = vmul.f32 %v1416_v45, %v1414_v49  ;;  %v1562_v9 = vshll.u32 %v7215_v8, %v1556_v36  ;;  %v1565_v4 = vshll.u32 %v7246_v12, %v1556_v36 }
 0x1b3   : > { %v1333_v2 = vsel %vm1322_vm14, nan, %v1332_v39  ;;  %v1501_v62 = vshll.u32 %v5521_v40, 30  ;;  %v1568_v24 = vshll.u32 %v7235_v1, %v1556_v36  ;;  %v1569_v51 = vshrl.u32 %v7223_v48, %v1557_v44 }
 0x1b4   : > { %v1418_v50 = vxor.u32 2147483648, %v1417_v17  ;;  %v1561_v59 = vor.u32 %v1560_v15, %v1559_v3  ;;  %v1571_v35 = vshll.u32 %v7223_v48, %v1556_v36  ;;  %v1572_v61 = vshrl.u32 %v7224_v55, %v1557_v44  ;;  %2070 = vst [vmem:[%s4945_s10 + $0x40] sm:$0xff] %v1333_v2  ;;  %v5559_v2 = vpop.permute.xlu1 %379 }
 0x1b5   : > { %v5537_v52 = vsub.s32 %v1498_v46, %v1501_v62  ;;  %v1564_v10 = vor.u32 %v1563_v32, %v1562_v9  ;;  %v1567_v28 = vor.u32 %v1566_v37, %v1565_v4  ;;  %v1570_v49 = vor.u32 %v1569_v51, %v1568_v24 }
 0x1b6   : > { %v1419_v27 = vsel %vm1336_vm15, %v1418_v50, %v1417_v17  ;;  %v1423_v45 = vsel %vm5506_vm4, 0, %v1421_v11  ;;  %v1573_v33 = vor.u32 %v1572_v61, %v1571_v35  ;;  %v1649_v39 = vand.u32 2139095040, %v5434_v6 }
 0x1b7   : > { %v1422_v36 = vsel %vm5506_vm4, %v5186_v63, %v1419_v27  ;;  %v1504_v3 = vsub.s32 0, %v5537_v52  ;;  %vm1574_vm5 = vcmp.lt.s32.totalorder %v5515_v0, 1  ;;  %vm1577_vm6 = vcmp.lt.s32.totalorder %v5515_v0, 4 }
 0x1b8   : > { %4280 = vcosq.f32 %v1422_v36  ;;  %v1558_v46 = vshrl.u32 %v7239_v7, %v1557_v44  ;;  %vm1576_vm7 = vcmp.lt.s32.totalorder %v5515_v0, 3  ;;  %v1583_v15 = vsel %vm1577_vm6, %v1570_v49, 920167782 }
 0x1b9   : > { %4282 = vsinq.f32 %v1422_v36  ;;  %v3957_v11 = vmin.u32 %v1504_v3, %v5537_v52  ;;  %v1579_v32 = vsel %vm1577_vm6, %v1567_v28, 2102212464  ;;  %v1582_v56 = vsel %vm1574_vm5, %v1561_v59, %v1564_v10 }
 0x1ba   : > { %v1427_v37 = vadd.s32 3, %v1423_v45  ;;  %v1584_v17 = vsel %vm1576_vm7, %v1567_v28, %v1583_v15  ;;  %v1586_v9 = vsel %vm1574_vm5, %v1564_v10, %v1567_v28  ;;  %v1587_v4 = vsel %vm1577_vm6, %v1573_v33, 1326507024 }
 0x1bb   : > { %v1506_v44 = vclz %v3957_v11  ;;  %v1524_v62 = vsub.s32 4, %v5521_v40  ;;  %vm1575_vm8 = vcmp.lt.s32.totalorder %v5515_v0, 2  ;;  %v1578_v24 = vsel %vm1574_vm5, %v1558_v46, %v1561_v59 }
 0x1bc   : > { %v1580_v51 = vsel %vm1576_vm7, %v1564_v10, %v1579_v32  ;;  %v1585_v50 = vsel %vm1575_vm8, %v1582_v56, %v1584_v17  ;;  %v1588_v35 = vsel %vm1576_vm7, %v1570_v49, %v1587_v4  ;;  %v1650_v61 = vshrl.u32 %v1649_v39, 23 }
 0x1bd   : > { %v3958_v28 = vadd.s32 4294967294, %v1506_v44  ;;  %v1589_v27 = vsel %vm1575_vm8, %v1586_v9, %v1588_v35  ;;  %v5570_v45 = vmul.u32.u64.low %v5513_v42, %v1585_v50  ;;  %v5571_v33 = vmul.u32.u64.high %v5513_v42, %v1585_v50, %v5570_v45 }
 0x1be   : > { %v5576_v36 = vadd.f32 %v5559_v2, %v5290_v23  ;;  %v5579_v59 = vmul.u32.u64.low %v5513_v42, %v1589_v27  ;;  %v5580_v3 = vmul.u32.u64.high %v5513_v42, %v1589_v27, %v5579_v59  ;;  %v3964_v10 = vadd.s32 4294967169, %v1650_v61 }
 0x1bf   : > { %v1428_v46 = vand.u32 3, %v1427_v37  ;;  %vm1440_vm10 = vcmp.lt.s32.totalorder %v5337_v57, 0  ;;  %vm3959_vm9 = vcmp.lt.s32.totalorder %v3958_v28, 0  ;;  %v1581_v0 = vsel %vm1575_vm8, %v1578_v24, %v1580_v51 }
 0x1c0   : > { %v1494_v49 = vadd.s32 %v5477_v54, %v5485_v13  ;;  %v1509_v39 = vsel %vm3959_vm9, 0, %v3958_v28  ;;  %v1646_v15 = vand.u32 2147483647, %v5434_v6  ;;  %v1656_v11 = vadd.s32 1, %v3964_v10 }
 0x1c1   : > { %v1510_v32 = vsub.s32 32, %v1509_v39  ;;  %v1514_v23 = vsub.s32 4294967266, %v1509_v39  ;;  %v1525_v56 = vsel %vm1440_vm10, %v1524_v62, %v5521_v40  ;;  %v1600_v17 = vadd.s32 1, %v5571_v33 }
 0x1c2   : > { %v1511_v37 = vshll.u32 %v5537_v52, %v1509_v39  ;;  %v1597_v9 = vmul.u32 %v5513_v42, %v1581_v0  ;;  %vm1599_vm11 = vc.u32 %v5580_v3, %v5570_v45  ;;  %vm1657_vm12 = vcmp.gt.s32.totalorder %v1656_v11, 0 }
 0x1c3   : > { %v1512_v54 = vshrl.u32 %v1494_v49, %v1510_v32  ;;  %v1515_v13 = vadd.s32 127, %v1514_v23  ;;  %v1601_v4 = vsel %vm1599_vm11, %v1600_v17, %v5571_v33  ;;  %v1658_v44 = vsel %vm1657_vm12, %v1656_v11, 0 }
 0x1c4   : > { %vm5597_vm13 = vcmp.le.f32.partialorder %v1438_v41, 0.7853982  ;;  %v1602_v40 = vadd.s32 %v1601_v4, %v1597_v9  ;;  %v1653_v52 = vand.u32 8388607, %v1646_v15  ;;  %v1660_v42 = vand.u32 31, %v1658_v44 }
 0x1c5   : > { %v4281_v62 = vpop.eup %4280  ;;  %vm1426_vm14 = vweird.f32 %v5186_v63  ;;  %v1513_v51 = vor.u32 %v1512_v54, %v1511_v37  ;;  %v1516_v50 = vshll.u32 %v1515_v13, 23  ;;  %v1527_v35 = vsel %vm5597_vm13, 0, %v1525_v56 }
 0x1c6   : > { %v4283_v61 = vpop.eup %4282  ;;  %vm1429_vm15 = vcmp.lt.s32.totalorder %v1428_v46, 2  ;;  %v1434_v28 = vxor.u32 2147483648, %v4281_v62  ;;  %v1603_v41 = vadd.s32 536870912, %v1602_v40  ;;  %v1661_v27 = vsub.s32 32, %v1660_v42 }
 0x1c7   : > { %vm1430_vm0 = vcmp.eq.s32.totalorder %v1428_v46, 0  ;;  %v1431_v33 = vxor.u32 2147483648, %v4283_v61  ;;  %vm1433_vm1 = vcmp.eq.s32.totalorder %v1428_v46, 2  ;;  %v1517_v59 = vor.u32 4788187, %v1516_v50 }
 0x1c8   : > { %v1435_v10 = vsel %vm1433_vm1, %v1434_v28, %v4283_v61  ;;  %v5606_v0 = vadd.s32 3, %v1527_v35  ;;  %v5608_v49 = vshrl.u32 %v1603_v41, 30  ;;  %v1654_v39 = vor.u32 8388608, %v1653_v52 }
 0x1c9   : > { %v1432_v11 = vsel %vm1430_vm0, %v4281_v62, %v1431_v33  ;;  %v1518_v32 = vand.u32 2147483647, %v1517_v59  ;;  %v1520_v23 = vcvt.s32.f32 %v1513_v51  ;;  %v1664_v56 = vshrl.u32 %v7215_v8, %v1661_v27 }
 0x1ca   : > { %v1436_v17 = vsel %vm1429_vm15, %v1432_v11, %v1435_v10  ;;  %v1605_v37 = vshll.u32 %v5608_v49, 30  ;;  %v1667_v9 = vshrl.u32 %v7246_v12, %v1661_v27  ;;  %v1753_v54 = vand.u32 2139095040, %v5490_v60 }
 0x1cb   : > { %v1437_v13 = vsel %vm1426_vm14, nan, %v1436_v17  ;;  %v1521_v4 = vmul.f32 %v1520_v23, %v1518_v32  ;;  %v1663_v52 = vshll.u32 %v7239_v7, %v1660_v42  ;;  %v1670_v62 = vshrl.u32 %v7235_v1, %v1661_v27 }
 0x1cc   : > { %v5619_v50 = vsub.s32 %v1602_v40, %v1605_v37  ;;  %v1659_v51 = vshrl.u32 %v1658_v44, 5  ;;  %v1666_v46 = vshll.u32 %v7215_v8, %v1660_v42  ;;  %v1673_v35 = vshrl.u32 %v7223_v48, %v1661_v27  ;;  %2071 = vst [vmem:[%s4945_s10 + $0x48] sm:$0xff] %v1437_v13 }
 0x1cd   : > { %v1522_v61 = vxor.u32 2147483648, %v1521_v4  ;;  %v1665_v28 = vor.u32 %v1664_v56, %v1663_v52  ;;  %v1669_v41 = vshll.u32 %v7246_v12, %v1660_v42  ;;  %v1672_v63 = vshll.u32 %v7235_v1, %v1660_v42 }
 0x1ce   : > { %v1608_v33 = vsub.s32 0, %v5619_v50  ;;  %v1668_v59 = vor.u32 %v1667_v9, %v1666_v46  ;;  %v1675_v10 = vshll.u32 %v7223_v48, %v1660_v42  ;;  %v1676_v40 = vshrl.u32 %v7224_v55, %v1661_v27 }
 0x1cf   : > { %v1523_v44 = vsel %vm1440_vm10, %v1522_v61, %v1521_v4  ;;  %v1671_v11 = vor.u32 %v1670_v62, %v1669_v41  ;;  %v1674_v32 = vor.u32 %v1673_v35, %v1672_v63  ;;  %v1694_v23 = vshll.u32 %v1654_v39, 8 }
 0x1d0   : > { %v1526_v56 = vsel %vm5597_vm13, %v5337_v57, %v1523_v44  ;;  %v3961_v17 = vmin.u32 %v1608_v33, %v5619_v50  ;;  %v1677_v37 = vor.u32 %v1676_v40, %v1675_v10  ;;  %v1754_v13 = vshrl.u32 %v1753_v54, 23 }
 0x1d1   : > { %4284 = vcosq.f32 %v1526_v56  ;;  %v1662_v9 = vshrl.u32 %v7239_v7, %v1661_v27  ;;  %vm1678_vm2 = vcmp.lt.s32.totalorder %v1659_v51, 1  ;;  %vm1679_vm3 = vcmp.lt.s32.totalorder %v1659_v51, 2 }
 0x1d2   : > { %4286 = vsinq.f32 %v1526_v56  ;;  %v1610_v42 = vclz %v3961_v17  ;;  %vm1681_vm4 = vcmp.lt.s32.totalorder %v1659_v51, 4  ;;  %v1686_v4 = vsel %vm1678_vm2, %v1665_v28, %v1668_v59 }
 0x1d3   : > { %vm1680_vm5 = vcmp.lt.s32.totalorder %v1659_v51, 3  ;;  %v1683_v52 = vsel %vm1681_vm4, %v1671_v11, 2102212464  ;;  %v1687_v39 = vsel %vm1681_vm4, %v1674_v32, 920167782  ;;  %v1690_v62 = vsel %vm1678_vm2, %v1668_v59, %v1671_v11 }
 0x1d4   : > { %v3962_v46 = vadd.s32 4294967294, %v1610_v42  ;;  %v1682_v24 = vsel %vm1678_vm2, %v1662_v9, %v1665_v28  ;;  %v1688_v35 = vsel %vm1680_vm5, %v1671_v11, %v1687_v39  ;;  %v1691_v61 = vsel %vm1681_vm4, %v1677_v37, 1326507024 }
 0x1d5   : > { %v1684_v41 = vsel %vm1680_vm5, %v1668_v59, %v1683_v52  ;;  %v1689_v54 = vsel %vm1679_vm3, %v1686_v4, %v1688_v35  ;;  %v1692_v63 = vsel %vm1680_vm5, %v1674_v32, %v1691_v61  ;;  %v3968_v33 = vadd.s32 4294967169, %v1754_v13 }
 0x1d6   : > { %vm3963_vm6 = vcmp.lt.s32.totalorder %v3962_v46, 0  ;;  %v1693_v27 = vsel %vm1679_vm3, %v1690_v62, %v1692_v63  ;;  %v5638_v10 = vmul.u32.u64.low %v1694_v23, %v1689_v54  ;;  %v5639_v40 = vmul.u32.u64.high %v1694_v23, %v1689_v54, %v5638_v10 }
 0x1d7   : > { %v1613_v44 = vsel %vm3963_vm6, 0, %v3962_v46  ;;  %v1628_v56 = vsub.s32 4, %v5608_v49  ;;  %v5643_v17 = vmul.u32.u64.low %v1694_v23, %v1693_v27  ;;  %v5644_v42 = vmul.u32.u64.high %v1694_v23, %v1693_v27, %v5643_v17 }
 0x1d8   : > { %v1598_v28 = vadd.s32 %v5570_v45, %v5580_v3  ;;  %v1614_v59 = vsub.s32 32, %v1613_v44  ;;  %v1618_v11 = vsub.s32 4294967266, %v1613_v44  ;;  %v1685_v32 = vsel %vm1679_vm3, %v1682_v24, %v1684_v41 }
 0x1d9   : > { %v1532_v37 = vand.u32 3, %v5606_v0  ;;  %vm1544_vm7 = vcmp.lt.s32.totalorder %v5380_v14, 0  ;;  %v1750_v13 = vand.u32 2147483647, %v5490_v60  ;;  %v1760_v9 = vadd.s32 1, %v3968_v33 }
 0x1da   : > { %v1615_v4 = vshll.u32 %v5619_v50, %v1613_v44  ;;  %v1616_v52 = vshrl.u32 %v1598_v28, %v1614_v59  ;;  %v1619_v39 = vadd.s32 127, %v1618_v11  ;;  %v1704_v62 = vadd.s32 1, %v5639_v40 }
 0x1db   : > { %v1629_v45 = vsel %vm1544_vm7, %v1628_v56, %v5608_v49  ;;  %v1701_v3 = vmul.u32 %v1694_v23, %v1685_v32  ;;  %vm1703_vm8 = vc.u32 %v5644_v42, %v5638_v10  ;;  %vm1761_vm10 = vcmp.gt.s32.totalorder %v1760_v9, 0 }
 0x1dc   : > { %v1617_v0 = vor.u32 %v1616_v52, %v1615_v4  ;;  %v1620_v51 = vshll.u32 %v1619_v39, 23  ;;  %v1705_v46 = vsel %vm1703_vm8, %v1704_v62, %v5639_v40  ;;  %v1762_v24 = vsel %vm1761_vm10, %v1760_v9, 0 }
 0x1dd   : > { %vm1530_vm9 = vweird.f32 %v5337_v57  ;;  %vm5663_vm11 = vcmp.le.f32.partialorder %v1542_v16, 0.7853982  ;;  %v1706_v35 = vadd.s32 %v1705_v46, %v1701_v3  ;;  %v1764_v49 = vand.u32 31, %v1762_v24 }
 0x1de   : > { %v4285_v23 = vpop.eup %4284  ;;  %vm1533_vm12 = vcmp.lt.s32.totalorder %v1532_v37, 2  ;;  %v1621_v61 = vor.u32 4788187, %v1620_v51  ;;  %v1631_v41 = vsel %vm5663_vm11, 0, %v1629_v45  ;;  %v1757_v54 = vand.u32 8388607, %v1750_v13 }
 0x1df   : > { %v4287_v63 = vpop.eup %4286  ;;  %vm1534_vm13 = vcmp.eq.s32.totalorder %v1532_v37, 0  ;;  %v1538_v33 = vxor.u32 2147483648, %v4285_v23  ;;  %v1707_v27 = vadd.s32 536870912, %v1706_v35  ;;  %v1765_v40 = vsub.s32 32, %v1764_v49 }
 0x1e0   : > { %v1535_v16 = vxor.u32 2147483648, %v4287_v63  ;;  %vm1537_vm14 = vcmp.eq.s32.totalorder %v1532_v37, 2  ;;  %v1622_v44 = vand.u32 2147483647, %v1621_v61  ;;  %v1624_v56 = vcvt.s32.f32 %v1617_v0 }
 0x1e1   : > { %v1539_v17 = vsel %vm1537_vm14, %v1538_v33, %v4287_v63  ;;  %v1635_v28 = vadd.s32 3, %v1631_v41  ;;  %v5671_v59 = vshrl.u32 %v1707_v27, 30  ;;  %v1768_v11 = vshrl.u32 %v7215_v8, %v1765_v40 }
 0x1e2   : > { %v1536_v32 = vsel %vm1534_vm13, %v4285_v23, %v1535_v16  ;;  %v1625_v9 = vmul.f32 %v1624_v56, %v1622_v44  ;;  %v1758_v4 = vor.u32 8388608, %v1757_v54  ;;  %v1767_v52 = vshll.u32 %v7239_v7, %v1764_v49 }
 0x1e3   : > { %v1540_v39 = vsel %vm1533_vm12, %v1536_v32, %v1539_v17  ;;  %v1709_v62 = vshll.u32 %v5671_v59, 30  ;;  %v1771_v45 = vshrl.u32 %v7246_v12, %v1765_v40  ;;  %v1774_v3 = vshrl.u32 %v7235_v1, %v1765_v40 }
 0x1e4   : > { %v1541_v0 = vsel %vm1530_vm9, nan, %v1540_v39  ;;  %v1626_v51 = vxor.u32 2147483648, %v1625_v9  ;;  %v1763_v46 = vshrl.u32 %v1762_v24, 5  ;;  %v1770_v23 = vshll.u32 %v7215_v8, %v1764_v49 }
 0x1e5   : > { %v5682_v61 = vsub.s32 %v1706_v35, %v1709_v62  ;;  %v1769_v41 = vor.u32 %v1768_v11, %v1767_v52  ;;  %v1773_v54 = vshll.u32 %v7246_v12, %v1764_v49  ;;  %v1777_v37 = vshrl.u32 %v7223_v48, %v1765_v40  ;;  %2072 = vst [vmem:[%s4945_s10 + $0x50] sm:$0xff] %v1541_v0 }
 0x1e6   : > { %v1627_v63 = vsel %vm1544_vm7, %v1626_v51, %v1625_v9  ;;  %v1776_v33 = vshll.u32 %v7235_v1, %v1764_v49  ;;  %v1779_v57 = vshll.u32 %v7223_v48, %v1764_v49  ;;  %v1780_v27 = vshrl.u32 %v7224_v55, %v1765_v40 }
 0x1e7   : > { %v1630_v24 = vsel %vm5663_vm11, %v5380_v14, %v1627_v63  ;;  %v1712_v35 = vsub.s32 0, %v5682_v61  ;;  %v1772_v16 = vor.u32 %v1771_v45, %v1770_v23  ;;  %v1775_v44 = vor.u32 %v1774_v3, %v1773_v54 }
 0x1e8   : > { %4288 = vcosq.f32 %v1630_v24  ;;  %v1778_v56 = vor.u32 %v1777_v37, %v1776_v33  ;;  %v1781_v17 = vor.u32 %v1780_v27, %v1779_v57  ;;  %v341_v11 = vmul.f32 %v4624_v31, %v4620_v29 }
 0x1e9   : > { %4290 = vsinq.f32 %v1630_v24  ;;  %v5698_v32 = vand.u32 3, %v1635_v28  ;;  %v3965_v49 = vmin.u32 %v1712_v35, %v5682_v61  ;;  %vm1782_vm15 = vcmp.lt.s32.totalorder %v1763_v46, 1 }
 0x1ea   : > { %vm1784_vm0 = vcmp.lt.s32.totalorder %v1763_v46, 3  ;;  %v1798_v9 = vshll.u32 %v1758_v4, 8  ;;  %v1857_v50 = vand.u32 2139095040, %v5576_v36  ;;  %vm1785_vm1 = vcmp.lt.s32.totalorder %v1763_v46, 4 }
 0x1eb   : > { %v1714_v52 = vclz %v3965_v49  ;;  %v1790_v39 = vsel %vm1782_vm15, %v1769_v41, %v1772_v16  ;;  %v1794_v62 = vsel %vm1782_vm15, %v1772_v16, %v1775_v44  ;;  %v1766_v45 = vshrl.u32 %v7239_v7, %v1765_v40 }
 0x1ec   : > { %v1787_v3 = vsel %vm1785_vm1, %v1775_v44, 2102212464  ;;  %v1791_v29 = vsel %vm1785_vm1, %v1778_v56, 920167782  ;;  %v1795_v0 = vsel %vm1785_vm1, %v1781_v17, 1326507024  ;;  %vm1634_vm4 = vweird.f32 %v5380_v14 }
 0x1ed   : > { %v3966_v28 = vadd.s32 4294967294, %v1714_v52  ;;  %vm1783_vm2 = vcmp.lt.s32.totalorder %v1763_v46, 2  ;;  %v1792_v51 = vsel %vm1784_vm0, %v1775_v44, %v1791_v29  ;;  %v1796_v23 = vsel %vm1784_vm0, %v1778_v56, %v1795_v0 }
 0x1ee   : > { %v1786_v4 = vsel %vm1782_vm15, %v1766_v45, %v1769_v41  ;;  %v1793_v54 = vsel %vm1783_vm2, %v1790_v39, %v1792_v51  ;;  %v1797_v37 = vsel %vm1783_vm2, %v1794_v62, %v1796_v23  ;;  %v1858_v63 = vshrl.u32 %v1857_v50, 23 }
 0x1ef   : > { %vm3967_vm3 = vcmp.lt.s32.totalorder %v3966_v28, 0  ;;  %v1788_v33 = vsel %vm1784_vm0, %v1772_v16, %v1787_v3  ;;  %v5711_v40 = vmul.u32.u64.low %v1798_v9, %v1797_v37  ;;  %v5712_v57 = vmul.u32.u64.high %v1798_v9, %v1797_v37, %v5711_v40 }
 0x1f0   : > { %v1717_v27 = vsel %vm3967_vm3, 0, %v3966_v28  ;;  %v5714_v24 = vmul.u32.u64.low %v1798_v9, %v1793_v54  ;;  %v5715_v35 = vmul.u32.u64.high %v1798_v9, %v1793_v54, %v5714_v24  ;;  %v3972_v44 = vadd.s32 4294967169, %v1858_v63 }
 0x1f1   : > { %v5719_v56 = vadd.f32 %v5559_v2, %v341_v11  ;;  %v1702_v41 = vadd.s32 %v5638_v10, %v5644_v42  ;;  %v1718_v17 = vsub.s32 32, %v1717_v27  ;;  %v1722_v49 = vsub.s32 4294967266, %v1717_v27 }
 0x1f2   : > { %vm1637_vm5 = vcmp.lt.s32.totalorder %v5698_v32, 2  ;;  %vm1648_vm6 = vcmp.lt.s32.totalorder %v5434_v6, 0  ;;  %v1789_v16 = vsel %vm1783_vm2, %v1786_v4, %v1788_v33  ;;  %v1864_v50 = vadd.s32 1, %v3972_v44 }
 0x1f3   : > { %v1719_v52 = vshll.u32 %v5682_v61, %v1717_v27  ;;  %v1720_v39 = vshrl.u32 %v1702_v41, %v1718_v17  ;;  %v1723_v62 = vadd.s32 127, %v1722_v49  ;;  %vm1807_vm7 = vc.u32 %v5712_v57, %v5714_v24 }
 0x1f4   : > { %v1732_v10 = vsub.s32 4, %v5671_v59  ;;  %v1808_v42 = vadd.s32 1, %v5715_v35  ;;  %v1854_v11 = vand.u32 2147483647, %v5576_v36  ;;  %vm1865_vm8 = vcmp.gt.s32.totalorder %v1864_v50, 0 }
 0x1f5   : > { %v4289_v45 = vpop.eup %4288  ;;  %v1721_v3 = vor.u32 %v1720_v39, %v1719_v52  ;;  %v1724_v29 = vshll.u32 %v1723_v62, 23  ;;  %v1805_v46 = vmul.u32 %v1798_v9, %v1789_v16  ;;  %v1866_v0 = vsel %vm1865_vm8, %v1864_v50, 0 }
 0x1f6   : > { %v4291_v28 = vpop.eup %4290  ;;  %vm1638_vm10 = vcmp.eq.s32.totalorder %v5698_v32, 0  ;;  %v1642_v61 = vxor.u32 2147483648, %v4289_v45  ;;  %v1809_v51 = vsel %vm1807_vm7, %v1808_v42, %v5715_v35  ;;  %v1868_v23 = vand.u32 31, %v1866_v0 }
 0x1f7   : > { %v1639_v4 = vxor.u32 2147483648, %v4291_v28  ;;  %vm1641_vm9 = vcmp.eq.s32.totalorder %v5698_v32, 2  ;;  %vm5738_vm11 = vcmp.le.f32.partialorder %v1646_v15, 0.7853982  ;;  %v1725_v37 = vor.u32 4788187, %v1724_v29 }
 0x1f8   : > { %v1810_v63 = vadd.s32 %v1809_v51, %v1805_v46  ;;  %v1643_v9 = vsel %vm1641_vm9, %v1642_v61, %v4291_v28  ;;  %v1733_v33 = vsel %vm1648_vm6, %v1732_v10, %v5671_v59  ;;  %v1861_v40 = vand.u32 8388607, %v1854_v11 }
 0x1f9   : > { %v1869_v27 = vsub.s32 32, %v1868_v23  ;;  %v1640_v35 = vsel %vm1638_vm10, %v4289_v45, %v1639_v4  ;;  %v1726_v44 = vand.u32 2147483647, %v1725_v37  ;;  %v1728_v41 = vcvt.s32.f32 %v1721_v3 }
 0x1fa   : > { %v1811_v17 = vadd.s32 536870912, %v1810_v63  ;;  %v1644_v15 = vsel %vm1637_vm5, %v1640_v35, %v1643_v9  ;;  %v1961_v50 = vand.u32 2139095040, %v5719_v56  ;;  %v1867_v10 = vshrl.u32 %v1866_v0, 5 }
 0x1fb   : > { %v1872_v49 = vshrl.u32 %v7215_v8, %v1869_v27  ;;  %v1875_v16 = vshrl.u32 %v7246_v12, %v1869_v27  ;;  %v1645_v59 = vsel %vm1634_vm4, nan, %v1644_v15  ;;  %v1729_v52 = vmul.f32 %v1728_v41, %v1726_v44 }
 0x1fc   : > { %v5754_v39 = vshrl.u32 %v1811_v17, 30  ;;  %v1878_v62 = vshrl.u32 %v7235_v1, %v1869_v27  ;;  %v1871_v42 = vshll.u32 %v7239_v7, %v1868_v23  ;;  %v1874_v32 = vshll.u32 %v7215_v8, %v1868_v23  ;;  %2073 = vst [vmem:[%s4945_s10 + $0x58] sm:$0xff] %v1645_v59 }
 0x1fd   : > { %v1881_v45 = vshrl.u32 %v7223_v48, %v1869_v27  ;;  %v1730_v3 = vxor.u32 2147483648, %v1729_v52  ;;  %v1877_v46 = vshll.u32 %v7246_v12, %v1868_v23  ;;  %v1880_v14 = vshll.u32 %v7235_v1, %v1868_v23 }
 0x1fe   : > { %v1813_v29 = vshll.u32 %v5754_v39, 30  ;;  %v1873_v28 = vor.u32 %v1872_v49, %v1871_v42  ;;  %v1876_v61 = vor.u32 %v1875_v16, %v1874_v32  ;;  %v1883_v51 = vshll.u32 %v7223_v48, %v1868_v23 }
 0x1ff   : > { %v1884_v0 = vshrl.u32 %v7224_v55, %v1869_v27  ;;  %v1731_v4 = vsel %vm1648_vm6, %v1730_v3, %v1729_v52  ;;  %v1879_v9 = vor.u32 %v1878_v62, %v1877_v46  ;;  %v1882_v35 = vor.u32 %v1881_v45, %v1880_v14 }
 0x200   : > { %v5768_v37 = vsub.s32 %v1810_v63, %v1813_v29  ;;  %v1734_v44 = vsel %vm5738_vm11, %v5434_v6, %v1731_v4  ;;  %v1735_v41 = vsel %vm5738_vm11, 0, %v1733_v33  ;;  %v1862_v17 = vor.u32 8388608, %v1861_v40 }
 0x201   : > { %v1885_v15 = vor.u32 %v1884_v0, %v1883_v51  ;;  %4292 = vcosq.f32 %v1734_v44  ;;  %v1870_v49 = vshrl.u32 %v7239_v7, %v1869_v27  ;;  %v1962_v16 = vshrl.u32 %v1961_v50, 23 }
 0x202   : > { %v1816_v23 = vsub.s32 0, %v5768_v37  ;;  %4294 = vsinq.f32 %v1734_v44  ;;  %vm1886_vm12 = vcmp.lt.s32.totalorder %v1867_v10, 1  ;;  %vm1888_vm13 = vcmp.lt.s32.totalorder %v1867_v10, 3 }
 0x203   : > { %vm1889_vm14 = vcmp.lt.s32.totalorder %v1867_v10, 4  ;;  %v1894_v52 = vsel %vm1886_vm12, %v1873_v28, %v1876_v61  ;;  %v1739_v42 = vadd.s32 3, %v1735_v41  ;;  %v1898_v33 = vsel %vm1886_vm12, %v1876_v61, %v1879_v9 }
 0x204   : > { %v3969_v63 = vmin.u32 %v1816_v23, %v5768_v37  ;;  %v1891_v59 = vsel %vm1889_vm14, %v1879_v9, 2102212464  ;;  %v1895_v62 = vsel %vm1889_vm14, %v1882_v35, 920167782  ;;  %v1899_v40 = vsel %vm1889_vm14, %v1885_v15, 1326507024 }
 0x205   : > { %v1896_v54 = vsel %vm1888_vm13, %v1879_v9, %v1895_v62  ;;  %vm1887_vm15 = vcmp.lt.s32.totalorder %v1867_v10, 2  ;;  %v1890_v45 = vsel %vm1886_vm12, %v1870_v49, %v1873_v28  ;;  %v1902_v3 = vshll.u32 %v1862_v17, 8 }
 0x206   : > { %v1818_v32 = vclz %v3969_v63  ;;  %v1892_v27 = vsel %vm1888_vm13, %v1876_v61, %v1891_v59  ;;  %v1897_v50 = vsel %vm1887_vm15, %v1894_v52, %v1896_v54  ;;  %v1900_v29 = vsel %vm1888_vm13, %v1882_v35, %v1899_v40 }
 0x207   : > { %v3976_v46 = vadd.s32 4294967169, %v1962_v16  ;;  %v1901_v51 = vsel %vm1887_vm15, %v1898_v33, %v1900_v29  ;;  %v5781_v0 = vmul.u32.u64.low %v1902_v3, %v1897_v50  ;;  %v5782_v4 = vmul.u32.u64.high %v1902_v3, %v1897_v50, %v5781_v0 }
 0x208   : > { %v3970_v14 = vadd.s32 4294967294, %v1818_v32  ;;  %v5785_v44 = vmul.u32.u64.low %v1902_v3, %v1901_v51  ;;  %v5786_v41 = vmul.u32.u64.high %v1902_v3, %v1901_v51, %v5785_v44  ;;  %v1893_v15 = vsel %vm1887_vm15, %v1890_v45, %v1892_v27 }
 0x209   : > { %v1968_v9 = vadd.s32 1, %v3976_v46  ;;  %v1740_v28 = vand.u32 3, %v1739_v42  ;;  %v1806_v10 = vadd.s32 %v5714_v24, %v5712_v57  ;;  %v1912_v23 = vadd.s32 1, %v5782_v4 }
 0x20a   : > { %vm3971_vm0 = vcmp.lt.s32.totalorder %v3970_v14, 0  ;;  %vm1738_vm2 = vweird.f32 %v5434_v6  ;;  %v1909_v49 = vmul.u32 %v1902_v3, %v1893_v15  ;;  %vm1911_vm3 = vc.u32 %v5786_v41, %v5781_v0 }
 0x20b   : > { %v1821_v17 = vsel %vm3971_vm0, 0, %v3970_v14  ;;  %vm1969_vm1 = vcmp.gt.s32.totalorder %v1968_v9, 0  ;;  %v1913_v62 = vsel %vm1911_vm3, %v1912_v23, %v5782_v4  ;;  %vm1752_vm4 = vcmp.lt.s32.totalorder %v5490_v60, 0 }
 0x20c   : > { %v1822_v61 = vsub.s32 32, %v1821_v17  ;;  %v1826_v35 = vsub.s32 4294967266, %v1821_v17  ;;  %v1970_v16 = vsel %vm1969_vm1, %v1968_v9, 0  ;;  %v1823_v63 = vshll.u32 %v5768_v37, %v1821_v17 }
 0x20d   : > { %v1836_v57 = vsub.s32 4, %v5754_v39  ;;  %v1914_v24 = vadd.s32 %v1913_v62, %v1909_v49  ;;  %v1972_v54 = vand.u32 31, %v1970_v16  ;;  %vm1745_vm5 = vcmp.eq.s32.totalorder %v1740_v28, 2 }
 0x20e   : > { %v1824_v59 = vshrl.u32 %v1806_v10, %v1822_v61  ;;  %v1827_v52 = vadd.s32 127, %v1826_v35  ;;  %v4293_v42 = vpop.eup %4292  ;;  %vm5800_vm6 = vcmp.le.f32.partialorder %v1750_v13, 0.7853982  ;;  %v1958_v50 = vand.u32 2147483647, %v5719_v56 }
 0x20f   : > { %v4295_v33 = vpop.eup %4294  ;;  %v1746_v40 = vxor.u32 2147483648, %v4293_v42  ;;  %v1915_v27 = vadd.s32 536870912, %v1914_v24  ;;  %v1973_v29 = vsub.s32 32, %v1972_v54  ;;  %vm1741_vm7 = vcmp.lt.s32.totalorder %v1740_v28, 2 }
 0x210   : > { %v1825_v32 = vor.u32 %v1824_v59, %v1823_v63  ;;  %v1828_v45 = vshll.u32 %v1827_v52, 23  ;;  %v1743_v3 = vxor.u32 2147483648, %v4295_v33  ;;  %vm1742_vm8 = vcmp.eq.s32.totalorder %v1740_v28, 0 }
 0x211   : > { %v1747_v46 = vsel %vm1745_vm5, %v1746_v40, %v4295_v33  ;;  %v1837_v44 = vsel %vm1752_vm4, %v1836_v57, %v5754_v39  ;;  %v5808_v9 = vshrl.u32 %v1915_v27, 30  ;;  %v1976_v17 = vshrl.u32 %v7215_v8, %v1973_v29 }
 0x212   : > { %v1829_v14 = vor.u32 4788187, %v1828_v45  ;;  %v1744_v51 = vsel %vm1742_vm8, %v4293_v42, %v1743_v3  ;;  %v1832_v4 = vcvt.s32.f32 %v1825_v32  ;;  %v1979_v10 = vshrl.u32 %v7246_v12, %v1973_v29 }
 0x213   : > { %v1748_v13 = vsel %vm1741_vm7, %v1744_v51, %v1747_v46  ;;  %v1917_v61 = vshll.u32 %v5808_v9, 30  ;;  %v1965_v35 = vand.u32 8388607, %v1958_v50  ;;  %v1971_v23 = vshrl.u32 %v1970_v16, 5 }
 0x214   : > { %v1830_v15 = vand.u32 2147483647, %v1829_v14  ;;  %v1749_v28 = vsel %vm1738_vm2, nan, %v1748_v13  ;;  %v1975_v39 = vshll.u32 %v7239_v7, %v1972_v54  ;;  %v1978_v63 = vshll.u32 %v7215_v8, %v1972_v54 }
 0x215   : > { %v1982_v59 = vshrl.u32 %v7235_v1, %v1973_v29  ;;  %2074 = vst [vmem:[%s4945_s10 + $0x60] sm:$0xff] %v1749_v28  ;;  %v1918_v52 = vsub.s32 %v1914_v24, %v1917_v61  ;;  %v1981_v62 = vshll.u32 %v7246_v12, %v1972_v54  ;;  %v1984_v6 = vshll.u32 %v7235_v1, %v1972_v54 }
 0x216   : > { %v1833_v49 = vmul.f32 %v1832_v4, %v1830_v15  ;;  %v1985_v42 = vshrl.u32 %v7223_v48, %v1973_v29  ;;  %v1977_v33 = vor.u32 %v1976_v17, %v1975_v39  ;;  %v1980_v40 = vor.u32 %v1979_v10, %v1978_v63 }
 0x217   : > { %v1988_v16 = vshrl.u32 %v7224_v55, %v1973_v29  ;;  %v1920_v32 = vsub.s32 0, %v1918_v52  ;;  %v1983_v45 = vor.u32 %v1982_v59, %v1981_v62  ;;  %v1987_v27 = vshll.u32 %v7223_v48, %v1972_v54 }
 0x218   : > { %v1834_v57 = vxor.u32 2147483648, %v1833_v49  ;;  %v1986_v3 = vor.u32 %v1985_v42, %v1984_v6  ;;  %v1839_v24 = vsel %vm5800_vm6, 0, %v1837_v44  ;;  %v1966_v14 = vor.u32 8388608, %v1965_v35 }
 0x219   : > { %vm1990_vm10 = vcmp.lt.s32.totalorder %v1971_v23, 1  ;;  %v3973_v4 = vmin.u32 %v1920_v32, %v1918_v52  ;;  %v1989_v13 = vor.u32 %v1988_v16, %v1987_v27  ;;  %vm1993_vm9 = vcmp.lt.s32.totalorder %v1971_v23, 4 }
 0x21a   : > { %v1835_v46 = vsel %vm1752_vm4, %v1834_v57, %v1833_v49  ;;  %v1974_v15 = vshrl.u32 %v7239_v7, %v1973_v29  ;;  %v1998_v54 = vsel %vm1990_vm10, %v1977_v33, %v1980_v40  ;;  %v1999_v17 = vsel %vm1993_vm9, %v1986_v3, 920167782 }
 0x21b   : > { %v1838_v51 = vsel %vm5800_vm6, %v5490_v60, %v1835_v46  ;;  %v1922_v10 = vclz %v3973_v4  ;;  %vm1992_vm11 = vcmp.lt.s32.totalorder %v1971_v23, 3  ;;  %v1995_v44 = vsel %vm1993_vm9, %v1983_v45, 2102212464  ;;  %v258_v46 = vld [vmem:[%s254_s13] sm:$0x3] }
 0x21c   : > { %4296 = vcosq.f32 %v1838_v51  ;;  %vm1991_vm12 = vcmp.lt.s32.totalorder %v1971_v23, 2  ;;  %v2000_v28 = vsel %vm1992_vm11, %v1983_v45, %v1999_v17  ;;  %v2002_v37 = vsel %vm1990_vm10, %v1980_v40, %v1983_v45 }
 0x21d   : > { %4298 = vsinq.f32 %v1838_v51  ;;  %v2006_v61 = vshll.u32 %v1966_v14, 8  ;;  %v3974_v35 = vadd.s32 4294967294, %v1922_v10  ;;  %v1994_v49 = vsel %vm1990_vm10, %v1974_v15, %v1977_v33 }
 0x21e   : > { %v2001_v29 = vsel %vm1991_vm12, %v1998_v54, %v2000_v28  ;;  %v2003_v39 = vsel %vm1993_vm9, %v1989_v13, 1326507024  ;;  %v1996_v63 = vsel %vm1992_vm11, %v1980_v40, %v1995_v44  ;;  %v1843_v57 = vadd.s32 3, %v1839_v24 }
 0x21f   : > { %v2004_v59 = vsel %vm1992_vm11, %v1986_v3, %v2003_v39  ;;  %v5841_v62 = vmul.u32.u64.low %v2006_v61, %v2001_v29  ;;  %v5842_v6 = vmul.u32.u64.high %v2006_v61, %v2001_v29, %v5841_v62  ;;  %vm3975_vm13 = vcmp.lt.s32.totalorder %v3974_v35, 0 }
 0x220   : > { %v2005_v42 = vsel %vm1991_vm12, %v2002_v37, %v2004_v59  ;;  %v1925_v33 = vsel %vm3975_vm13, 0, %v3974_v35  ;;  %v1910_v40 = vadd.s32 %v5781_v0, %v5786_v41  ;;  %v1997_v27 = vsel %vm1991_vm12, %v1994_v49, %v1996_v63 }
 0x221   : > { %v5851_v16 = vmul.u32.u64.low %v2006_v61, %v2005_v42  ;;  %v5852_v32 = vmul.u32.u64.high %v2006_v61, %v2005_v42, %v5851_v16  ;;  %v1926_v45 = vsub.s32 32, %v1925_v33  ;;  %v1930_v3 = vsub.s32 4294967266, %v1925_v33 }
 0x222   : > { %v2016_v14 = vadd.s32 1, %v5842_v6  ;;  %v1927_v51 = vshll.u32 %v1918_v52, %v1925_v33  ;;  %v1844_v15 = vand.u32 3, %v1843_v57  ;;  %v2013_v54 = vmul.u32 %v2006_v61, %v1997_v27 }
 0x223   : > { %v1928_v4 = vshrl.u32 %v1910_v40, %v1926_v45  ;;  %v1931_v13 = vadd.s32 127, %v1930_v3  ;;  %vm2015_vm14 = vc.u32 %v5852_v32, %v5841_v62  ;;  %v7258_v0 = vsub.s32 0, %v4597_v20 }
 0x224   : > { %v2017_v10 = vsel %vm2015_vm14, %v2016_v14, %v5842_v6  ;;  %v1940_v23 = vsub.s32 4, %v5808_v9  ;;  %vm1842_vm15 = vweird.f32 %v5490_v60  ;;  %vm5869_vm0 = vcmp.le.f32.partialorder %v1854_v11, 0.7853982 }
 0x225   : > { %v1929_v24 = vor.u32 %v1928_v4, %v1927_v51  ;;  %v1932_v17 = vshll.u32 %v1931_v13, 23  ;;  %v5863_v41 = vrot.slane %v258_v46, %v7258_v0  ;;  %v2018_v44 = vadd.s32 %v2017_v10, %v2013_v54 }
 0x226   : > { %vm1856_vm1 = vcmp.lt.s32.totalorder %v5576_v36, 0  ;;  %vm1849_vm2 = vcmp.eq.s32.totalorder %v1844_v15, 2  ;;  %v7261_v29 = vsub.s32 1, %v4597_v20  ;;  %vm1846_vm3 = vcmp.eq.s32.totalorder %v1844_v15, 0 }
 0x227   : > { %v1933_v37 = vor.u32 4788187, %v1932_v17  ;;  %v2019_v49 = vadd.s32 536870912, %v2018_v44  ;;  %v1936_v6 = vcvt.s32.f32 %v1929_v24  ;;  %v2089_v11 = vmul.f32 %v5863_v41, %v4594_v19 }
 0x228   : > { %v5876_v39 = vrot.slane %v258_v46, %v7261_v29  ;;  %v1941_v57 = vsel %vm1856_vm1, %v1940_v23, %v5808_v9  ;;  %vm1845_vm4 = vcmp.lt.s32.totalorder %v1844_v15, 2  ;;  %vm1960_vm5 = vcmp.lt.s32.totalorder %v5719_v56, 0 }
 0x229   : > { %v4297_v28 = vpop.eup %4296  ;;  %v1934_v59 = vand.u32 2147483647, %v1933_v37  ;;  %v2020_v33 = vshrl.u32 %v2019_v49, 30  ;;  %v5884_v20 = vadd.f32 %v2089_v11, %v4630_v34  ;;  %v1943_v9 = vsel %vm5869_vm0, 0, %v1941_v57 }
 0x22a   : > { %v4299_v61 = vpop.eup %4298  ;;  %v1850_v35 = vxor.u32 2147483648, %v4297_v28  ;;  %v2090_v51 = vmul.f32 %v5876_v39, %v4594_v19  ;;  %vm5900_vm6 = vcmp.le.f32.partialorder %v1958_v50, 0.7853982  ;;  %v1947_v17 = vadd.s32 3, %v1943_v9 }
 0x22b   : > { %v1847_v63 = vxor.u32 2147483648, %v4299_v61  ;;  %v1937_v40 = vmul.f32 %v1936_v6, %v1934_v59  ;;  %v2021_v3 = vshll.u32 %v2020_v33, 30  ;;  %v2044_v27 = vsub.s32 4, %v2020_v33 }
 0x22c   : > { %v1851_v42 = vsel %vm1849_vm2, %v1850_v35, %v4299_v61  ;;  %v5905_v54 = vadd.f32 %v2090_v51, %v4630_v34  ;;  %v2121_v24 = vand.u32 2147483647, %v5884_v20  ;;  %v2124_v0 = vand.u32 2139095040, %v5884_v20 }
 0x22d   : > { %v1848_v16 = vsel %vm1846_vm3, %v4297_v28, %v1847_v63  ;;  %v1938_v14 = vxor.u32 2147483648, %v1937_v40  ;;  %v2022_v4 = vsub.s32 %v2018_v44, %v2021_v3  ;;  %v2045_v13 = vsel %vm1960_vm5, %v2044_v27, %v2020_v33 }
 0x22e   : > { %v1852_v45 = vsel %vm1845_vm4, %v1848_v16, %v1851_v42  ;;  %v2047_v50 = vsel %vm5900_vm6, 0, %v2045_v13  ;;  %v2091_v23 = vmul.f32 %v5863_v41, %v4601_v22  ;;  %v2125_v44 = vshrl.u32 %v2124_v0, 23 }
 0x22f   : > { %v1853_v46 = vsel %vm1842_vm15, nan, %v1852_v45  ;;  %v1939_v15 = vsel %vm1856_vm1, %v1938_v14, %v1937_v40  ;;  %v2024_v10 = vsub.s32 0, %v2022_v4  ;;  %v2128_v28 = vand.u32 8388607, %v2121_v24 }
 0x230   : > { %2075 = vst [vmem:[%s4945_s10 + $0x68] sm:$0xff] %v1853_v46  ;;  %v1942_v19 = vsel %vm5869_vm0, %v5576_v36, %v1939_v15  ;;  %v5919_v52 = vadd.f32 %v2091_v23, %v4639_v38  ;;  %v2225_v37 = vand.u32 2147483647, %v5905_v54  ;;  %v2228_v61 = vand.u32 2139095040, %v5905_v54 }
 0x231   : > { %4300 = vcosq.f32 %v1942_v19  ;;  %v3977_v34 = vmin.u32 %v2024_v10, %v2022_v4  ;;  %v1948_v35 = vand.u32 3, %v1947_v17  ;;  %v2051_v29 = vadd.s32 3, %v2047_v50 }
 0x232   : > { %4302 = vsinq.f32 %v1942_v19  ;;  %v3980_v63 = vadd.s32 4294967169, %v2125_v44  ;;  %v2229_v59 = vshrl.u32 %v2228_v61, 23  ;;  %v2129_v11 = vor.u32 8388608, %v2128_v28 }
 0x233   : > { %v2026_v49 = vclz %v3977_v34  ;;  %v5925_v33 = vand.u32 8388607, %v2225_v37  ;;  %v2332_v16 = vand.u32 2139095040, %v5919_v52  ;;  %vm1953_vm7 = vcmp.eq.s32.totalorder %v1948_v35, 2 }
 0x234   : > { %v2131_v42 = vadd.s32 1, %v3980_v63  ;;  %v3984_v57 = vadd.s32 4294967169, %v2229_v59  ;;  %v2014_v40 = vadd.s32 %v5841_v62, %v5852_v32  ;;  %v5932_v45 = vmul.f32 %v5876_v39, %v4601_v22 }
 0x235   : > { %v3978_v6 = vadd.s32 4294967294, %v2026_v49  ;;  %vm1950_vm10 = vcmp.eq.s32.totalorder %v1948_v35, 0  ;;  %v5934_v27 = vand.u32 3, %v2051_v29  ;;  %vm1949_vm11 = vcmp.lt.s32.totalorder %v1948_v35, 2 }
 0x236   : > { %vm2132_vm9 = vcmp.gt.s32.totalorder %v2131_v42, 0  ;;  %v2235_v46 = vadd.s32 1, %v3984_v57  ;;  %v5936_v13 = vshll.u32 %v2129_v11, 8  ;;  %vm1946_vm12 = vweird.f32 %v5576_v36 }
 0x237   : > { %vm3979_vm8 = vcmp.lt.s32.totalorder %v3978_v6, 0  ;;  %v2133_v51 = vsel %vm2132_vm9, %v2131_v42, 0  ;;  %v2233_v32 = vor.u32 8388608, %v5925_v33  ;;  %v5940_v22 = vshrl.u32 %v2332_v16, 23 }
 0x238   : > { %v2029_v3 = vsel %vm3979_vm8, 0, %v3978_v6  ;;  %v2135_v62 = vand.u32 31, %v2133_v51  ;;  %vm2236_vm13 = vcmp.gt.s32.totalorder %v2235_v46, 0  ;;  %v2134_v10 = vshrl.u32 %v2133_v51, 5 }
 0x239   : > { %v2030_v14 = vsub.s32 32, %v2029_v3  ;;  %v2034_v9 = vsub.s32 4294967266, %v2029_v3  ;;  %v2031_v15 = vshll.u32 %v2022_v4, %v2029_v3  ;;  %v2237_v34 = vsel %vm2236_vm13, %v2235_v46, 0 }
 0x23a   : > { %v2136_v0 = vsub.s32 32, %v2135_v62  ;;  %v2138_v50 = vshll.u32 %v7239_v7, %v2135_v62  ;;  %v2141_v23 = vshll.u32 %v7215_v8, %v2135_v62  ;;  %v2144_v49 = vshll.u32 %v7246_v12, %v2135_v62 }
 0x23b   : > { %v2032_v19 = vshrl.u32 %v2014_v40, %v2030_v14  ;;  %v2035_v17 = vadd.s32 127, %v2034_v9  ;;  %v2147_v29 = vshll.u32 %v7235_v1, %v2135_v62  ;;  %v2150_v11 = vshll.u32 %v7223_v48, %v2135_v62 }
 0x23c   : > { %v2139_v4 = vshrl.u32 %v7215_v8, %v2136_v0  ;;  %v2142_v6 = vshrl.u32 %v7246_v12, %v2136_v0  ;;  %v2145_v40 = vshrl.u32 %v7235_v1, %v2136_v0  ;;  %v2148_v9 = vshrl.u32 %v7223_v48, %v2136_v0 }
 0x23d   : > { %v2033_v28 = vor.u32 %v2032_v19, %v2031_v15  ;;  %v2036_v61 = vshll.u32 %v2035_v17, 23  ;;  %v2151_v17 = vshrl.u32 %v7224_v55, %v2136_v0  ;;  %vm2153_vm14 = vcmp.lt.s32.totalorder %v2134_v10, 1 }
 0x23e   : > { %v4301_v44 = vpop.eup %4300  ;;  %v2140_v46 = vor.u32 %v2139_v4, %v2138_v50  ;;  %v2143_v14 = vor.u32 %v2142_v6, %v2141_v23  ;;  %v2146_v19 = vor.u32 %v2145_v40, %v2144_v49  ;;  %vm2154_vm15 = vcmp.lt.s32.totalorder %v2134_v10, 2 }
 0x23f   : > { %v4303_v63 = vpop.eup %4302  ;;  %v1954_v59 = vxor.u32 2147483648, %v4301_v44  ;;  %v2037_v57 = vor.u32 4788187, %v2036_v61  ;;  %v2040_v16 = vcvt.s32.f32 %v2033_v28  ;;  %v2137_v61 = vshrl.u32 %v7239_v7, %v2136_v0 }
 0x240   : > { %v1951_v42 = vxor.u32 2147483648, %v4303_v63  ;;  %v2149_v28 = vor.u32 %v2148_v9, %v2147_v29  ;;  %v2152_v50 = vor.u32 %v2151_v17, %v2150_v11  ;;  %vm2155_vm0 = vcmp.lt.s32.totalorder %v2134_v10, 3 }
 0x241   : > { %v1955_v3 = vsel %vm1953_vm7, %v1954_v59, %v4303_v63  ;;  %v2038_v15 = vand.u32 2147483647, %v2037_v57  ;;  %vm2156_vm1 = vcmp.lt.s32.totalorder %v2134_v10, 4  ;;  %v2157_v23 = vsel %vm2153_vm14, %v2137_v61, %v2140_v46 }
 0x242   : > { %v1952_v51 = vsel %vm1950_vm10, %v4301_v44, %v1951_v42  ;;  %v2161_v44 = vsel %vm2153_vm14, %v2140_v46, %v2143_v14  ;;  %v2158_v4 = vsel %vm2156_vm1, %v2146_v19, 2102212464  ;;  %v2162_v6 = vsel %vm2156_vm1, %v2149_v28, 920167782 }
 0x243   : > { %v1956_v62 = vsel %vm1949_vm11, %v1952_v51, %v1955_v3  ;;  %v2041_v59 = vmul.f32 %v2040_v16, %v2038_v15  ;;  %v2165_v35 = vsel %vm2153_vm14, %v2143_v14, %v2146_v19  ;;  %v2159_v42 = vsel %vm2155_vm0, %v2143_v14, %v2158_v4 }
 0x244   : > { %v1957_v63 = vsel %vm1946_vm12, nan, %v1956_v62  ;;  %v2163_v57 = vsel %vm2155_vm0, %v2146_v19, %v2162_v6  ;;  %v2166_v0 = vsel %vm2156_vm1, %v2152_v50, 1326507024  ;;  %v2239_v29 = vand.u32 31, %v2237_v34 }
 0x245   : > { %2076 = vst [vmem:[%s4945_s10 + $0x70] sm:$0xff] %v1957_v63  ;;  %v2042_v49 = vxor.u32 2147483648, %v2041_v59  ;;  %v2160_v16 = vsel %vm2154_vm15, %v2157_v23, %v2159_v42  ;;  %v2164_v11 = vsel %vm2154_vm15, %v2161_v44, %v2163_v57  ;;  %v2167_v40 = vsel %vm2155_vm0, %v2149_v28, %v2166_v0 }
 0x246   : > { %v2168_v46 = vsel %vm2154_vm15, %v2165_v35, %v2167_v40  ;;  %v5968_v9 = vmul.u32.u64.low %v5936_v13, %v2164_v11  ;;  %v5969_v14 = vmul.u32.u64.high %v5936_v13, %v2164_v11, %v5968_v9  ;;  %v5978_v19 = vshll.u32 %v2233_v32, 8 }
 0x247   : > { %v2043_v36 = vsel %vm1960_vm5, %v2042_v49, %v2041_v59  ;;  %v5973_v51 = vmul.u32.u64.low %v5936_v13, %v2168_v46  ;;  %v5974_v15 = vmul.u32.u64.high %v5936_v13, %v2168_v46, %v5973_v51  ;;  %v2238_v17 = vshrl.u32 %v2237_v34, 5 }
 0x248   : > { %v2046_v3 = vsel %vm5900_vm6, %v5719_v56, %v2043_v36  ;;  %v2240_v60 = vsub.s32 32, %v2239_v29  ;;  %v3988_v10 = vadd.s32 4294967169, %v5940_v22  ;;  %v2176_v62 = vmul.u32 %v5936_v13, %v2160_v16 }
 0x249   : > { %4304 = vcosq.f32 %v2046_v3  ;;  %v2242_v61 = vshll.u32 %v7239_v7, %v2239_v29  ;;  %v2245_v28 = vshll.u32 %v7215_v8, %v2239_v29  ;;  %v2248_v63 = vshll.u32 %v7246_v12, %v2239_v29 }
 0x24a   : > { %4306 = vsinq.f32 %v2046_v3  ;;  %v2179_v59 = vadd.s32 1, %v5969_v14  ;;  %v2243_v50 = vshrl.u32 %v7215_v8, %v2240_v60  ;;  %v2246_v33 = vshrl.u32 %v7246_v12, %v2240_v60 }
 0x24b   : > { %v2251_v32 = vshll.u32 %v7235_v1, %v2239_v29  ;;  %vm2178_vm2 = vc.u32 %v5974_v15, %v5968_v9  ;;  %v2249_v22 = vshrl.u32 %v7235_v1, %v2240_v60  ;;  %v2252_v13 = vshrl.u32 %v7223_v48, %v2240_v60 }
 0x24c   : > { %v2254_v34 = vshll.u32 %v7223_v48, %v2239_v29  ;;  %v2180_v23 = vsel %vm2178_vm2, %v2179_v59, %v5969_v14  ;;  %v2244_v44 = vor.u32 %v2243_v50, %v2242_v61  ;;  %v2247_v49 = vor.u32 %v2246_v33, %v2245_v28 }
 0x24d   : > { %v2255_v4 = vshrl.u32 %v7224_v55, %v2240_v60  ;;  %v2181_v6 = vadd.s32 %v2180_v23, %v2176_v62  ;;  %v2250_v35 = vor.u32 %v2249_v22, %v2248_v63  ;;  %v2253_v42 = vor.u32 %v2252_v13, %v2251_v32 }
 0x24e   : > { %vm2257_vm3 = vcmp.lt.s32.totalorder %v2238_v17, 1  ;;  %v2241_v57 = vshrl.u32 %v7239_v7, %v2240_v60  ;;  %vm2259_vm4 = vcmp.lt.s32.totalorder %v2238_v17, 3  ;;  %vm2260_vm5 = vcmp.lt.s32.totalorder %v2238_v17, 4 }
 0x24f   : > { %v2256_v0 = vor.u32 %v2255_v4, %v2254_v34  ;;  %v2182_v36 = vadd.s32 536870912, %v2181_v6  ;;  %v2262_v16 = vsel %vm2260_vm5, %v2250_v35, 2102212464  ;;  %v2265_v11 = vsel %vm2257_vm3, %v2244_v44, %v2247_v49 }
 0x250   : > { %v2266_v40 = vsel %vm2260_vm5, %v2253_v42, 920167782  ;;  %vm2258_vm6 = vcmp.lt.s32.totalorder %v2238_v17, 2  ;;  %v2269_v3 = vsel %vm2257_vm3, %v2247_v49, %v2250_v35  ;;  %v2261_v51 = vsel %vm2257_vm3, %v2241_v57, %v2244_v44 }
 0x251   : > { %v2267_v29 = vsel %vm2259_vm4, %v2250_v35, %v2266_v40  ;;  %v2270_v46 = vsel %vm2260_vm5, %v2256_v0, 1326507024  ;;  %v2183_v14 = vshrl.u32 %v2182_v36, 30  ;;  %v2263_v28 = vsel %vm2259_vm4, %v2247_v49, %v2262_v16 }
 0x252   : > { %v2268_v62 = vsel %vm2258_vm6, %v2265_v11, %v2267_v29  ;;  %v2271_v61 = vsel %vm2259_vm4, %v2253_v42, %v2270_v46  ;;  %vm2050_vm7 = vweird.f32 %v5719_v56  ;;  %vm2053_vm8 = vcmp.lt.s32.totalorder %v5934_v27, 2 }
 0x253   : > { %v2272_v63 = vsel %vm2258_vm6, %v2269_v3, %v2271_v61  ;;  %v6000_v60 = vmul.u32.u64.low %v5978_v19, %v2268_v62  ;;  %v6001_v59 = vmul.u32.u64.high %v5978_v19, %v2268_v62, %v6000_v60  ;;  %v2184_v50 = vshll.u32 %v2183_v14, 30 }
 0x254   : > { %v6005_v33 = vmul.u32.u64.low %v5978_v19, %v2272_v63  ;;  %v6006_v32 = vmul.u32.u64.high %v5978_v19, %v2272_v63, %v6005_v33  ;;  %v2093_v13 = vmul.f32 %v5863_v41, %v4592_v18  ;;  %v6013_v34 = vadd.f32 %v5932_v45, %v4639_v38 }
 0x255   : > { %v2339_v23 = vadd.s32 1, %v3988_v10  ;;  %v6015_v4 = vsub.s32 %v2181_v6, %v2184_v50  ;;  %v2264_v35 = vsel %vm2258_vm6, %v2261_v51, %v2263_v28  ;;  %v7214_v42 = vand.u32 2147483647, %v5919_v52 }
 0x256   : > { %v4305_v22 = vpop.eup %4304  ;;  %vm2057_vm10 = vcmp.eq.s32.totalorder %v5934_v27, 2  ;;  %v2283_v0 = vadd.s32 1, %v6001_v59  ;;  %vm2054_vm11 = vcmp.eq.s32.totalorder %v5934_v27, 0  ;;  %v2207_v10 = vsub.s32 4, %v2183_v14 }
 0x257   : > { %v4307_v44 = vpop.eup %4306  ;;  %v2058_v49 = vxor.u32 2147483648, %v4305_v22  ;;  %vm2340_vm9 = vcmp.gt.s32.totalorder %v2339_v23, 0  ;;  %v2187_v45 = vsub.s32 0, %v6015_v4  ;;  %v2280_v6 = vmul.u32 %v5978_v19, %v2264_v35 }
 0x258   : > { %v2055_v57 = vxor.u32 2147483648, %v4307_v44  ;;  %vm2282_vm12 = vc.u32 %v6006_v32, %v6000_v60  ;;  %v2341_v17 = vsel %vm2340_vm9, %v2339_v23, 0  ;;  %v2336_v29 = vand.u32 8388607, %v7214_v42 }
 0x259   : > { %v2059_v38 = vsel %vm2057_vm10, %v2058_v49, %v4307_v44  ;;  %v3981_v11 = vmin.u32 %v2187_v45, %v6015_v4  ;;  %v2284_v40 = vsel %vm2282_vm12, %v2283_v0, %v6001_v59  ;;  %vm2123_vm13 = vcmp.lt.s32.totalorder %v5884_v20, 0 }
 0x25a   : > { %v2056_v36 = vsel %vm2054_vm11, %v4305_v22, %v2055_v57  ;;  %v2285_v46 = vadd.s32 %v2284_v40, %v2280_v6  ;;  %v2343_v19 = vand.u32 31, %v2341_v17  ;;  %v6037_v51 = vmul.f32 %v5876_v39, %v4592_v18 }
 0x25b   : > { %v2060_v16 = vsel %vm2053_vm8, %v2056_v36, %v2059_v38  ;;  %v2189_v27 = vclz %v3981_v11  ;;  %v6041_v62 = vsel %vm2123_vm13, %v2207_v10, %v2183_v14  ;;  %v6045_v61 = vmul.f32 %v5863_v41, %v4599_v21 }
 0x25c   : > { %v2061_v3 = vsel %vm2050_vm7, nan, %v2060_v16  ;;  %v6048_v56 = vadd.f32 %v2093_v13, %v4736_v47  ;;  %v2286_v28 = vadd.s32 536870912, %v2285_v46  ;;  %v2344_v63 = vsub.s32 32, %v2343_v19 }
 0x25d   : > { %2077 = vst [vmem:[%s4945_s10 + $0x78] sm:$0xff] %v2061_v3  ;;  %vm6052_vm14 = vcmp.le.f32.partialorder %v2121_v24, 0.7853982  ;;  %v2177_v18 = vadd.s32 %v5968_v9, %v5974_v15  ;;  %v3982_v14 = vadd.s32 4294967294, %v2189_v27  ;;  %v2337_v50 = vor.u32 8388608, %v2336_v29 }
 0x25e   : > { %v2210_v33 = vsel %vm6052_vm14, 0, %v6041_v62  ;;  %v6062_v22 = vadd.s32 %v6000_v60, %v6006_v32  ;;  %v6064_v13 = vshrl.u32 %v2286_v28, 30  ;;  %v2342_v24 = vshrl.u32 %v2341_v17, 5 }
 0x25f   : > { %vm3983_vm15 = vcmp.lt.s32.totalorder %v3982_v14, 0  ;;  %v2346_v44 = vshll.u32 %v7239_v7, %v2343_v19  ;;  %v2347_v49 = vshrl.u32 %v7215_v8, %v2344_v63  ;;  %v2350_v35 = vshrl.u32 %v7246_v12, %v2344_v63 }
 0x260   : > { %v2192_v9 = vsel %vm3983_vm15, 0, %v3982_v14  ;;  %v2288_v15 = vshll.u32 %v6064_v13, 30  ;;  %v2353_v57 = vshrl.u32 %v7235_v1, %v2344_v63  ;;  %v2349_v32 = vshll.u32 %v7215_v8, %v2343_v19 }
 0x261   : > { %v2193_v0 = vsub.s32 32, %v2192_v9  ;;  %v2197_v60 = vsub.s32 4294967266, %v2192_v9  ;;  %v2356_v38 = vshrl.u32 %v7223_v48, %v2344_v63  ;;  %v2352_v10 = vshll.u32 %v7246_v12, %v2343_v19 }
 0x262   : > { %v6074_v45 = vsub.s32 %v2285_v46, %v2288_v15  ;;  %v2355_v36 = vshll.u32 %v7235_v1, %v2343_v19  ;;  %v2359_v6 = vshrl.u32 %v7224_v55, %v2344_v63  ;;  %v2194_v17 = vshll.u32 %v6015_v4, %v2192_v9 }
 0x263   : > { %v2195_v16 = vshrl.u32 %v2177_v18, %v2193_v0  ;;  %v2198_v11 = vadd.s32 127, %v2197_v60  ;;  %v2358_v40 = vshll.u32 %v7223_v48, %v2343_v19  ;;  %v2348_v3 = vor.u32 %v2347_v49, %v2346_v44 }
 0x264   : > { %v2291_v29 = vsub.s32 0, %v6074_v45  ;;  %v2351_v27 = vor.u32 %v2350_v35, %v2349_v32  ;;  %v2354_v28 = vor.u32 %v2353_v57, %v2352_v10  ;;  %v2357_v15 = vor.u32 %v2356_v38, %v2355_v36 }
 0x265   : > { %v2196_v14 = vor.u32 %v2195_v16, %v2194_v17  ;;  %v2199_v46 = vshll.u32 %v2198_v11, 23  ;;  %v2377_v42 = vshll.u32 %v2337_v50, 8  ;;  %vm2227_vm0 = vcmp.lt.s32.totalorder %v5905_v54, 0 }
 0x266   : > { %v3985_v8 = vmin.u32 %v2291_v29, %v6074_v45  ;;  %v2311_v23 = vsub.s32 4, %v6064_v13  ;;  %v2345_v4 = vshrl.u32 %v7239_v7, %v2344_v63  ;;  %v2360_v18 = vor.u32 %v2359_v6, %v2358_v40 }
 0x267   : > { %v2200_v9 = vor.u32 4788187, %v2199_v46  ;;  %vm2361_vm1 = vcmp.lt.s32.totalorder %v2342_v24, 1  ;;  %vm2362_vm2 = vcmp.lt.s32.totalorder %v2342_v24, 2  ;;  %vm2364_vm3 = vcmp.lt.s32.totalorder %v2342_v24, 4 }
 0x268   : > { %v2293_v19 = vclz %v3985_v8  ;;  %vm2363_vm4 = vcmp.lt.s32.totalorder %v2342_v24, 3  ;;  %v2366_v44 = vsel %vm2364_vm3, %v2354_v28, 2102212464  ;;  %v2369_v49 = vsel %vm2361_vm1, %v2348_v3, %v2351_v27 }
 0x269   : > { %v2201_v35 = vand.u32 2147483647, %v2200_v9  ;;  %v2203_v57 = vcvt.s32.f32 %v2196_v14  ;;  %v2370_v50 = vsel %vm2364_vm3, %v2357_v15, 920167782  ;;  %v2373_v0 = vsel %vm2361_vm1, %v2351_v27, %v2354_v28 }
 0x26a   : > { %v3986_v60 = vadd.s32 4294967294, %v2293_v19  ;;  %v2365_v32 = vsel %vm2361_vm1, %v2345_v4, %v2348_v3  ;;  %v2371_v38 = vsel %vm2363_vm4, %v2354_v28, %v2370_v50  ;;  %v2374_v10 = vsel %vm2364_vm3, %v2360_v18, 1326507024 }
 0x26b   : > { %v2204_v36 = vmul.f32 %v2203_v57, %v2201_v35  ;;  %v2367_v17 = vsel %vm2363_vm4, %v2351_v27, %v2366_v44  ;;  %v2372_v63 = vsel %vm2362_vm2, %v2369_v49, %v2371_v38  ;;  %v2375_v6 = vsel %vm2363_vm4, %v2357_v15, %v2374_v10 }
 0x26c   : > { %vm3987_vm5 = vcmp.lt.s32.totalorder %v3986_v60, 0  ;;  %v2376_v16 = vsel %vm2362_vm2, %v2373_v0, %v2375_v6  ;;  %v6088_v8 = vmul.u32.u64.low %v2377_v42, %v2372_v63  ;;  %v6089_v11 = vmul.u32.u64.high %v2377_v42, %v2372_v63, %v6088_v8 }
 0x26d   : > { %v2205_v40 = vxor.u32 2147483648, %v2204_v36  ;;  %v2296_v29 = vsel %vm3987_vm5, 0, %v3986_v60  ;;  %v6091_v14 = vmul.u32.u64.low %v2377_v42, %v2376_v16  ;;  %v6092_v46 = vmul.u32.u64.high %v2377_v42, %v2376_v16, %v6091_v14 }
 0x26e   : > { %v2297_v9 = vsub.s32 32, %v2296_v29  ;;  %v2301_v3 = vsub.s32 4294967266, %v2296_v29  ;;  %v2368_v28 = vsel %vm2362_vm2, %v2365_v32, %v2367_v17  ;;  %v2436_v27 = vand.u32 2139095040, %v6013_v34 }
 0x26f   : > { %v2206_v15 = vsel %vm2123_vm13, %v2205_v40, %v2204_v36  ;;  %v2214_v4 = vadd.s32 3, %v2210_v33  ;;  %v2298_v18 = vshll.u32 %v6074_v45, %v2296_v29  ;;  %v2312_v19 = vsel %vm2227_vm0, %v2311_v23, %v6064_v13 }
 0x270   : > { %v2209_v24 = vsel %vm6052_vm14, %v5884_v20, %v2206_v15  ;;  %v2299_v44 = vshrl.u32 %v6062_v22, %v2297_v9  ;;  %v2302_v49 = vadd.s32 127, %v2301_v3  ;;  %v2387_v35 = vadd.s32 1, %v6089_v11 }
 0x271   : > { %4308 = vcosq.f32 %v2209_v24  ;;  %v2384_v57 = vmul.u32 %v2377_v42, %v2368_v28  ;;  %vm2386_vm6 = vc.u32 %v6092_v46, %v6088_v8  ;;  %v2437_v62 = vshrl.u32 %v2436_v27, 23 }
 0x272   : > { %4310 = vsinq.f32 %v2209_v24  ;;  %v2300_v33 = vor.u32 %v2299_v44, %v2298_v18  ;;  %v2303_v45 = vshll.u32 %v2302_v49, 23  ;;  %v2388_v50 = vsel %vm2386_vm6, %v2387_v35, %v6089_v11 }
 0x273   : > { %vm6115_vm7 = vcmp.le.f32.partialorder %v2225_v37, 0.7853982  ;;  %v2389_v22 = vadd.s32 %v2388_v50, %v2384_v57  ;;  %v3992_v13 = vadd.s32 4294967169, %v2437_v62  ;;  %v7268_v23 = vand.u32 2147483647, %v6013_v34 }
 0x274   : > { %v2304_v42 = vor.u32 4788187, %v2303_v45  ;;  %v2314_v60 = vsel %vm6115_vm7, 0, %v2312_v19  ;;  %v2537_v32 = vand.u32 2147483647, %v6048_v56  ;;  %v2540_v38 = vand.u32 2139095040, %v6048_v56 }
 0x275   : > { %v2440_v0 = vand.u32 8388607, %v7268_v23  ;;  %v6127_v10 = vmul.f32 %v5876_v39, %v4599_v21  ;;  %v6131_v37 = vmul.f32 %v5863_v41, %v4612_v26  ;;  %v2390_v36 = vadd.s32 536870912, %v2389_v22 }
 0x276   : > { %v2443_v17 = vadd.s32 1, %v3992_v13  ;;  %v6135_v63 = vmul.f32 %v5876_v39, %v4612_v26  ;;  %v2215_v6 = vand.u32 3, %v2214_v4  ;;  %v2305_v16 = vand.u32 2147483647, %v2304_v42 }
 0x277   : > { %v2307_v11 = vcvt.s32.f32 %v2300_v33  ;;  %v2318_v40 = vadd.s32 3, %v2314_v60  ;;  %v6137_v29 = vshrl.u32 %v2390_v36, 30  ;;  %v2441_v14 = vor.u32 8388608, %v2440_v0 }
 0x278   : > { %vm2444_vm8 = vcmp.gt.s32.totalorder %v2443_v17, 0  ;;  %v2541_v3 = vshrl.u32 %v2540_v38, 23  ;;  %v6141_v28 = vand.u32 8388607, %v2537_v32  ;;  %v6145_v27 = vmul.f32 %v5863_v41, %v4610_v25 }
 0x279   : > { %v2308_v21 = vmul.f32 %v2307_v11, %v2305_v16  ;;  %v2445_v9 = vsel %vm2444_vm8, %v2443_v17, 0  ;;  %v6149_v26 = vadd.f32 %v6037_v51, %v4736_v47  ;;  %v2392_v15 = vshll.u32 %v6137_v29, 30 }
 0x27a   : > { %v2447_v4 = vand.u32 31, %v2445_v9  ;;  %vm2216_vm10 = vcmp.lt.s32.totalorder %v2215_v6, 2  ;;  %vm2217_vm9 = vcmp.eq.s32.totalorder %v2215_v6, 0  ;;  %vm2220_vm11 = vcmp.eq.s32.totalorder %v2215_v6, 2 }
 0x27b   : > { %v2309_v18 = vxor.u32 2147483648, %v2308_v21  ;;  %vm2213_vm12 = vweird.f32 %v5884_v20  ;;  %v6153_v19 = vand.u32 3, %v2318_v40  ;;  %v6156_v24 = vadd.s32 %v6088_v8, %v6092_v46 }
 0x27c   : > { %v6158_v44 = vsub.s32 %v2389_v22, %v2392_v15  ;;  %v2448_v49 = vsub.s32 32, %v2447_v4  ;;  %v6162_v51 = vshll.u32 %v2441_v14, 8  ;;  %v3996_v35 = vadd.s32 4294967169, %v2541_v3 }
 0x27d   : > { %v2310_v47 = vsel %vm2227_vm0, %v2309_v18, %v2308_v21  ;;  %v2545_v57 = vor.u32 8388608, %v6141_v28  ;;  %v2415_v8 = vsub.s32 4, %v6137_v29  ;;  %v2450_v46 = vshll.u32 %v7239_v7, %v2447_v4 }
 0x27e   : > { %v2313_v62 = vsel %vm6115_vm7, %v5905_v54, %v2310_v47  ;;  %v2395_v33 = vsub.s32 0, %v6158_v44  ;;  %v4309_v45 = vpop.eup %4308  ;;  %v7269_v50 = vmov 2475754826   ;;  %v2454_v13 = vshrl.u32 %v7246_v12, %v2448_v49 }
 0x27f   : > { %4312 = vcosq.f32 %v2313_v62  ;;  %v2451_v22 = vshrl.u32 %v7269_v50, %v2448_v49  ;;  %v2457_v23 = vshrl.u32 %v7235_v1, %v2448_v49  ;;  %v4311_v0 = vpop.eup %4310  ;;  %v2221_v42 = vxor.u32 2147483648, %v4309_v45 }
 0x280   : > { %4314 = vsinq.f32 %v2313_v62  ;;  %v3989_v59 = vmin.u32 %v2395_v33, %v6158_v44  ;;  %v2453_v60 = vshll.u32 %v7269_v50, %v2447_v4  ;;  %v2218_v38 = vxor.u32 2147483648, %v4311_v0 }
 0x281   : > { %v2446_v36 = vshrl.u32 %v2445_v9, 5  ;;  %v2456_v17 = vshll.u32 %v7246_v12, %v2447_v4  ;;  %v2547_v16 = vadd.s32 1, %v3996_v35  ;;  %v2222_v11 = vsel %vm2220_vm11, %v2221_v42, %v4311_v0 }
 0x282   : > { %v2397_v40 = vclz %v3989_v59  ;;  %v2452_v14 = vor.u32 %v2451_v22, %v2450_v46  ;;  %v2455_v21 = vor.u32 %v2454_v13, %v2453_v60  ;;  %v2219_v3 = vsel %vm2217_vm9, %v4309_v45, %v2218_v38 }
 0x283   : > { %v2458_v15 = vor.u32 %v2457_v23, %v2456_v17  ;;  %v2459_v18 = vshll.u32 %v7235_v1, %v2447_v4  ;;  %v2460_v47 = vshrl.u32 %v7223_v48, %v2448_v49  ;;  %v2223_v62 = vsel %vm2216_vm10, %v2219_v3, %v2222_v11 }
 0x284   : > { %v3990_v33 = vadd.s32 4294967294, %v2397_v40  ;;  %v2462_v9 = vshll.u32 %v7223_v48, %v2447_v4  ;;  %v2463_v35 = vshrl.u32 %v7224_v55, %v2448_v49  ;;  %v2224_v0 = vsel %vm2213_vm12, nan, %v2223_v62 }
 0x285   : > { %v2449_v46 = vshrl.u32 %v7239_v7, %v2448_v49  ;;  %v2461_v22 = vor.u32 %v2460_v47, %v2459_v18  ;;  %vm2465_vm13 = vcmp.lt.s32.totalorder %v2446_v36, 1  ;;  %vm2324_vm14 = vcmp.eq.s32.totalorder %v6153_v19, 2  ;;  %3785 = vst [vmem:[%s4945_s10 + $0x80] sm:$0xff] %v2224_v0 }
 0x286   : > { %vm2331_vm15 = vcmp.lt.s32.totalorder %v5919_v52, 0  ;;  %vm3991_vm0 = vcmp.lt.s32.totalorder %v3990_v33, 0  ;;  %v2464_v45 = vor.u32 %v2463_v35, %v2462_v9  ;;  %vm2466_vm1 = vcmp.lt.s32.totalorder %v2446_v36, 2 }
 0x287   : > { %vm2468_vm2 = vcmp.lt.s32.totalorder %v2446_v36, 4  ;;  %vm2321_vm3 = vcmp.eq.s32.totalorder %v6153_v19, 0  ;;  %v2400_v6 = vsel %vm3991_vm0, 0, %v3990_v33  ;;  %vm2467_vm4 = vcmp.lt.s32.totalorder %v2446_v36, 3 }
 0x288   : > { %v2469_v20 = vsel %vm2465_vm13, %v2449_v46, %v2452_v14  ;;  %v2470_v4 = vsel %vm2468_vm2, %v2458_v15, 2102212464  ;;  %vm2320_vm5 = vcmp.lt.s32.totalorder %v6153_v19, 2  ;;  %v2401_v49 = vsub.s32 32, %v2400_v6 }
 0x289   : > { %v2405_v13 = vsub.s32 4294967266, %v2400_v6  ;;  %v2471_v23 = vsel %vm2467_vm4, %v2455_v21, %v2470_v4  ;;  %v2473_v42 = vsel %vm2465_vm13, %v2452_v14, %v2455_v21  ;;  %vm2317_vm6 = vweird.f32 %v5905_v54 }
 0x28a   : > { %v2402_v59 = vshll.u32 %v6158_v44, %v2400_v6  ;;  %v2474_v60 = vsel %vm2468_vm2, %v2461_v22, 920167782  ;;  %v2477_v38 = vsel %vm2465_vm13, %v2455_v21, %v2458_v15  ;;  %v2478_v17 = vsel %vm2468_vm2, %v2464_v45, 1326507024 }
 0x28b   : > { %v2403_v11 = vshrl.u32 %v6156_v24, %v2401_v49  ;;  %v2406_v40 = vadd.s32 127, %v2405_v13  ;;  %v2475_v3 = vsel %vm2467_vm4, %v2458_v15, %v2474_v60  ;;  %v2479_v18 = vsel %vm2467_vm4, %v2461_v22, %v2478_v17 }
 0x28c   : > { %v2472_v47 = vsel %vm2466_vm1, %v2469_v20, %v2471_v23  ;;  %v2476_v14 = vsel %vm2466_vm1, %v2473_v42, %v2475_v3  ;;  %v2480_v62 = vsel %vm2466_vm1, %v2477_v38, %v2479_v18  ;;  %vm2548_vm7 = vcmp.gt.s32.totalorder %v2547_v16, 0  ;;  %v4313_v44 = vpop.eup %4312 }
 0x28d   : > { %v2404_v33 = vor.u32 %v2403_v11, %v2402_v59  ;;  %v2407_v9 = vshll.u32 %v2406_v40, 23  ;;  %v6208_v21 = vmul.u32.u64.low %v6162_v51, %v2480_v62  ;;  %v6209_v35 = vmul.u32.u64.high %v6162_v51, %v2480_v62, %v6208_v21  ;;  %v4315_v24 = vpop.eup %4314 }
 0x28e   : > { %v2325_v0 = vxor.u32 2147483648, %v4313_v44  ;;  %v6212_v15 = vmul.u32.u64.low %v6162_v51, %v2476_v14  ;;  %v6213_v46 = vmul.u32.u64.high %v6162_v51, %v2476_v14, %v6212_v15  ;;  %v2549_v22 = vsel %vm2548_vm7, %v2547_v16, 0 }
 0x28f   : > { %v2322_v45 = vxor.u32 2147483648, %v4315_v24  ;;  %v7270_v36 = vand.u32 2147483647, %v5919_v52  ;;  %v2408_v20 = vor.u32 4788187, %v2407_v9  ;;  %v6224_v4 = vshll.u32 %v2545_v57, 8 }
 0x290   : > { %v2644_v49 = vand.u32 2139095040, %v6149_v26  ;;  %v2326_v13 = vsel %vm2324_vm14, %v2325_v0, %v4315_v24  ;;  %v2416_v16 = vsel %vm2331_vm15, %v2415_v8, %v6137_v29  ;;  %v2488_v23 = vmul.u32 %v6162_v51, %v2472_v47 }
 0x291   : > { %vm6218_vm8 = vcmp.le.f32.partialorder %v7270_v36, 0.7853982  ;;  %v2551_v42 = vand.u32 31, %v2549_v22  ;;  %v2323_v59 = vsel %vm2321_vm3, %v4313_v44, %v2322_v45  ;;  %v2409_v28 = vand.u32 2147483647, %v2408_v20 }
 0x292   : > { %v2411_v57 = vcvt.s32.f32 %v2404_v33  ;;  %vm2490_vm10 = vc.u32 %v6209_v35, %v6212_v15  ;;  %v2327_v60 = vsel %vm2320_vm5, %v2323_v59, %v2326_v13  ;;  %v2491_v38 = vadd.s32 1, %v6213_v46 }
 0x293   : > { %v6242_v17 = vshrl.u32 %v2549_v22, 5  ;;  %v2552_v29 = vsub.s32 32, %v2551_v42  ;;  %v2328_v51 = vsel %vm2317_vm6, nan, %v2327_v60  ;;  %v2554_v11 = vshll.u32 %v7239_v7, %v2551_v42 }
 0x294   : > { %v2412_v8 = vmul.f32 %v2411_v57, %v2409_v28  ;;  %v2557_v40 = vshll.u32 %v7269_v50, %v2551_v42  ;;  %v2492_v3 = vsel %vm2490_vm10, %v2491_v38, %v6213_v46  ;;  %v2560_v47 = vshll.u32 %v7246_v12, %v2551_v42  ;;  %3786 = vst [vmem:[%s4945_s10 + $0x88] sm:$0xff] %v2328_v51 }
 0x295   : > { %v2555_v18 = vshrl.u32 %v7269_v50, %v2552_v29  ;;  %v2558_v19 = vshrl.u32 %v7246_v12, %v2552_v29  ;;  %v2493_v62 = vadd.s32 %v2492_v3, %v2488_v23  ;;  %v2561_v44 = vshrl.u32 %v7235_v1, %v2552_v29 }
 0x296   : > { %v2413_v14 = vxor.u32 2147483648, %v2412_v8  ;;  %v2563_v54 = vshll.u32 %v7235_v1, %v2551_v42  ;;  %v2564_v21 = vshrl.u32 %v7223_v48, %v2552_v29  ;;  %v2566_v24 = vshll.u32 %v7223_v48, %v2551_v42 }
 0x297   : > { %v2556_v33 = vor.u32 %v2555_v18, %v2554_v11  ;;  %v2559_v9 = vor.u32 %v2558_v19, %v2557_v40  ;;  %v2494_v46 = vadd.s32 536870912, %v2493_v62  ;;  %v2562_v22 = vor.u32 %v2561_v44, %v2560_v47 }
 0x298   : > { %v2414_v0 = vsel %vm2331_vm15, %v2413_v14, %v2412_v8  ;;  %v2567_v45 = vshrl.u32 %v7224_v55, %v2552_v29  ;;  %v2418_v20 = vsel %vm6218_vm8, 0, %v2416_v16  ;;  %v2565_v13 = vor.u32 %v2564_v21, %v2563_v54 }
 0x299   : > { %v2417_v36 = vsel %vm6218_vm8, %v5919_v52, %v2414_v0  ;;  %v2645_v23 = vshrl.u32 %v2644_v49, 23  ;;  %v2495_v59 = vshrl.u32 %v2494_v46, 30  ;;  %vm2569_vm9 = vcmp.lt.s32.totalorder %v6242_v17, 1 }
 0x29a   : > { %4316 = vcosq.f32 %v2417_v36  ;;  %v2568_v28 = vor.u32 %v2567_v45, %v2566_v24  ;;  %v2553_v42 = vshrl.u32 %v7239_v7, %v2552_v29  ;;  %vm2572_vm11 = vcmp.lt.s32.totalorder %v6242_v17, 4 }
 0x29b   : > { %4318 = vsinq.f32 %v2417_v36  ;;  %v2577_v57 = vsel %vm2569_vm9, %v2556_v33, %v2559_v9  ;;  %v2496_v60 = vshll.u32 %v2495_v59, 30  ;;  %vm2571_vm12 = vcmp.lt.s32.totalorder %v6242_v17, 3 }
 0x29c   : > { %v2574_v38 = vsel %vm2572_vm11, %v2562_v22, 2102212464  ;;  %v2578_v51 = vsel %vm2572_vm11, %v2565_v13, 920167782  ;;  %vm2570_vm13 = vcmp.lt.s32.totalorder %v6242_v17, 2  ;;  %v2581_v49 = vsel %vm2569_vm9, %v2559_v9, %v2562_v22 }
 0x29d   : > { %v2579_v6 = vsel %vm2571_vm12, %v2562_v22, %v2578_v51  ;;  %v2582_v16 = vsel %vm2572_vm11, %v2568_v28, 1326507024  ;;  %v2422_v8 = vadd.s32 3, %v2418_v20  ;;  %v6270_v11 = vsub.s32 %v2493_v62, %v2496_v60 }
 0x29e   : > { %v2573_v40 = vsel %vm2569_vm9, %v2553_v42, %v2556_v33  ;;  %v2580_v29 = vsel %vm2570_vm13, %v2577_v57, %v2579_v6  ;;  %v2575_v3 = vsel %vm2571_vm12, %v2559_v9, %v2574_v38  ;;  %v2583_v18 = vsel %vm2571_vm12, %v2565_v13, %v2582_v16 }
 0x29f   : > { %v6275_v19 = vmul.u32.u64.low %v6224_v4, %v2580_v29  ;;  %v6276_v47 = vmul.u32.u64.high %v6224_v4, %v2580_v29, %v6275_v19  ;;  %v6281_v14 = vmul.f32 %v5876_v39, %v4610_v25  ;;  %v6285_v44 = vmul.f32 %v5863_v41, %v4622_v30 }
 0x2a0   : > { %v2499_v62 = vsub.s32 0, %v6270_v11  ;;  %v2584_v54 = vsel %vm2570_vm13, %v2581_v49, %v2583_v18  ;;  %v2519_v33 = vsub.s32 4, %v2495_v59  ;;  %v4000_v24 = vadd.s32 4294967169, %v2645_v23 }
 0x2a1   : > { %v6291_v9 = vmul.u32.u64.low %v6224_v4, %v2584_v54  ;;  %v6292_v21 = vmul.u32.u64.high %v6224_v4, %v2584_v54, %v6291_v9  ;;  %v6296_v0 = vmul.f32 %v5876_v39, %v4622_v30  ;;  %v2423_v25 = vand.u32 3, %v2422_v8 }
 0x2a2   : > { %v3993_v46 = vmin.u32 %v2499_v62, %v6270_v11  ;;  %v2576_v22 = vsel %vm2570_vm13, %v2573_v40, %v2575_v3  ;;  %v6303_v45 = vmul.f32 %v5863_v41, %v4624_v31  ;;  %v6307_v36 = vadd.f32 %v6045_v61, %v4962_v53 }
 0x2a3   : > { %v2595_v20 = vadd.s32 1, %v6276_v47  ;;  %v2651_v13 = vadd.s32 1, %v4000_v24  ;;  %vm2421_vm14 = vweird.f32 %v5919_v52  ;;  %v7273_v30 = vand.u32 2147483647, %v6013_v34 }
 0x2a4   : > { %vm2435_vm0 = vcmp.lt.s32.totalorder %v6013_v34, 0  ;;  %v2501_v17 = vclz %v3993_v46  ;;  %v2641_v41 = vand.u32 2147483647, %v6149_v26  ;;  %v2592_v28 = vmul.u32 %v6224_v4, %v2576_v22 }
 0x2a5   : > { %vm6313_vm15 = vcmp.le.f32.partialorder %v7273_v30, 0.7853982  ;;  %v2520_v61 = vsel %vm2435_vm0, %v2519_v33, %v2495_v59  ;;  %vm2594_vm1 = vc.u32 %v6292_v21, %v6275_v19  ;;  %vm2652_vm2 = vcmp.gt.s32.totalorder %v2651_v13, 0 }
 0x2a6   : > { %vm2424_vm3 = vcmp.lt.s32.totalorder %v2423_v25, 2  ;;  %v3994_v42 = vadd.s32 4294967294, %v2501_v17  ;;  %v2596_v57 = vsel %vm2594_vm1, %v2595_v20, %v6276_v47  ;;  %v2653_v60 = vsel %vm2652_vm2, %v2651_v13, 0 }
 0x2a7   : > { %v4317_v38 = vpop.eup %4316  ;;  %vm2425_vm4 = vcmp.eq.s32.totalorder %v2423_v25, 0  ;;  %vm2428_vm5 = vcmp.eq.s32.totalorder %v2423_v25, 2  ;;  %v2597_v51 = vadd.s32 %v2596_v57, %v2592_v28  ;;  %v2655_v6 = vand.u32 31, %v2653_v60 }
 0x2a8   : > { %v4319_v49 = vpop.eup %4318  ;;  %v2429_v16 = vxor.u32 2147483648, %v4317_v38  ;;  %vm3995_vm6 = vcmp.lt.s32.totalorder %v3994_v42, 0  ;;  %v2522_v4 = vsel %vm6313_vm15, 0, %v2520_v61  ;;  %v2648_v59 = vand.u32 8388607, %v2641_v41 }
 0x2a9   : > { %v2426_v8 = vxor.u32 2147483648, %v4319_v49  ;;  %v2504_v40 = vsel %vm3995_vm6, 0, %v3994_v42  ;;  %v2598_v29 = vadd.s32 536870912, %v2597_v51  ;;  %v2656_v3 = vsub.s32 32, %v2655_v6 }
 0x2aa   : > { %v2430_v18 = vsel %vm2428_vm5, %v2429_v16, %v4319_v49  ;;  %v2489_v47 = vadd.s32 %v6212_v15, %v6209_v35  ;;  %v2505_v62 = vsub.s32 32, %v2504_v40  ;;  %v2509_v54 = vsub.s32 4294967266, %v2504_v40 }
 0x2ab   : > { %v2427_v33 = vsel %vm2425_vm4, %v4317_v38, %v2426_v8  ;;  %v2506_v9 = vshll.u32 %v6270_v11, %v2504_v40  ;;  %v6333_v24 = vadd.s32 3, %v2522_v4  ;;  %v6335_v46 = vshrl.u32 %v2598_v29, 30 }
 0x2ac   : > { %v2431_v22 = vsel %vm2424_vm3, %v2427_v33, %v2430_v18  ;;  %v2507_v20 = vshrl.u32 %v2489_v47, %v2505_v62  ;;  %v2510_v13 = vadd.s32 127, %v2509_v54  ;;  %v2659_v30 = vshrl.u32 %v7269_v50, %v2656_v3 }
 0x2ad   : > { %v2432_v35 = vsel %vm2421_vm14, nan, %v2431_v22  ;;  %v2600_v15 = vshll.u32 %v6335_v46, 30  ;;  %v2649_v17 = vor.u32 8388608, %v2648_v59  ;;  %v2745_v61 = vand.u32 2147483647, %v6307_v36 }
 0x2ae   : > { %v2508_v28 = vor.u32 %v2507_v20, %v2506_v9  ;;  %v2511_v11 = vshll.u32 %v2510_v13, 23  ;;  %v2658_v42 = vshll.u32 %v7239_v7, %v2655_v6  ;;  %v2662_v57 = vshrl.u32 %v7246_v12, %v2656_v3  ;;  %3787 = vst [vmem:[%s4945_s10 + $0x90] sm:$0xff] %v2432_v35 }
 0x2af   : > { %v6346_v25 = vsub.s32 %v2597_v51, %v2600_v15  ;;  %v2661_v38 = vshll.u32 %v7269_v50, %v2655_v6  ;;  %v2665_v49 = vshrl.u32 %v7235_v1, %v2656_v3  ;;  %v2748_v52 = vand.u32 2139095040, %v6307_v36 }
 0x2b0   : > { %v2512_v16 = vor.u32 4788187, %v2511_v11  ;;  %v2654_v4 = vshrl.u32 %v2653_v60, 5  ;;  %v2660_v59 = vor.u32 %v2659_v30, %v2658_v42  ;;  %v2664_v8 = vshll.u32 %v7246_v12, %v2655_v6 }
 0x2b1   : > { %v2515_v40 = vcvt.s32.f32 %v2508_v28  ;;  %v2603_v29 = vsub.s32 0, %v6346_v25  ;;  %v2663_v18 = vor.u32 %v2662_v57, %v2661_v38  ;;  %v2667_v47 = vshll.u32 %v7235_v1, %v2655_v6 }
 0x2b2   : > { %v2513_v62 = vand.u32 2147483647, %v2512_v16  ;;  %v2668_v51 = vshrl.u32 %v7223_v48, %v2656_v3  ;;  %v2670_v54 = vshll.u32 %v7223_v48, %v2655_v6  ;;  %v2671_v33 = vshrl.u32 %v7224_v55, %v2656_v3 }
 0x2b3   : > { %v2593_v9 = vadd.s32 %v6275_v19, %v6292_v21  ;;  %v3997_v60 = vmin.u32 %v2603_v29, %v6346_v25  ;;  %v2666_v22 = vor.u32 %v2665_v49, %v2664_v8  ;;  %v6360_v20 = vshll.u32 %v2649_v17, 8 }
 0x2b4   : > { %v2516_v13 = vmul.f32 %v2515_v40, %v2513_v62  ;;  %v2669_v30 = vor.u32 %v2668_v51, %v2667_v47  ;;  %v2672_v35 = vor.u32 %v2671_v33, %v2670_v54  ;;  %v2749_v15 = vshrl.u32 %v2748_v52, 23 }
 0x2b5   : > { %v2605_v28 = vclz %v3997_v60  ;;  %v2623_v11 = vsub.s32 4, %v6335_v46  ;;  %v2657_v42 = vshrl.u32 %v7239_v7, %v2656_v3  ;;  %vm2673_vm7 = vcmp.lt.s32.totalorder %v2654_v4, 1 }
 0x2b6   : > { %v2517_v6 = vxor.u32 2147483648, %v2516_v13  ;;  %vm2674_vm8 = vcmp.lt.s32.totalorder %v2654_v4, 2  ;;  %vm2676_vm10 = vcmp.lt.s32.totalorder %v2654_v4, 4  ;;  %v2681_v19 = vsel %vm2673_vm7, %v2660_v59, %v2663_v18 }
 0x2b7   : > { %v3998_v21 = vadd.s32 4294967294, %v2605_v28  ;;  %vm2675_vm9 = vcmp.lt.s32.totalorder %v2654_v4, 3  ;;  %v2678_v57 = vsel %vm2676_vm10, %v2666_v22, 2102212464  ;;  %v2682_v17 = vsel %vm2676_vm10, %v2669_v30, 920167782 }
 0x2b8   : > { %v2518_v38 = vsel %vm2435_vm0, %v2517_v6, %v2516_v13  ;;  %v2677_v49 = vsel %vm2673_vm7, %v2657_v42, %v2660_v59  ;;  %v2683_v52 = vsel %vm2675_vm9, %v2666_v22, %v2682_v17  ;;  %v2686_v16 = vsel %vm2676_vm10, %v2672_v35, 1326507024 }
 0x2b9   : > { %v2521_v3 = vsel %vm6313_vm15, %v6013_v34, %v2518_v38  ;;  %vm3999_vm11 = vcmp.lt.s32.totalorder %v3998_v21, 0  ;;  %v2684_v8 = vsel %vm2674_vm8, %v2681_v19, %v2683_v52  ;;  %v2685_v40 = vsel %vm2673_vm7, %v2663_v18, %v2666_v22 }
 0x2ba   : > { %4320 = vcosq.f32 %v2521_v3  ;;  %v2608_v29 = vsel %vm3999_vm11, 0, %v3998_v21  ;;  %v2679_v47 = vsel %vm2675_vm9, %v2663_v18, %v2678_v57  ;;  %v2687_v62 = vsel %vm2675_vm9, %v2669_v30, %v2686_v16 }
 0x2bb   : > { %4322 = vsinq.f32 %v2521_v3  ;;  %v2609_v51 = vsub.s32 32, %v2608_v29  ;;  %v2610_v54 = vshll.u32 %v6346_v25, %v2608_v29  ;;  %v2613_v59 = vsub.s32 4294967266, %v2608_v29 }
 0x2bc   : > { %v2688_v33 = vsel %vm2674_vm8, %v2685_v40, %v2687_v62  ;;  %v6376_v60 = vmul.u32.u64.low %v6360_v20, %v2684_v8  ;;  %v6377_v23 = vmul.u32.u64.high %v6360_v20, %v2684_v8, %v6376_v60  ;;  %v4004_v13 = vadd.s32 4294967169, %v2749_v15 }
 0x2bd   : > { %v2611_v35 = vshrl.u32 %v2593_v9, %v2609_v51  ;;  %v2614_v28 = vadd.s32 127, %v2613_v59  ;;  %v6381_v22 = vmul.u32.u64.low %v6360_v20, %v2688_v33  ;;  %v6382_v42 = vmul.u32.u64.high %v6360_v20, %v2688_v33, %v6381_v22 }
 0x2be   : > { %v6386_v18 = vadd.f32 %v6127_v10, %v4962_v53  ;;  %vm2539_vm12 = vcmp.lt.s32.totalorder %v6048_v56, 0  ;;  %v2680_v25 = vsel %vm2674_vm8, %v2677_v49, %v2679_v47  ;;  %v2755_v30 = vadd.s32 1, %v4004_v13 }
 0x2bf   : > { %v6392_v6 = vadd.f32 %v6131_v37, %v5136_v58  ;;  %v2612_v15 = vor.u32 %v2611_v35, %v2610_v54  ;;  %v2615_v9 = vshll.u32 %v2614_v28, 23  ;;  %v2624_v19 = vsel %vm2539_vm12, %v2623_v11, %v6335_v46 }
 0x2c0   : > { %v2527_v21 = vand.u32 3, %v6333_v24  ;;  %vm6400_vm13 = vcmp.le.f32.partialorder %v2537_v32, 0.7853982  ;;  %v2699_v10 = vadd.s32 1, %v6377_v23  ;;  %vm2756_vm14 = vcmp.gt.s32.totalorder %v2755_v30, 0 }
 0x2c1   : > { %v2616_v4 = vor.u32 4788187, %v2615_v9  ;;  %v2696_v37 = vmul.u32 %v6360_v20, %v2680_v25  ;;  %vm2698_vm15 = vc.u32 %v6382_v42, %v6376_v60  ;;  %v2752_v46 = vand.u32 8388607, %v2745_v61 }
 0x2c2   : > { %v2626_v24 = vsel %vm6400_vm13, 0, %v2624_v19  ;;  %v2700_v32 = vsel %vm2698_vm15, %v2699_v10, %v6377_v23  ;;  %v2757_v11 = vsel %vm2756_vm14, %v2755_v30, 0  ;;  %v2852_v57 = vand.u32 2139095040, %v6386_v18 }
 0x2c3   : > { %v2617_v17 = vand.u32 2147483647, %v2616_v4  ;;  %v2619_v38 = vcvt.s32.f32 %v2612_v15  ;;  %v2701_v49 = vadd.s32 %v2700_v32, %v2696_v37  ;;  %v2759_v52 = vand.u32 31, %v2757_v11 }
 0x2c4   : > { %v6416_v20 = vadd.f32 %v6135_v63, %v5136_v58  ;;  %v6420_v16 = vadd.f32 %v6145_v27, %v5316_v43  ;;  %vm2525_vm0 = vweird.f32 %v6013_v34  ;;  %vm2528_vm1 = vcmp.lt.s32.totalorder %v2527_v21, 2 }
 0x2c5   : > { %vm2529_vm2 = vcmp.eq.s32.totalorder %v2527_v21, 0  ;;  %v2620_v3 = vmul.f32 %v2619_v38, %v2617_v17  ;;  %v2702_v8 = vadd.s32 536870912, %v2701_v49  ;;  %v2760_v40 = vsub.s32 32, %v2759_v52 }
 0x2c6   : > { %vm2532_vm3 = vcmp.eq.s32.totalorder %v2527_v21, 2  ;;  %v2630_v29 = vadd.s32 3, %v2626_v24  ;;  %v2753_v47 = vor.u32 8388608, %v2752_v46  ;;  %v2853_v62 = vshrl.u32 %v2852_v57, 23 }
 0x2c7   : > { %v4321_v51 = vpop.eup %4320  ;;  %v2621_v54 = vxor.u32 2147483648, %v2620_v3  ;;  %v6423_v59 = vshrl.u32 %v2702_v8, 30  ;;  %v6425_v58 = vshrl.u32 %v2757_v11, 5  ;;  %v2762_v63 = vshll.u32 %v7239_v7, %v2759_v52 }
 0x2c8   : > { %v4323_v27 = vpop.eup %4322  ;;  %v2533_v33 = vxor.u32 2147483648, %v4321_v51  ;;  %v2763_v23 = vshrl.u32 %v7269_v50, %v2760_v40  ;;  %v2766_v13 = vshrl.u32 %v7246_v12, %v2760_v40  ;;  %v2769_v35 = vshrl.u32 %v7235_v1, %v2760_v40 }
 0x2c9   : > { %v2530_v28 = vxor.u32 2147483648, %v4323_v27  ;;  %v2622_v22 = vsel %vm2539_vm12, %v2621_v54, %v2620_v3  ;;  %v2704_v25 = vshll.u32 %v6423_v59, 30  ;;  %v2772_v30 = vshrl.u32 %v7223_v48, %v2760_v40 }
 0x2ca   : > { %v2534_v15 = vsel %vm2532_vm3, %v2533_v33, %v4323_v27  ;;  %v2625_v9 = vsel %vm6400_vm13, %v6048_v56, %v2622_v22  ;;  %v2765_v19 = vshll.u32 %v7269_v50, %v2759_v52  ;;  %v2768_v10 = vshll.u32 %v7246_v12, %v2759_v52 }
 0x2cb   : > { %v2531_v4 = vsel %vm2529_vm2, %v4321_v51, %v2530_v28  ;;  %4324 = vcosq.f32 %v2625_v9  ;;  %v6442_v37 = vsub.s32 %v2701_v49, %v2704_v25  ;;  %v2771_v46 = vshll.u32 %v7235_v1, %v2759_v52 }
 0x2cc   : > { %v2535_v24 = vsel %vm2528_vm1, %v2531_v4, %v2534_v15  ;;  %4326 = vsinq.f32 %v2625_v9  ;;  %v2764_v32 = vor.u32 %v2763_v23, %v2762_v63  ;;  %v2767_v11 = vor.u32 %v2766_v13, %v2765_v19 }
 0x2cd   : > { %v2536_v53 = vsel %vm2525_vm0, nan, %v2535_v24  ;;  %v2707_v57 = vsub.s32 0, %v6442_v37  ;;  %v2770_v17 = vor.u32 %v2769_v35, %v2768_v10  ;;  %v2773_v38 = vor.u32 %v2772_v30, %v2771_v46 }
 0x2ce   : > { %v6449_v3 = vand.u32 3, %v2630_v29  ;;  %v2774_v8 = vshll.u32 %v7223_v48, %v2759_v52  ;;  %v2775_v49 = vshrl.u32 %v7224_v55, %v2760_v40  ;;  %v2793_v51 = vshll.u32 %v2753_v47, 8  ;;  %3788 = vst [vmem:[%s4945_s10 + $0x98] sm:$0xff] %v2536_v53 }
 0x2cf   : > { %vm2643_vm4 = vcmp.lt.s32.totalorder %v6149_v26, 0  ;;  %v4001_v21 = vmin.u32 %v2707_v57, %v6442_v37  ;;  %vm2777_vm5 = vcmp.lt.s32.totalorder %v6425_v58, 1  ;;  %vm2780_vm6 = vcmp.lt.s32.totalorder %v6425_v58, 4 }
 0x2d0   : > { %v4008_v34 = vadd.s32 4294967169, %v2853_v62  ;;  %v2761_v54 = vshrl.u32 %v7239_v7, %v2760_v40  ;;  %v2776_v63 = vor.u32 %v2775_v49, %v2774_v8  ;;  %v2785_v29 = vsel %vm2777_vm5, %v2764_v32, %v2767_v11 }
 0x2d1   : > { %v2786_v52 = vsel %vm2780_vm6, %v2773_v38, 920167782  ;;  %v2709_v27 = vclz %v4001_v21  ;;  %v2727_v47 = vsub.s32 4, %v6423_v59  ;;  %vm2779_vm7 = vcmp.lt.s32.totalorder %v6425_v58, 3 }
 0x2d2   : > { %v2782_v33 = vsel %vm2780_vm6, %v2770_v17, 2102212464  ;;  %vm2778_vm8 = vcmp.lt.s32.totalorder %v6425_v58, 2  ;;  %v2787_v23 = vsel %vm2779_vm7, %v2770_v17, %v2786_v52  ;;  %v2789_v13 = vsel %vm2777_vm5, %v2767_v11, %v2770_v17 }
 0x2d3   : > { %v2790_v62 = vsel %vm2780_vm6, %v2776_v63, 1326507024  ;;  %v4002_v35 = vadd.s32 4294967294, %v2709_v27  ;;  %v2781_v40 = vsel %vm2777_vm5, %v2761_v54, %v2764_v32  ;;  %v2788_v28 = vsel %vm2778_vm8, %v2785_v29, %v2787_v23 }
 0x2d4   : > { %v2791_v22 = vsel %vm2779_vm7, %v2773_v38, %v2790_v62  ;;  %vm6472_vm10 = vcmp.le.f32.partialorder %v2641_v41, 0.7853982  ;;  %v2783_v30 = vsel %vm2779_vm7, %v2767_v11, %v2782_v33  ;;  %vm2629_vm9 = vweird.f32 %v6048_v56 }
 0x2d5   : > { %v2792_v15 = vsel %vm2778_vm8, %v2789_v13, %v2791_v22  ;;  %v6478_v9 = vmul.u32.u64.low %v2793_v51, %v2788_v28  ;;  %v6479_v19 = vmul.u32.u64.high %v2793_v51, %v2788_v28, %v6478_v9  ;;  %vm4003_vm11 = vcmp.lt.s32.totalorder %v4002_v35, 0 }
 0x2d6   : > { %v6483_v10 = vmul.u32.u64.low %v2793_v51, %v2792_v15  ;;  %v6484_v4 = vmul.u32.u64.high %v2793_v51, %v2792_v15, %v6483_v10  ;;  %v2859_v46 = vadd.s32 1, %v4008_v34  ;;  %vm2633_vm12 = vcmp.eq.s32.totalorder %v6449_v3, 0 }
 0x2d7   : > { %vm2636_vm13 = vcmp.eq.s32.totalorder %v6449_v3, 2  ;;  %v2697_v41 = vadd.s32 %v6376_v60, %v6382_v42  ;;  %v2712_v24 = vsel %vm4003_vm11, 0, %v4002_v35  ;;  %v2784_v53 = vsel %vm2778_vm8, %v2781_v40, %v2783_v30 }
 0x2d8   : > { %v2713_v32 = vsub.s32 32, %v2712_v24  ;;  %v2717_v11 = vsub.s32 4294967266, %v2712_v24  ;;  %vm2860_vm14 = vcmp.gt.s32.totalorder %v2859_v46, 0  ;;  %v4325_v57 = vpop.eup %4324  ;;  %v2728_v17 = vsel %vm2643_vm4, %v2727_v47, %v6423_v59 }
 0x2d9   : > { %v2803_v38 = vadd.s32 1, %v6479_v19  ;;  %v2849_v8 = vand.u32 2147483647, %v6386_v18  ;;  %v2861_v49 = vsel %vm2860_vm14, %v2859_v46, 0  ;;  %v4327_v21 = vpop.eup %4326  ;;  %v2637_v34 = vxor.u32 2147483648, %v4325_v57 }
 0x2da   : > { %v2714_v60 = vshll.u32 %v6442_v37, %v2712_v24  ;;  %v2715_v42 = vshrl.u32 %v2697_v41, %v2713_v32  ;;  %v2718_v54 = vadd.s32 127, %v2717_v11  ;;  %v2634_v63 = vxor.u32 2147483648, %v4327_v21 }
 0x2db   : > { %v2800_v58 = vmul.u32 %v2793_v51, %v2784_v53  ;;  %vm2802_vm15 = vc.u32 %v6484_v4, %v6478_v9  ;;  %v2863_v29 = vand.u32 31, %v2861_v49  ;;  %v2638_v59 = vsel %vm2636_vm13, %v2637_v34, %v4327_v21 }
 0x2dc   : > { %v2716_v52 = vor.u32 %v2715_v42, %v2714_v60  ;;  %v2719_v27 = vshll.u32 %v2718_v54, 23  ;;  %v2804_v47 = vsel %vm2802_vm15, %v2803_v38, %v6479_v19  ;;  %vm2632_vm0 = vcmp.lt.s32.totalorder %v6449_v3, 2 }
 0x2dd   : > { %v2635_v37 = vsel %vm2633_vm12, %v4325_v57, %v2634_v63  ;;  %v2805_v33 = vadd.s32 %v2804_v47, %v2800_v58  ;;  %v2864_v23 = vsub.s32 32, %v2863_v29  ;;  %v2730_v62 = vsel %vm6472_vm10, 0, %v2728_v17 }
 0x2de   : > { %v2639_v51 = vsel %vm2632_vm0, %v2635_v37, %v2638_v59  ;;  %v2720_v13 = vor.u32 4788187, %v2719_v27  ;;  %v2856_v35 = vand.u32 8388607, %v2849_v8  ;;  %v2956_v3 = vand.u32 2139095040, %v6392_v6 }
 0x2df   : > { %v2640_v40 = vsel %vm2629_vm9, nan, %v2639_v51  ;;  %v2806_v28 = vadd.s32 536870912, %v2805_v33  ;;  %v2867_v22 = vshrl.u32 %v7269_v50, %v2864_v23  ;;  %v2723_v15 = vcvt.s32.f32 %v2716_v52 }
 0x2e0   : > { %v2721_v30 = vand.u32 2147483647, %v2720_v13  ;;  %v2870_v19 = vshrl.u32 %v7246_v12, %v2864_v23  ;;  %v2873_v10 = vshrl.u32 %v7235_v1, %v2864_v23  ;;  %3789 = vst [vmem:[%s4945_s10 + $0xa0] sm:$0xff] %v2640_v40  ;;  %v2866_v41 = vshll.u32 %v7239_v7, %v2863_v29 }
 0x2e1   : > { %v2807_v46 = vshrl.u32 %v2806_v28, 30  ;;  %v2869_v24 = vshll.u32 %v7269_v50, %v2863_v29  ;;  %v2876_v56 = vshrl.u32 %v7223_v48, %v2864_v23  ;;  %v2862_v11 = vshrl.u32 %v2861_v49, 5 }
 0x2e2   : > { %v2724_v32 = vmul.f32 %v2723_v15, %v2721_v30  ;;  %v2872_v53 = vshll.u32 %v7246_v12, %v2863_v29  ;;  %v2875_v57 = vshll.u32 %v7235_v1, %v2863_v29  ;;  %v2868_v38 = vor.u32 %v2867_v22, %v2866_v41 }
 0x2e3   : > { %v2808_v17 = vshll.u32 %v2807_v46, 30  ;;  %v2871_v21 = vor.u32 %v2870_v19, %v2869_v24  ;;  %v2879_v34 = vshrl.u32 %v7224_v55, %v2864_v23  ;;  %v2878_v63 = vshll.u32 %v7223_v48, %v2863_v29 }
 0x2e4   : > { %v2725_v60 = vxor.u32 2147483648, %v2724_v32  ;;  %v2874_v42 = vor.u32 %v2873_v10, %v2872_v53  ;;  %v2877_v54 = vor.u32 %v2876_v56, %v2875_v57  ;;  %v2734_v58 = vadd.s32 3, %v2730_v62 }
 0x2e5   : > { %v6524_v59 = vsub.s32 %v2805_v33, %v2808_v17  ;;  %v2857_v52 = vor.u32 8388608, %v2856_v35  ;;  %v2957_v27 = vshrl.u32 %v2956_v3, 23  ;;  %v2865_v47 = vshrl.u32 %v7239_v7, %v2864_v23 }
 0x2e6   : > { %v2726_v49 = vsel %vm2643_vm4, %v2725_v60, %v2724_v32  ;;  %v2880_v37 = vor.u32 %v2879_v34, %v2878_v63  ;;  %vm2881_vm1 = vcmp.lt.s32.totalorder %v2862_v11, 1  ;;  %vm2883_vm2 = vcmp.lt.s32.totalorder %v2862_v11, 3 }
 0x2e7   : > { %v2729_v51 = vsel %vm6472_vm10, %v6149_v26, %v2726_v49  ;;  %v2811_v13 = vsub.s32 0, %v6524_v59  ;;  %vm2884_vm3 = vcmp.lt.s32.totalorder %v2862_v11, 4  ;;  %v2889_v33 = vsel %vm2881_vm1, %v2868_v38, %v2871_v21 }
 0x2e8   : > { %4328 = vcosq.f32 %v2729_v51  ;;  %v2886_v29 = vsel %vm2884_vm3, %v2874_v42, 2102212464  ;;  %v2890_v62 = vsel %vm2884_vm3, %v2877_v54, 920167782  ;;  %vm2882_vm4 = vcmp.lt.s32.totalorder %v2862_v11, 2 }
 0x2e9   : > { %4330 = vsinq.f32 %v2729_v51  ;;  %v4005_v35 = vmin.u32 %v2811_v13, %v6524_v59  ;;  %v2891_v23 = vsel %vm2883_vm2, %v2874_v42, %v2890_v62  ;;  %v2893_v25 = vsel %vm2881_vm1, %v2871_v21, %v2874_v42 }
 0x2ea   : > { %v2892_v40 = vsel %vm2882_vm4, %v2889_v33, %v2891_v23  ;;  %v2894_v28 = vsel %vm2884_vm3, %v2880_v37, 1326507024  ;;  %v2897_v22 = vshll.u32 %v2857_v52, 8  ;;  %v2831_v30 = vsub.s32 4, %v2807_v46 }
 0x2eb   : > { %v2813_v3 = vclz %v4005_v35  ;;  %v2885_v15 = vsel %vm2881_vm1, %v2865_v47, %v2868_v38  ;;  %v2887_v19 = vsel %vm2883_vm2, %v2871_v21, %v2886_v29  ;;  %v2895_v10 = vsel %vm2883_vm2, %v2877_v54, %v2894_v28 }
 0x2ec   : > { %v6541_v41 = vmul.u32.u64.low %v2897_v22, %v2892_v40  ;;  %v6542_v24 = vmul.u32.u64.high %v2897_v22, %v2892_v40, %v6541_v41  ;;  %v4012_v56 = vadd.s32 4294967169, %v2957_v27  ;;  %v6547_v32 = vadd.f32 %v6281_v14, %v5316_v43 }
 0x2ed   : > { %v2735_v53 = vand.u32 3, %v2734_v58  ;;  %v4006_v57 = vadd.s32 4294967294, %v2813_v3  ;;  %v2896_v17 = vsel %vm2882_vm4, %v2893_v25, %v2895_v10  ;;  %vm2747_vm5 = vcmp.lt.s32.totalorder %v6307_v36, 0 }
 0x2ee   : > { %v6551_v38 = vmul.u32.u64.low %v2897_v22, %v2896_v17  ;;  %v6552_v34 = vmul.u32.u64.high %v2897_v22, %v2896_v17, %v6551_v38  ;;  %v2963_v21 = vadd.s32 1, %v4012_v56  ;;  %vm6556_vm6 = vcmp.le.f32.partialorder %v2745_v61, 0.7853982 }
 0x2ef   : > { %vm4007_vm7 = vcmp.lt.s32.totalorder %v4006_v57, 0  ;;  %v2832_v43 = vsel %vm2747_vm5, %v2831_v30, %v2807_v46  ;;  %v2888_v14 = vsel %vm2882_vm4, %v2885_v15, %v2887_v19  ;;  %v2907_v54 = vadd.s32 1, %v6542_v24 }
 0x2f0   : > { %v2816_v42 = vsel %vm4007_vm7, 0, %v4006_v57  ;;  %v2953_v63 = vand.u32 2147483647, %v6392_v6  ;;  %vm2964_vm8 = vcmp.gt.s32.totalorder %v2963_v21, 0  ;;  %vm2736_vm10 = vcmp.lt.s32.totalorder %v2735_v53, 2 }
 0x2f1   : > { %v2801_v58 = vadd.s32 %v6478_v9, %v6484_v4  ;;  %v2817_v61 = vsub.s32 32, %v2816_v42  ;;  %v2821_v52 = vsub.s32 4294967266, %v2816_v42  ;;  %v2965_v27 = vsel %vm2964_vm8, %v2963_v21, 0 }
 0x2f2   : > { %vm2733_vm9 = vweird.f32 %v6149_v26  ;;  %v2834_v46 = vsel %vm6556_vm6, 0, %v2832_v43  ;;  %v2904_v11 = vmul.u32 %v2897_v22, %v2888_v14  ;;  %vm2906_vm11 = vc.u32 %v6552_v34, %v6541_v41 }
 0x2f3   : > { %v2967_v49 = vand.u32 31, %v2965_v27  ;;  %v2818_v47 = vshll.u32 %v6524_v59, %v2816_v42  ;;  %v2819_v37 = vshrl.u32 %v2801_v58, %v2817_v61  ;;  %v2822_v51 = vadd.s32 127, %v2821_v52 }
 0x2f4   : > { %v2908_v13 = vsel %vm2906_vm11, %v2907_v54, %v6542_v24  ;;  %vm2737_vm12 = vcmp.eq.s32.totalorder %v2735_v53, 0  ;;  %vm2740_vm13 = vcmp.eq.s32.totalorder %v2735_v53, 2  ;;  %v6574_v35 = vadd.s32 3, %v2834_v46 }
 0x2f5   : > { %v2909_v9 = vadd.s32 %v2908_v13, %v2904_v11  ;;  %v2968_v4 = vsub.s32 32, %v2967_v49  ;;  %v4329_v29 = vpop.eup %4328  ;;  %v2820_v33 = vor.u32 %v2819_v37, %v2818_v47  ;;  %v2823_v62 = vshll.u32 %v2822_v51, 23 }
 0x2f6   : > { %v2960_v23 = vand.u32 8388607, %v2953_v63  ;;  %v4331_v40 = vpop.eup %4330  ;;  %v2741_v25 = vxor.u32 2147483648, %v4329_v29  ;;  %v2966_v59 = vshrl.u32 %v2965_v27, 5  ;;  %v3060_v22 = vand.u32 2139095040, %v6416_v20 }
 0x2f7   : > { %v2910_v28 = vadd.s32 536870912, %v2909_v9  ;;  %v2738_v3 = vxor.u32 2147483648, %v4331_v40  ;;  %v2824_v30 = vor.u32 4788187, %v2823_v62  ;;  %v2971_v15 = vshrl.u32 %v7269_v50, %v2968_v4 }
 0x2f8   : > { %v2976_v19 = vshll.u32 %v7246_v12, %v2967_v49  ;;  %v2742_v10 = vsel %vm2740_vm13, %v2741_v25, %v4331_v40  ;;  %v2827_v24 = vcvt.s32.f32 %v2820_v33  ;;  %v2977_v57 = vshrl.u32 %v7235_v1, %v2968_v4 }
 0x2f9   : > { %v6582_v56 = vshrl.u32 %v2910_v28, 30  ;;  %v2739_v17 = vsel %vm2737_vm12, %v4329_v29, %v2738_v3  ;;  %v2825_v38 = vand.u32 2147483647, %v2824_v30  ;;  %v2974_v21 = vshrl.u32 %v7246_v12, %v2968_v4 }
 0x2fa   : > { %v2980_v43 = vshrl.u32 %v7223_v48, %v2968_v4  ;;  %v2743_v14 = vsel %vm2736_vm10, %v2739_v17, %v2742_v10  ;;  %v2970_v54 = vshll.u32 %v7239_v7, %v2967_v49  ;;  %v2973_v58 = vshll.u32 %v7269_v50, %v2967_v49 }
 0x2fb   : > { %v2912_v42 = vshll.u32 %v6582_v56, 30  ;;  %v2744_v61 = vsel %vm2733_vm9, nan, %v2743_v14  ;;  %v2828_v52 = vmul.f32 %v2827_v24, %v2825_v38  ;;  %v2978_v27 = vor.u32 %v2977_v57, %v2976_v19 }
 0x2fc   : > { %v2979_v46 = vshll.u32 %v7235_v1, %v2967_v49  ;;  %v2961_v47 = vor.u32 8388608, %v2960_v23  ;;  %v2972_v37 = vor.u32 %v2971_v15, %v2970_v54  ;;  %v2983_v53 = vshrl.u32 %v7224_v55, %v2968_v4  ;;  %3790 = vst [vmem:[%s4945_s10 + $0xa8] sm:$0xff] %v2744_v61 }
 0x2fd   : > { %v6595_v11 = vsub.s32 %v2909_v9, %v2912_v42  ;;  %v2829_v51 = vxor.u32 2147483648, %v2828_v52  ;;  %v2975_v13 = vor.u32 %v2974_v21, %v2973_v58  ;;  %v2982_v33 = vshll.u32 %v7223_v48, %v2967_v49 }
 0x2fe   : > { %v2981_v29 = vor.u32 %v2980_v43, %v2979_v46  ;;  %vm2988_vm14 = vcmp.lt.s32.totalorder %v2966_v59, 4  ;;  %v3057_v26 = vand.u32 2147483647, %v6416_v20  ;;  %v3061_v40 = vshrl.u32 %v3060_v22, 23 }
 0x2ff   : > { %v2915_v62 = vsub.s32 0, %v6595_v11  ;;  %v2830_v9 = vsel %vm2747_vm5, %v2829_v51, %v2828_v52  ;;  %v2969_v23 = vshrl.u32 %v7239_v7, %v2968_v4  ;;  %v2984_v25 = vor.u32 %v2983_v53, %v2982_v33 }
 0x300   : > { %v2990_v28 = vsel %vm2988_vm14, %v2978_v27, 2102212464  ;;  %v2833_v3 = vsel %vm6556_vm6, %v6307_v36, %v2830_v9  ;;  %vm2985_vm15 = vcmp.lt.s32.totalorder %v2966_v59, 1  ;;  %vm2987_vm0 = vcmp.lt.s32.totalorder %v2966_v59, 3 }
 0x301   : > { %v4009_v49 = vmin.u32 %v2915_v62, %v6595_v11  ;;  %4332 = vcosq.f32 %v2833_v3  ;;  %v2989_v30 = vsel %vm2985_vm15, %v2969_v23, %v2972_v37  ;;  %v2993_v15 = vsel %vm2985_vm15, %v2972_v37, %v2975_v13 }
 0x302   : > { %v2994_v22 = vsel %vm2988_vm14, %v2981_v29, 920167782  ;;  %4334 = vsinq.f32 %v2833_v3  ;;  %v2991_v10 = vsel %vm2987_vm0, %v2975_v13, %v2990_v28  ;;  %v2997_v4 = vsel %vm2985_vm15, %v2975_v13, %v2978_v27 }
 0x303   : > { %v2917_v19 = vclz %v4009_v49  ;;  %vm2986_vm1 = vcmp.lt.s32.totalorder %v2966_v59, 2  ;;  %v2995_v24 = vsel %vm2987_vm0, %v2978_v27, %v2994_v22  ;;  %v2998_v57 = vsel %vm2988_vm14, %v2984_v25, 1326507024 }
 0x304   : > { %v3001_v17 = vshll.u32 %v2961_v47, 8  ;;  %v2996_v38 = vsel %vm2986_vm1, %v2993_v15, %v2995_v24  ;;  %v2999_v21 = vsel %vm2987_vm0, %v2981_v29, %v2998_v57  ;;  %v4016_v43 = vadd.s32 4294967169, %v3061_v40 }
 0x305   : > { %v4010_v60 = vadd.s32 4294967294, %v2917_v19  ;;  %v2992_v14 = vsel %vm2986_vm1, %v2989_v30, %v2991_v10  ;;  %v3000_v42 = vsel %vm2986_vm1, %v2997_v4, %v2999_v21  ;;  %v6621_v59 = vadd.f32 %v6285_v44, %v5422_v5 }
 0x306   : > { %v6612_v54 = vmul.u32.u64.low %v3001_v17, %v2996_v38  ;;  %v6613_v58 = vmul.u32.u64.high %v3001_v17, %v2996_v38, %v6612_v54  ;;  %v6616_v61 = vmul.u32.u64.low %v3001_v17, %v3000_v42  ;;  %v6617_v52 = vmul.u32.u64.high %v3001_v17, %v3000_v42, %v6616_v61 }
 0x307   : > { %vm4011_vm2 = vcmp.lt.s32.totalorder %v4010_v60, 0  ;;  %v3067_v46 = vadd.s32 1, %v4016_v43  ;;  %v2839_v27 = vand.u32 3, %v6574_v35  ;;  %v2905_v47 = vadd.s32 %v6541_v41, %v6552_v34 }
 0x308   : > { %v2920_v37 = vsel %vm4011_vm2, 0, %v4010_v60  ;;  %v2935_v13 = vsub.s32 4, %v6582_v56  ;;  %v3008_v29 = vmul.u32 %v3001_v17, %v2992_v14  ;;  %v3011_v33 = vadd.s32 1, %v6613_v58 }
 0x309   : > { %v2921_v53 = vsub.s32 32, %v2920_v37  ;;  %v2925_v51 = vsub.s32 4294967266, %v2920_v37  ;;  %vm3068_vm3 = vcmp.gt.s32.totalorder %v3067_v46, 0  ;;  %v3064_v62 = vand.u32 8388607, %v3057_v26 }
 0x30a   : > { %v3069_v40 = vsel %vm3068_vm3, %v3067_v46, 0  ;;  %v2922_v44 = vshll.u32 %v6595_v11, %v2920_v37  ;;  %vm3010_vm4 = vc.u32 %v6617_v52, %v6612_v54  ;;  %v6635_v41 = vadd.f32 %v6296_v0, %v5422_v5 }
 0x30b   : > { %v2923_v9 = vshrl.u32 %v2905_v47, %v2921_v53  ;;  %v2926_v35 = vadd.s32 127, %v2925_v51  ;;  %vm2837_vm5 = vweird.f32 %v6307_v36  ;;  %v3012_v34 = vsel %vm3010_vm4, %v3011_v33, %v6613_v58 }
 0x30c   : > { %v3071_v23 = vand.u32 31, %v3069_v40  ;;  %vm2851_vm6 = vcmp.lt.s32.totalorder %v6386_v18, 0  ;;  %v3013_v3 = vadd.s32 %v3012_v34, %v3008_v29  ;;  %vm2840_vm7 = vcmp.lt.s32.totalorder %v2839_v27, 2 }
 0x30d   : > { %v2924_v25 = vor.u32 %v2923_v9, %v2922_v44  ;;  %v2927_v28 = vshll.u32 %v2926_v35, 23  ;;  %vm2841_vm8 = vcmp.eq.s32.totalorder %v2839_v27, 0  ;;  %vm2844_vm10 = vcmp.eq.s32.totalorder %v2839_v27, 2 }
 0x30e   : > { %vm6642_vm9 = vcmp.le.f32.partialorder %v2849_v8, 0.7853982  ;;  %v3072_v5 = vsub.s32 32, %v3071_v23  ;;  %v4333_v0 = vpop.eup %4332  ;;  %v2936_v30 = vsel %vm2851_vm6, %v2935_v13, %v6582_v56  ;;  %v3014_v15 = vadd.s32 536870912, %v3013_v3 }
 0x30f   : > { %v2928_v49 = vor.u32 4788187, %v2927_v28  ;;  %v3065_v22 = vor.u32 8388608, %v3064_v62  ;;  %v4335_v19 = vpop.eup %4334  ;;  %v2845_v10 = vxor.u32 2147483648, %v4333_v0  ;;  %v2931_v4 = vcvt.s32.f32 %v2924_v25 }
 0x310   : > { %v3070_v24 = vshrl.u32 %v3069_v40, 5  ;;  %v3075_v57 = vshrl.u32 %v7269_v50, %v3072_v5  ;;  %v2842_v17 = vxor.u32 2147483648, %v4335_v19  ;;  %v6650_v60 = vshrl.u32 %v3014_v15, 30 }
 0x311   : > { %v2929_v8 = vand.u32 2147483647, %v2928_v49  ;;  %v3081_v38 = vshrl.u32 %v7235_v1, %v3072_v5  ;;  %v2846_v21 = vsel %vm2844_vm10, %v2845_v10, %v4335_v19  ;;  %v3074_v43 = vshll.u32 %v7239_v7, %v3071_v23 }
 0x312   : > { %v3078_v56 = vshrl.u32 %v7246_v12, %v3072_v5  ;;  %v3084_v14 = vshrl.u32 %v7223_v48, %v3072_v5  ;;  %v2843_v42 = vsel %vm2841_vm8, %v4333_v0, %v2842_v17  ;;  %v3016_v61 = vshll.u32 %v6650_v60, 30 }
 0x313   : > { %v2932_v58 = vmul.f32 %v2931_v4, %v2929_v8  ;;  %v3080_v46 = vshll.u32 %v7246_v12, %v3071_v23  ;;  %v2847_v47 = vsel %vm2840_vm7, %v2843_v42, %v2846_v21  ;;  %v3076_v37 = vor.u32 %v3075_v57, %v3074_v43 }
 0x314   : > { %v3077_v53 = vshll.u32 %v7269_v50, %v3071_v23  ;;  %v3083_v51 = vshll.u32 %v7235_v1, %v3071_v23  ;;  %v2848_v13 = vsel %vm2837_vm5, nan, %v2847_v47  ;;  %v6665_v33 = vsub.s32 %v3013_v3, %v3016_v61 }
 0x315   : > { %v2933_v29 = vxor.u32 2147483648, %v2932_v58  ;;  %v3082_v62 = vor.u32 %v3081_v38, %v3080_v46  ;;  %v3086_v9 = vshll.u32 %v7223_v48, %v3071_v23  ;;  %v3087_v35 = vshrl.u32 %v7224_v55, %v3072_v5  ;;  %3791 = vst [vmem:[%s4945_s10 + $0xb0] sm:$0xff] %v2848_v13 }
 0x316   : > { %v3079_v40 = vor.u32 %v3078_v56, %v3077_v53  ;;  %v3085_v44 = vor.u32 %v3084_v14, %v3083_v51  ;;  %v2938_v34 = vsel %vm6642_vm9, 0, %v2936_v30  ;;  %v3019_v36 = vsub.s32 0, %v6665_v33 }
 0x317   : > { %v2934_v27 = vsel %vm2851_vm6, %v2933_v29, %v2932_v58  ;;  %v3105_v25 = vshll.u32 %v3065_v22, 8  ;;  %v3073_v3 = vshrl.u32 %v7239_v7, %v3072_v5  ;;  %v3088_v0 = vor.u32 %v3087_v35, %v3086_v9 }
 0x318   : > { %v2937_v28 = vsel %vm6642_vm9, %v6386_v18, %v2934_v27  ;;  %vm3092_vm11 = vcmp.lt.s32.totalorder %v3070_v24, 4  ;;  %v4013_v23 = vmin.u32 %v3019_v36, %v6665_v33  ;;  %vm3089_vm12 = vcmp.lt.s32.totalorder %v3070_v24, 1 }
 0x319   : > { %4336 = vcosq.f32 %v2937_v28  ;;  %v3094_v49 = vsel %vm3092_vm11, %v3082_v62, 2102212464  ;;  %v3097_v15 = vsel %vm3089_vm12, %v3076_v37, %v3079_v40  ;;  %v3098_v30 = vsel %vm3092_vm11, %v3085_v44, 920167782 }
 0x31a   : > { %4338 = vsinq.f32 %v2937_v28  ;;  %v3164_v22 = vand.u32 2139095040, %v6420_v16  ;;  %v3021_v19 = vclz %v4013_v23  ;;  %vm3090_vm13 = vcmp.lt.s32.totalorder %v3070_v24, 2 }
 0x31b   : > { %vm3091_vm14 = vcmp.lt.s32.totalorder %v3070_v24, 3  ;;  %v3093_v11 = vsel %vm3089_vm12, %v3073_v3, %v3076_v37  ;;  %v3101_v4 = vsel %vm3089_vm12, %v3079_v40, %v3082_v62  ;;  %v3102_v57 = vsel %vm3092_vm11, %v3088_v0, 1326507024 }
 0x31c   : > { %v3095_v10 = vsel %vm3091_vm14, %v3079_v40, %v3094_v49  ;;  %v3099_v5 = vsel %vm3091_vm14, %v3082_v62, %v3098_v30  ;;  %v2942_v17 = vadd.s32 3, %v2938_v34  ;;  %v4014_v8 = vadd.s32 4294967294, %v3021_v19 }
 0x31d   : > { %v3100_v38 = vsel %vm3090_vm13, %v3097_v15, %v3099_v5  ;;  %v3103_v21 = vsel %vm3091_vm14, %v3085_v44, %v3102_v57  ;;  %v3165_v42 = vshrl.u32 %v3164_v22, 23  ;;  %v3096_v58 = vsel %vm3090_vm13, %v3093_v11, %v3095_v10 }
 0x31e   : > { %v3104_v43 = vsel %vm3090_vm13, %v3101_v4, %v3103_v21  ;;  %v6684_v56 = vmul.u32.u64.low %v3105_v25, %v3100_v38  ;;  %v6685_v14 = vmul.u32.u64.high %v3105_v25, %v3100_v38, %v6684_v56  ;;  %vm4015_vm15 = vcmp.lt.s32.totalorder %v4014_v8, 0 }
 0x31f   : > { %v6688_v61 = vmul.u32.u64.low %v3105_v25, %v3104_v43  ;;  %v6689_v46 = vmul.u32.u64.high %v3105_v25, %v3104_v43, %v6688_v61  ;;  %vm2955_vm0 = vcmp.lt.s32.totalorder %v6392_v6, 0  ;;  %v3024_v47 = vsel %vm4015_vm15, 0, %v4014_v8 }
 0x320   : > { %v3039_v24 = vsub.s32 4, %v6650_v60  ;;  %v4020_v37 = vadd.s32 4294967169, %v3165_v42  ;;  %v2943_v53 = vand.u32 3, %v2942_v17  ;;  %v3009_v51 = vadd.s32 %v6612_v54, %v6617_v52 }
 0x321   : > { %v3025_v13 = vsub.s32 32, %v3024_v47  ;;  %v3029_v29 = vsub.s32 4294967266, %v3024_v47  ;;  %v3112_v62 = vmul.u32 %v3105_v25, %v3096_v58  ;;  %v3115_v40 = vadd.s32 1, %v6685_v14 }
 0x322   : > { %v3161_v44 = vand.u32 2147483647, %v6420_v16  ;;  %v3171_v9 = vadd.s32 1, %v4020_v37  ;;  %v3026_v35 = vshll.u32 %v6665_v33, %v3024_v47  ;;  %vm3114_vm1 = vc.u32 %v6689_v46, %v6684_v56 }
 0x323   : > { %v3027_v27 = vshrl.u32 %v3009_v51, %v3025_v13  ;;  %v3030_v34 = vadd.s32 127, %v3029_v29  ;;  %vm2941_vm2 = vweird.f32 %v6386_v18  ;;  %v3040_v54 = vsel %vm2955_vm0, %v3039_v24, %v6650_v60 }
 0x324   : > { %v3116_v52 = vsel %vm3114_vm1, %v3115_v40, %v6685_v14  ;;  %vm3172_vm3 = vcmp.gt.s32.totalorder %v3171_v9, 0  ;;  %vm2944_vm4 = vcmp.lt.s32.totalorder %v2943_v53, 2  ;;  %vm6707_vm5 = vcmp.le.f32.partialorder %v2953_v63, 0.7853982 }
 0x325   : > { %v3028_v36 = vor.u32 %v3027_v27, %v3026_v35  ;;  %v3031_v25 = vshll.u32 %v3030_v34, 23  ;;  %v3117_v28 = vadd.s32 %v3116_v52, %v3112_v62  ;;  %v3173_v3 = vsel %vm3172_vm3, %v3171_v9, 0 }
 0x326   : > { %v4337_v0 = vpop.eup %4336  ;;  %v3168_v23 = vand.u32 8388607, %v3161_v44  ;;  %v3175_v49 = vand.u32 31, %v3173_v3  ;;  %v3042_v22 = vsel %vm6707_vm5, 0, %v3040_v54  ;;  %vm2945_vm6 = vcmp.eq.s32.totalorder %v2943_v53, 0 }
 0x327   : > { %v4339_v60 = vpop.eup %4338  ;;  %v2949_v15 = vxor.u32 2147483648, %v4337_v0  ;;  %v3032_v30 = vor.u32 4788187, %v3031_v25  ;;  %v3118_v19 = vadd.s32 536870912, %v3117_v28  ;;  %vm2948_vm7 = vcmp.eq.s32.totalorder %v2943_v53, 2 }
 0x328   : > { %v2946_v11 = vxor.u32 2147483648, %v4339_v60  ;;  %v3176_v10 = vsub.s32 32, %v3175_v49  ;;  %v3035_v4 = vcvt.s32.f32 %v3028_v36  ;;  %v6717_v8 = vadd.s32 3, %v3042_v22 }
 0x329   : > { %v2950_v5 = vsel %vm2948_vm7, %v2949_v15, %v4339_v60  ;;  %v3033_v63 = vand.u32 2147483647, %v3032_v30  ;;  %v6715_v57 = vshrl.u32 %v3118_v19, 30  ;;  %v3169_v38 = vor.u32 8388608, %v3168_v23 }
 0x32a   : > { %v2947_v17 = vsel %vm2945_vm6, %v4337_v0, %v2946_v11  ;;  %v3179_v21 = vshrl.u32 %v7269_v50, %v3176_v10  ;;  %v3268_v58 = vand.u32 2139095040, %v6547_v32  ;;  %v3178_v47 = vshll.u32 %v7239_v7, %v3175_v49 }
 0x32b   : > { %v2951_v43 = vsel %vm2944_vm4, %v2947_v17, %v2950_v5  ;;  %v3036_v14 = vmul.f32 %v3035_v4, %v3033_v63  ;;  %v3120_v42 = vshll.u32 %v6715_v57, 30  ;;  %v3182_v24 = vshrl.u32 %v7246_v12, %v3176_v10 }
 0x32c   : > { %v2952_v61 = vsel %vm2941_vm2, nan, %v2951_v43  ;;  %v3185_v37 = vshrl.u32 %v7235_v1, %v3176_v10  ;;  %v3174_v29 = vshrl.u32 %v3173_v3, 5  ;;  %v3181_v53 = vshll.u32 %v7269_v50, %v3175_v49 }
 0x32d   : > { %v3037_v51 = vxor.u32 2147483648, %v3036_v14  ;;  %v6728_v13 = vsub.s32 %v3117_v28, %v3120_v42  ;;  %3792 = vst [vmem:[%s4945_s10 + $0xb8] sm:$0xff] %v2952_v61  ;;  %v3180_v62 = vor.u32 %v3179_v21, %v3178_v47  ;;  %v3184_v40 = vshll.u32 %v7246_v12, %v3175_v49 }
 0x32e   : > { %v3187_v9 = vshll.u32 %v7235_v1, %v3175_v49  ;;  %v3188_v18 = vshrl.u32 %v7223_v48, %v3176_v10  ;;  %v3190_v34 = vshll.u32 %v7223_v48, %v3175_v49  ;;  %v3191_v54 = vshrl.u32 %v7224_v55, %v3176_v10 }
 0x32f   : > { %v3038_v35 = vsel %vm2955_vm0, %v3037_v51, %v3036_v14  ;;  %v3123_v27 = vsub.s32 0, %v6728_v13  ;;  %v3183_v36 = vor.u32 %v3182_v24, %v3181_v53  ;;  %v3186_v25 = vor.u32 %v3185_v37, %v3184_v40 }
 0x330   : > { %v3041_v52 = vsel %vm6707_vm5, %v6392_v6, %v3038_v35  ;;  %v3189_v28 = vor.u32 %v3188_v18, %v3187_v9  ;;  %v3192_v0 = vor.u32 %v3191_v54, %v3190_v34  ;;  %v3209_v23 = vshll.u32 %v3169_v38, 8 }
 0x331   : > { %4340 = vcosq.f32 %v3041_v52  ;;  %v4017_v3 = vmin.u32 %v3123_v27, %v6728_v13  ;;  %v3177_v60 = vshrl.u32 %v7239_v7, %v3176_v10  ;;  %vm3193_vm8 = vcmp.lt.s32.totalorder %v3174_v29, 1 }
 0x332   : > { %4342 = vsinq.f32 %v3041_v52  ;;  %v3269_v15 = vshrl.u32 %v3268_v58, 23  ;;  %vm3194_vm10 = vcmp.lt.s32.totalorder %v3174_v29, 2  ;;  %vm3195_vm9 = vcmp.lt.s32.totalorder %v3174_v29, 3 }
 0x333   : > { %v3125_v49 = vclz %v4017_v3  ;;  %vm3196_vm11 = vcmp.lt.s32.totalorder %v3174_v29, 4  ;;  %v3201_v33 = vsel %vm3193_vm8, %v3180_v62, %v3183_v36  ;;  %v3205_v19 = vsel %vm3193_vm8, %v3183_v36, %v3186_v25 }
 0x334   : > { %v3198_v30 = vsel %vm3196_vm11, %v3186_v25, 2102212464  ;;  %v3202_v22 = vsel %vm3196_vm11, %v3189_v28, 920167782  ;;  %v3197_v5 = vsel %vm3193_vm8, %v3177_v60, %v3180_v62  ;;  %v3206_v4 = vsel %vm3196_vm11, %v3192_v0, 1326507024 }
 0x335   : > { %v4018_v11 = vadd.s32 4294967294, %v3125_v49  ;;  %v3203_v63 = vsel %vm3195_vm9, %v3186_v25, %v3202_v22  ;;  %v3199_v17 = vsel %vm3195_vm9, %v3183_v36, %v3198_v30  ;;  %v3207_v21 = vsel %vm3195_vm9, %v3189_v28, %v3206_v4 }
 0x336   : > { %v3204_v38 = vsel %vm3194_vm10, %v3201_v33, %v3203_v63  ;;  %v4024_v43 = vadd.s32 4294967169, %v3269_v15  ;;  %v3208_v10 = vsel %vm3194_vm10, %v3205_v19, %v3207_v21  ;;  %vm3059_vm13 = vcmp.lt.s32.totalorder %v6416_v20, 0 }
 0x337   : > { %vm4019_vm12 = vcmp.lt.s32.totalorder %v4018_v11, 0  ;;  %v6747_v14 = vmul.u32.u64.low %v3209_v23, %v3204_v38  ;;  %v6748_v42 = vmul.u32.u64.high %v3209_v23, %v3204_v38, %v6747_v14  ;;  %v3113_v24 = vadd.s32 %v6684_v56, %v6689_v46 }
 0x338   : > { %v3128_v58 = vsel %vm4019_vm12, 0, %v4018_v11  ;;  %v6752_v61 = vmul.u32.u64.low %v3209_v23, %v3208_v10  ;;  %v6753_v47 = vmul.u32.u64.high %v3209_v23, %v3208_v10, %v6752_v61  ;;  %v3200_v53 = vsel %vm3194_vm10, %v3197_v5, %v3199_v17 }
 0x339   : > { %v3129_v37 = vsub.s32 32, %v3128_v58  ;;  %v3133_v51 = vsub.s32 4294967266, %v3128_v58  ;;  %v3047_v62 = vand.u32 3, %v6717_v8  ;;  %vm6761_vm14 = vcmp.le.f32.partialorder %v3057_v26, 0.7853982 }
 0x33a   : > { %v3143_v9 = vsub.s32 4, %v6715_v57  ;;  %v3275_v18 = vadd.s32 1, %v4024_v43  ;;  %vm3045_vm15 = vweird.f32 %v6392_v6  ;;  %v3130_v35 = vshll.u32 %v6728_v13, %v3128_v58 }
 0x33b   : > { %v3131_v56 = vshrl.u32 %v3113_v24, %v3129_v37  ;;  %v3134_v46 = vadd.s32 127, %v3133_v51  ;;  %v3219_v29 = vadd.s32 1, %v6748_v42  ;;  %v3216_v27 = vmul.u32 %v3209_v23, %v3200_v53 }
 0x33c   : > { %vm3218_vm0 = vc.u32 %v6753_v47, %v6747_v14  ;;  %v3265_v26 = vand.u32 2147483647, %v6547_v32  ;;  %vm3276_vm1 = vcmp.gt.s32.totalorder %v3275_v18, 0  ;;  %vm3048_vm2 = vcmp.lt.s32.totalorder %v3047_v62, 2 }
 0x33d   : > { %v3132_v8 = vor.u32 %v3131_v56, %v3130_v35  ;;  %v3135_v34 = vshll.u32 %v3134_v46, 23  ;;  %v3220_v54 = vsel %vm3218_vm0, %v3219_v29, %v6748_v42  ;;  %v3277_v52 = vsel %vm3276_vm1, %v3275_v18, 0 }
 0x33e   : > { %v4341_v36 = vpop.eup %4340  ;;  %v3144_v13 = vsel %vm3059_vm13, %v3143_v9, %v6715_v57  ;;  %v3221_v25 = vadd.s32 %v3220_v54, %v3216_v27  ;;  %v3279_v28 = vand.u32 31, %v3277_v52  ;;  %vm3049_vm3 = vcmp.eq.s32.totalorder %v3047_v62, 0 }
 0x33f   : > { %v4343_v3 = vpop.eup %4342  ;;  %vm3052_vm4 = vcmp.eq.s32.totalorder %v3047_v62, 2  ;;  %v3053_v0 = vxor.u32 2147483648, %v4341_v36  ;;  %v3136_v23 = vor.u32 4788187, %v3135_v34  ;;  %v3272_v49 = vand.u32 8388607, %v3265_v26 }
 0x340   : > { %v3050_v60 = vxor.u32 2147483648, %v4343_v3  ;;  %v3222_v15 = vadd.s32 536870912, %v3221_v25  ;;  %v3280_v30 = vsub.s32 32, %v3279_v28  ;;  %v3139_v19 = vcvt.s32.f32 %v3132_v8 }
 0x341   : > { %v3054_v33 = vsel %vm3052_vm4, %v3053_v0, %v4343_v3  ;;  %v3137_v22 = vand.u32 2147483647, %v3136_v23  ;;  %v3146_v11 = vsel %vm6761_vm14, 0, %v3144_v13  ;;  %v3282_v63 = vshll.u32 %v7239_v7, %v3279_v28 }
 0x342   : > { %v3051_v57 = vsel %vm3049_vm3, %v4341_v36, %v3050_v60  ;;  %v6780_v5 = vshrl.u32 %v3222_v15, 30  ;;  %v3283_v4 = vshrl.u32 %v7269_v50, %v3280_v30  ;;  %v3286_v21 = vshrl.u32 %v7246_v12, %v3280_v30 }
 0x343   : > { %v3055_v17 = vsel %vm3048_vm2, %v3051_v57, %v3054_v33  ;;  %v3140_v38 = vmul.f32 %v3139_v19, %v3137_v22  ;;  %v3289_v43 = vshrl.u32 %v7235_v1, %v3280_v30  ;;  %v3273_v58 = vor.u32 8388608, %v3272_v49 }
 0x344   : > { %v3056_v10 = vsel %vm3045_vm15, nan, %v3055_v17  ;;  %v3224_v42 = vshll.u32 %v6780_v5, 30  ;;  %v3285_v61 = vshll.u32 %v7269_v50, %v3279_v28  ;;  %v3278_v37 = vshrl.u32 %v3277_v52, 5 }
 0x345   : > { %v3141_v24 = vxor.u32 2147483648, %v3140_v38  ;;  %v3284_v51 = vor.u32 %v3283_v4, %v3282_v63  ;;  %v3288_v53 = vshll.u32 %v7246_v12, %v3279_v28  ;;  %3793 = vst [vmem:[%s4945_s10 + $0xc0] sm:$0xff] %v3056_v10  ;;  %v3291_v18 = vshll.u32 %v7235_v1, %v3279_v28 }
 0x346   : > { %v6793_v62 = vsub.s32 %v3221_v25, %v3224_v42  ;;  %v3287_v9 = vor.u32 %v3286_v21, %v3285_v61  ;;  %v3292_v35 = vshrl.u32 %v7223_v48, %v3280_v30  ;;  %v3294_v46 = vshll.u32 %v7223_v48, %v3279_v28 }
 0x347   : > { %v3142_v6 = vsel %vm3059_vm13, %v3141_v24, %v3140_v38  ;;  %v3290_v56 = vor.u32 %v3289_v43, %v3288_v53  ;;  %v3295_v29 = vshrl.u32 %v7224_v55, %v3280_v30  ;;  %v3150_v8 = vadd.s32 3, %v3146_v11 }
 0x348   : > { %v3145_v27 = vsel %vm6761_vm14, %v6416_v20, %v3142_v6  ;;  %v3227_v34 = vsub.s32 0, %v6793_v62  ;;  %v3293_v54 = vor.u32 %v3292_v35, %v3291_v18  ;;  %v3281_v52 = vshrl.u32 %v7239_v7, %v3280_v30 }
 0x349   : > { %4344 = vcosq.f32 %v3145_v27  ;;  %v3296_v36 = vor.u32 %v3295_v29, %v3294_v46  ;;  %v3313_v13 = vshll.u32 %v3273_v58, 8  ;;  %vm3297_vm5 = vcmp.lt.s32.totalorder %v3278_v37, 1 }
 0x34a   : > { %4346 = vsinq.f32 %v3145_v27  ;;  %v4021_v25 = vmin.u32 %v3227_v34, %v6793_v62  ;;  %vm3300_vm6 = vcmp.lt.s32.totalorder %v3278_v37, 4  ;;  %v3305_v3 = vsel %vm3297_vm5, %v3284_v51, %v3287_v9 }
 0x34b   : > { %v3302_v28 = vsel %vm3300_vm6, %v3290_v56, 2102212464  ;;  %v3306_v0 = vsel %vm3300_vm6, %v3293_v54, 920167782  ;;  %v3372_v40 = vand.u32 2139095040, %v6621_v59  ;;  %vm3298_vm7 = vcmp.lt.s32.totalorder %v3278_v37, 2 }
 0x34c   : > { %v3229_v23 = vclz %v4021_v25  ;;  %vm3299_vm8 = vcmp.lt.s32.totalorder %v3278_v37, 3  ;;  %v3301_v60 = vsel %vm3297_vm5, %v3281_v52, %v3284_v51  ;;  %v3309_v33 = vsel %vm3297_vm5, %v3287_v9, %v3290_v56 }
 0x34d   : > { %v3303_v15 = vsel %vm3299_vm8, %v3287_v9, %v3302_v28  ;;  %v3307_v49 = vsel %vm3299_vm8, %v3290_v56, %v3306_v0  ;;  %v3310_v30 = vsel %vm3300_vm6, %v3296_v36, 1326507024  ;;  %v3247_v19 = vsub.s32 4, %v6780_v5 }
 0x34e   : > { %v4022_v22 = vadd.s32 4294967294, %v3229_v23  ;;  %v3308_v11 = vsel %vm3298_vm7, %v3305_v3, %v3307_v49  ;;  %v3311_v57 = vsel %vm3299_vm8, %v3293_v54, %v3310_v30  ;;  %v3304_v63 = vsel %vm3298_vm7, %v3301_v60, %v3303_v15 }
 0x34f   : > { %v3312_v4 = vsel %vm3298_vm7, %v3309_v33, %v3311_v57  ;;  %v6809_v17 = vmul.u32.u64.low %v3313_v13, %v3308_v11  ;;  %v6810_v38 = vmul.u32.u64.high %v3313_v13, %v3308_v11, %v6809_v17  ;;  %v3373_v10 = vshrl.u32 %v3372_v40, 23 }
 0x350   : > { %vm4023_vm10 = vcmp.lt.s32.totalorder %v4022_v22, 0  ;;  %v6813_v21 = vmul.u32.u64.low %v3313_v13, %v3312_v4  ;;  %v6814_v43 = vmul.u32.u64.high %v3313_v13, %v3312_v4, %v6813_v21  ;;  %v3151_v42 = vand.u32 3, %v3150_v8 }
 0x351   : > { %vm6818_vm9 = vcmp.le.f32.partialorder %v3161_v44, 0.7853982  ;;  %vm3163_vm11 = vcmp.lt.s32.totalorder %v6420_v16, 0  ;;  %v3232_v61 = vsel %vm4023_vm10, 0, %v4022_v22  ;;  %v3217_v24 = vadd.s32 %v6747_v14, %v6753_v47 }
 0x352   : > { %v3233_v37 = vsub.s32 32, %v3232_v61  ;;  %v3237_v51 = vsub.s32 4294967266, %v3232_v61  ;;  %v4028_v53 = vadd.s32 4294967169, %v3373_v10  ;;  %v3248_v9 = vsel %vm3163_vm11, %v3247_v19, %v6780_v5 }
 0x353   : > { %v3320_v18 = vmul.u32 %v3313_v13, %v3304_v63  ;;  %v3323_v35 = vadd.s32 1, %v6810_v38  ;;  %v3369_v44 = vand.u32 2147483647, %v6621_v59  ;;  %v3234_v6 = vshll.u32 %v6793_v62, %v3232_v61 }
 0x354   : > { %v3235_v56 = vshrl.u32 %v3217_v24, %v3233_v37  ;;  %v3238_v46 = vadd.s32 127, %v3237_v51  ;;  %vm3322_vm12 = vc.u32 %v6814_v43, %v6809_v17  ;;  %vm3152_vm13 = vcmp.lt.s32.totalorder %v3151_v42, 2 }
 0x355   : > { %v3324_v14 = vsel %vm3322_vm12, %v3323_v35, %v6810_v38  ;;  %v3379_v47 = vadd.s32 1, %v4028_v53  ;;  %v3476_v29 = vand.u32 2139095040, %v6635_v41  ;;  %v3250_v34 = vsel %vm6818_vm9, 0, %v3248_v9 }
 0x356   : > { %v4345_v27 = vpop.eup %4344  ;;  %v3236_v5 = vor.u32 %v3235_v56, %v3234_v6  ;;  %v3239_v8 = vshll.u32 %v3238_v46, 23  ;;  %v3325_v54 = vadd.s32 %v3324_v14, %v3320_v18  ;;  %vm3153_vm14 = vcmp.eq.s32.totalorder %v3151_v42, 0 }
 0x357   : > { %v4347_v52 = vpop.eup %4346  ;;  %vm3156_vm15 = vcmp.eq.s32.totalorder %v3151_v42, 2  ;;  %v3157_v62 = vxor.u32 2147483648, %v4345_v27  ;;  %vm3380_vm0 = vcmp.gt.s32.totalorder %v3379_v47, 0  ;;  %v3376_v28 = vand.u32 8388607, %v3369_v44 }
 0x358   : > { %v3154_v36 = vxor.u32 2147483648, %v4347_v52  ;;  %v3240_v13 = vor.u32 4788187, %v3239_v8  ;;  %v3326_v25 = vadd.s32 536870912, %v3325_v54  ;;  %v3254_v0 = vadd.s32 3, %v3250_v34 }
 0x359   : > { %v3158_v3 = vsel %vm3156_vm15, %v3157_v62, %v4347_v52  ;;  %v3381_v40 = vsel %vm3380_vm0, %v3379_v47, 0  ;;  %v3477_v23 = vshrl.u32 %v3476_v29, 23  ;;  %v3243_v49 = vcvt.s32.f32 %v3236_v5 }
 0x35a   : > { %v3155_v60 = vsel %vm3153_vm14, %v4345_v27, %v3154_v36  ;;  %v3241_v15 = vand.u32 2147483647, %v3240_v13  ;;  %v6839_v33 = vshrl.u32 %v3326_v25, 30  ;;  %vm3149_vm1 = vweird.f32 %v6416_v20 }
 0x35b   : > { %v3159_v30 = vsel %vm3152_vm13, %v3155_v60, %v3158_v3  ;;  %v3383_v22 = vand.u32 31, %v3381_v40  ;;  %v6845_v19 = vadd.f32 %v6303_v45, %v5559_v2  ;;  %v6848_v4 = vand.u32 3, %v3254_v0 }
 0x35c   : > { %v3160_v11 = vsel %vm3149_vm1, nan, %v3159_v30  ;;  %v3244_v57 = vmul.f32 %v3243_v49, %v3241_v15  ;;  %v3328_v63 = vshll.u32 %v6839_v33, 30  ;;  %v3377_v38 = vor.u32 8388608, %v3376_v28 }
 0x35d   : > { %v3384_v21 = vsub.s32 32, %v3383_v22  ;;  %v3473_v10 = vand.u32 2147483647, %v6635_v41  ;;  %3794 = vst [vmem:[%s4945_s10 + $0xc8] sm:$0xff] %v3160_v11  ;;  %v6854_v42 = vshrl.u32 %v3381_v40, 5  ;;  %v4032_v24 = vadd.s32 4294967169, %v3477_v23 }
 0x35e   : > { %v3245_v61 = vxor.u32 2147483648, %v3244_v57  ;;  %v6852_v20 = vsub.s32 %v3325_v54, %v3328_v63  ;;  %v3386_v45 = vshll.u32 %v7239_v7, %v3383_v22  ;;  %v3389_v51 = vshll.u32 %v7269_v50, %v3383_v22 }
 0x35f   : > { %v3387_v37 = vshrl.u32 %v7269_v50, %v3384_v21  ;;  %v3390_v53 = vshrl.u32 %v7246_v12, %v3384_v21  ;;  %v3392_v35 = vshll.u32 %v7246_v12, %v3383_v22  ;;  %v3393_v6 = vshrl.u32 %v7235_v1, %v3384_v21 }
 0x360   : > { %v3246_v9 = vsel %vm3163_vm11, %v3245_v61, %v3244_v57  ;;  %v3331_v18 = vsub.s32 0, %v6852_v20  ;;  %v3395_v14 = vshll.u32 %v7235_v1, %v3383_v22  ;;  %v3396_v47 = vshrl.u32 %v7223_v48, %v3384_v21 }
 0x361   : > { %v3249_v56 = vsel %vm6818_vm9, %v6420_v16, %v3246_v9  ;;  %v3388_v46 = vor.u32 %v3387_v37, %v3386_v45  ;;  %v3391_v27 = vor.u32 %v3390_v53, %v3389_v51  ;;  %v3394_v5 = vor.u32 %v3393_v6, %v3392_v35 }
 0x362   : > { %4348 = vcosq.f32 %v3249_v56  ;;  %v4025_v29 = vmin.u32 %v3331_v18, %v6852_v20  ;;  %v3397_v8 = vor.u32 %v3396_v47, %v3395_v14  ;;  %v3398_v34 = vshll.u32 %v7223_v48, %v3383_v22 }
 0x363   : > { %4350 = vsinq.f32 %v3249_v56  ;;  %v3399_v54 = vshrl.u32 %v7224_v55, %v3384_v21  ;;  %v3321_v58 = vadd.s32 %v6809_v17, %v6814_v43  ;;  %v6875_v62 = vshll.u32 %v3377_v38, 8 }
 0x364   : > { %v3333_v52 = vclz %v4025_v29  ;;  %v6879_v36 = vand.u32 8388607, %v3473_v10  ;;  %vm3267_vm2 = vcmp.lt.s32.totalorder %v6547_v32, 0  ;;  %v3385_v13 = vshrl.u32 %v7239_v7, %v3384_v21 }
 0x365   : > { %v3400_v25 = vor.u32 %v3399_v54, %v3398_v34  ;;  %vm3401_vm3 = vcmp.lt.s32.totalorder %v6854_v42, 1  ;;  %v3483_v28 = vadd.s32 1, %v4032_v24  ;;  %vm3403_vm4 = vcmp.lt.s32.totalorder %v6854_v42, 3 }
 0x366   : > { %v4026_v3 = vadd.s32 4294967294, %v3333_v52  ;;  %vm3404_vm5 = vcmp.lt.s32.totalorder %v6854_v42, 4  ;;  %v3409_v17 = vsel %vm3401_vm3, %v3388_v46, %v3391_v27  ;;  %v3413_v40 = vsel %vm3401_vm3, %v3391_v27, %v3394_v5 }
 0x367   : > { %v3406_v43 = vsel %vm3404_vm5, %v3394_v5, 2102212464  ;;  %v3410_v0 = vsel %vm3404_vm5, %v3397_v8, 920167782  ;;  %v3414_v23 = vsel %vm3404_vm5, %v3400_v25, 1326507024  ;;  %v3405_v38 = vsel %vm3401_vm3, %v3385_v13, %v3388_v46 }
 0x368   : > { %vm6892_vm6 = vcmp.le.f32.partialorder %v3265_v26, 0.7853982  ;;  %vm4027_vm7 = vcmp.lt.s32.totalorder %v4026_v3, 0  ;;  %vm3402_vm8 = vcmp.lt.s32.totalorder %v6854_v42, 2  ;;  %v3411_v15 = vsel %vm3403_vm4, %v3394_v5, %v3410_v0 }
 0x369   : > { %v3415_v49 = vsel %vm3403_vm4, %v3397_v8, %v3414_v23  ;;  %v3336_v30 = vsel %vm4027_vm7, 0, %v4026_v3  ;;  %v3351_v22 = vsub.s32 4, %v6839_v33  ;;  %v3412_v11 = vsel %vm3402_vm8, %v3409_v17, %v3411_v15 }
 0x36a   : > { %v3416_v26 = vsel %vm3402_vm8, %v3413_v40, %v3415_v49  ;;  %v3337_v57 = vsub.s32 32, %v3336_v30  ;;  %v3341_v63 = vsub.s32 4294967266, %v3336_v30  ;;  %v3407_v21 = vsel %vm3403_vm4, %v3391_v27, %v3406_v43 }
 0x36b   : > { %v6911_v61 = vmul.u32.u64.low %v6875_v62, %v3416_v26  ;;  %v6912_v24 = vmul.u32.u64.high %v6875_v62, %v3416_v26, %v6911_v61  ;;  %v6915_v45 = vmul.u32.u64.low %v6875_v62, %v3412_v11  ;;  %v6916_v37 = vmul.u32.u64.high %v6875_v62, %v3412_v11, %v6915_v45 }
 0x36c   : > { %vm3253_vm10 = vweird.f32 %v6420_v16  ;;  %v3338_v51 = vshll.u32 %v6852_v20, %v3336_v30  ;;  %v3339_v53 = vshrl.u32 %v3321_v58, %v3337_v57  ;;  %v3342_v9 = vadd.s32 127, %v3341_v63 }
 0x36d   : > { %vm3484_vm9 = vcmp.gt.s32.totalorder %v3483_v28, 0  ;;  %vm3256_vm11 = vcmp.lt.s32.totalorder %v6848_v4, 2  ;;  %vm3257_vm12 = vcmp.eq.s32.totalorder %v6848_v4, 0  ;;  %v3408_v18 = vsel %vm3402_vm8, %v3405_v38, %v3407_v21 }
 0x36e   : > { %v3485_v35 = vsel %vm3484_vm9, %v3483_v28, 0  ;;  %v3340_v6 = vor.u32 %v3339_v53, %v3338_v51  ;;  %v3343_v56 = vshll.u32 %v3342_v9, 23  ;;  %v3352_v46 = vsel %vm3267_vm2, %v3351_v22, %v6839_v33 }
 0x36f   : > { %v3487_v14 = vand.u32 31, %v3485_v35  ;;  %v4349_v47 = vpop.eup %4348  ;;  %vm3260_vm13 = vcmp.eq.s32.totalorder %v6848_v4, 2  ;;  %vm3426_vm14 = vc.u32 %v6912_v24, %v6915_v45  ;;  %v3427_v20 = vadd.s32 1, %v6916_v37 }
 0x370   : > { %v3481_v29 = vor.u32 8388608, %v6879_v36  ;;  %v4351_v42 = vpop.eup %4350  ;;  %v3261_v27 = vxor.u32 2147483648, %v4349_v47  ;;  %v3344_v5 = vor.u32 4788187, %v3343_v56  ;;  %v3424_v8 = vmul.u32 %v6875_v62, %v3408_v18 }
 0x371   : > { %v3488_v34 = vsub.s32 32, %v3487_v14  ;;  %v3258_v54 = vxor.u32 2147483648, %v4351_v42  ;;  %v3354_v33 = vsel %vm6892_vm6, 0, %v3352_v46  ;;  %v3428_v58 = vsel %vm3426_vm14, %v3427_v20, %v6916_v37 }
 0x372   : > { %v3580_v52 = vand.u32 2139095040, %v6845_v19  ;;  %v3262_v13 = vsel %vm3260_vm13, %v3261_v27, %v4351_v42  ;;  %v3345_v25 = vand.u32 2147483647, %v3344_v5  ;;  %v3347_v28 = vcvt.s32.f32 %v3340_v6 }
 0x373   : > { %v3429_v3 = vadd.s32 %v3428_v58, %v3424_v8  ;;  %v3259_v36 = vsel %vm3257_vm12, %v4349_v47, %v3258_v54  ;;  %v3486_v17 = vshrl.u32 %v3485_v35, 5  ;;  %v3491_v62 = vshrl.u32 %v7269_v50, %v3488_v34 }
 0x374   : > { %v3494_v43 = vshrl.u32 %v7246_v12, %v3488_v34  ;;  %v3263_v0 = vsel %vm3256_vm11, %v3259_v36, %v3262_v13  ;;  %v3348_v40 = vmul.f32 %v3347_v28, %v3345_v25  ;;  %v3497_v15 = vshrl.u32 %v7235_v1, %v3488_v34 }
 0x375   : > { %v3430_v23 = vadd.s32 536870912, %v3429_v3  ;;  %v3264_v49 = vsel %vm3253_vm10, nan, %v3263_v0  ;;  %v3490_v30 = vshll.u32 %v7239_v7, %v3487_v14  ;;  %v3493_v22 = vshll.u32 %v7269_v50, %v3487_v14 }
 0x376   : > { %v3496_v11 = vshll.u32 %v7246_v12, %v3487_v14  ;;  %v3349_v26 = vxor.u32 2147483648, %v3348_v40  ;;  %v3499_v63 = vshll.u32 %v7235_v1, %v3487_v14  ;;  %v3500_v4 = vshrl.u32 %v7223_v48, %v3488_v34  ;;  %3795 = vst [vmem:[%s4945_s10 + $0xd0] sm:$0xff] %v3264_v49 }
 0x377   : > { %v6950_v57 = vshrl.u32 %v3430_v23, 30  ;;  %v3492_v38 = vor.u32 %v3491_v62, %v3490_v30  ;;  %v3495_v21 = vor.u32 %v3494_v43, %v3493_v22  ;;  %v3502_v61 = vshll.u32 %v7223_v48, %v3487_v14 }
 0x378   : > { %v3503_v16 = vshrl.u32 %v7224_v55, %v3488_v34  ;;  %v3350_v37 = vsel %vm3267_vm2, %v3349_v26, %v3348_v40  ;;  %v3498_v53 = vor.u32 %v3497_v15, %v3496_v11  ;;  %v3501_v9 = vor.u32 %v3500_v4, %v3499_v63 }
 0x379   : > { %v3432_v51 = vshll.u32 %v6950_v57, 30  ;;  %v3353_v18 = vsel %vm6892_vm6, %v6547_v32, %v3350_v37  ;;  %v3358_v35 = vadd.s32 3, %v3354_v33  ;;  %v3521_v56 = vshll.u32 %v3481_v29, 8 }
 0x37a   : > { %v3504_v6 = vor.u32 %v3503_v16, %v3502_v61  ;;  %4352 = vcosq.f32 %v3353_v18  ;;  %vm3505_vm15 = vcmp.lt.s32.totalorder %v3486_v17, 1  ;;  %v3581_v14 = vshrl.u32 %v3580_v52, 23 }
 0x37b   : > { %v6963_v46 = vsub.s32 %v3429_v3, %v3432_v51  ;;  %4354 = vsinq.f32 %v3353_v18  ;;  %v3489_v47 = vshrl.u32 %v7239_v7, %v3488_v34  ;;  %vm3508_vm0 = vcmp.lt.s32.totalorder %v3486_v17, 4 }
 0x37c   : > { %v3513_v20 = vsel %vm3505_vm15, %v3492_v38, %v3495_v21  ;;  %vm3507_vm1 = vcmp.lt.s32.totalorder %v3486_v17, 3  ;;  %v3510_v27 = vsel %vm3508_vm0, %v3498_v53, 2102212464  ;;  %v3514_v5 = vsel %vm3508_vm0, %v3501_v9, 920167782 }
 0x37d   : > { %v3435_v42 = vsub.s32 0, %v6963_v46  ;;  %vm3506_vm2 = vcmp.lt.s32.totalorder %v3486_v17, 2  ;;  %v3515_v60 = vsel %vm3507_vm1, %v3498_v53, %v3514_v5  ;;  %v3517_v8 = vsel %vm3505_vm15, %v3495_v21, %v3498_v53 }
 0x37e   : > { %v3518_v54 = vsel %vm3508_vm0, %v3504_v6, 1326507024  ;;  %v3509_v33 = vsel %vm3505_vm15, %v3489_v47, %v3492_v38  ;;  %v3516_v58 = vsel %vm3506_vm2, %v3513_v20, %v3515_v60  ;;  %v3511_v13 = vsel %vm3507_vm1, %v3495_v21, %v3510_v27 }
 0x37f   : > { %v4029_v29 = vmin.u32 %v3435_v42, %v6963_v46  ;;  %v3519_v52 = vsel %vm3507_vm1, %v3501_v9, %v3518_v54  ;;  %v6970_v25 = vmul.u32.u64.low %v3521_v56, %v3516_v58  ;;  %v6971_v28 = vmul.u32.u64.high %v3521_v56, %v3516_v58, %v6970_v25 }
 0x380   : > { %v3520_v34 = vsel %vm3506_vm2, %v3517_v8, %v3519_v52  ;;  %v2104_v3 = vmul.f32 %v5876_v39, %v4624_v31  ;;  %v3359_v36 = vand.u32 3, %v3358_v35  ;;  %v4036_v40 = vadd.s32 4294967169, %v3581_v14 }
 0x381   : > { %v3437_v62 = vclz %v4029_v29  ;;  %v6976_v43 = vmul.u32.u64.low %v3521_v56, %v3520_v34  ;;  %v6977_v0 = vmul.u32.u64.high %v3521_v56, %v3520_v34, %v6976_v43  ;;  %v3512_v49 = vsel %vm3506_vm2, %v3509_v33, %v3511_v13 }
 0x382   : > { %v6980_v23 = vadd.f32 %v2104_v3, %v5559_v2  ;;  %v3455_v30 = vsub.s32 4, %v6950_v57  ;;  %v3531_v22 = vadd.s32 1, %v6971_v28  ;;  %v3577_v11 = vand.u32 2147483647, %v6845_v19 }
 0x383   : > { %v4030_v15 = vadd.s32 4294967294, %v3437_v62  ;;  %v3587_v26 = vadd.s32 1, %v4036_v40  ;;  %vm3364_vm3 = vcmp.eq.s32.totalorder %v3359_v36, 2  ;;  %vm6988_vm4 = vcmp.le.f32.partialorder %v3369_v44, 0.7853982 }
 0x384   : > { %vm3371_vm5 = vcmp.lt.s32.totalorder %v6621_v59, 0  ;;  %v3528_v39 = vmul.u32 %v3521_v56, %v3512_v49  ;;  %vm3530_vm7 = vc.u32 %v6977_v0, %v6970_v25  ;;  %v3425_v17 = vadd.s32 %v6915_v45, %v6912_v24 }
 0x385   : > { %vm4031_vm6 = vcmp.lt.s32.totalorder %v4030_v15, 0  ;;  %vm3588_vm8 = vcmp.gt.s32.totalorder %v3587_v26, 0  ;;  %v3532_v38 = vsel %vm3530_vm7, %v3531_v22, %v6971_v28  ;;  %v3456_v21 = vsel %vm3371_vm5, %v3455_v30, %v6950_v57 }
 0x386   : > { %v3440_v2 = vsel %vm4031_vm6, 0, %v4030_v15  ;;  %v3533_v61 = vadd.s32 %v3532_v38, %v3528_v39  ;;  %v3584_v16 = vand.u32 8388607, %v3577_v11  ;;  %v3589_v37 = vsel %vm3588_vm8, %v3587_v26, 0 }
 0x387   : > { %v3441_v63 = vsub.s32 32, %v3440_v2  ;;  %v3445_v4 = vsub.s32 4294967266, %v3440_v2  ;;  %v4353_v44 = vpop.eup %4352  ;;  %v3442_v9 = vshll.u32 %v6963_v46, %v3440_v2  ;;  %v3591_v6 = vand.u32 31, %v3589_v37 }
 0x388   : > { %v4355_v51 = vpop.eup %4354  ;;  %v3365_v53 = vxor.u32 2147483648, %v4353_v44  ;;  %v3534_v35 = vadd.s32 536870912, %v3533_v61  ;;  %v3684_v56 = vand.u32 2139095040, %v6980_v23  ;;  %vm3361_vm10 = vcmp.eq.s32.totalorder %v3359_v36, 0 }
 0x389   : > { %v3443_v18 = vshrl.u32 %v3425_v17, %v3441_v63  ;;  %v3446_v24 = vadd.s32 127, %v3445_v4  ;;  %v3362_v45 = vxor.u32 2147483648, %v4355_v51  ;;  %vm3360_vm9 = vcmp.lt.s32.totalorder %v3359_v36, 2 }
 0x38a   : > { %v3366_v14 = vsel %vm3364_vm3, %v3365_v53, %v4355_v51  ;;  %v7006_v42 = vshrl.u32 %v3534_v35, 30  ;;  %v3592_v27 = vsub.s32 32, %v3591_v6  ;;  %vm3357_vm11 = vweird.f32 %v6547_v32 }
 0x38b   : > { %v3444_v57 = vor.u32 %v3443_v18, %v3442_v9  ;;  %v3447_v47 = vshll.u32 %v3446_v24, 23  ;;  %v3363_v20 = vsel %vm3361_vm10, %v4353_v44, %v3362_v45  ;;  %v3458_v60 = vsel %vm6988_vm4, 0, %v3456_v21 }
 0x38c   : > { %v3367_v46 = vsel %vm3360_vm9, %v3363_v20, %v3366_v14  ;;  %v3536_v54 = vshll.u32 %v7006_v42, 30  ;;  %v3585_v29 = vor.u32 8388608, %v3584_v16  ;;  %v3685_v33 = vshrl.u32 %v3684_v56, 23 }
 0x38d   : > { %v3448_v5 = vor.u32 4788187, %v3447_v47  ;;  %v3368_v8 = vsel %vm3357_vm11, nan, %v3367_v46  ;;  %v3451_v52 = vcvt.s32.f32 %v3444_v57  ;;  %v3595_v13 = vshrl.u32 %v7269_v50, %v3592_v27 }
 0x38e   : > { %v3598_v34 = vshrl.u32 %v7246_v12, %v3592_v27  ;;  %3796 = vst [vmem:[%s4945_s10 + $0xd8] sm:$0xff] %v3368_v8  ;;  %v7015_v28 = vsub.s32 %v3533_v61, %v3536_v54  ;;  %v3594_v32 = vshll.u32 %v7239_v7, %v3591_v6  ;;  %v3597_v3 = vshll.u32 %v7269_v50, %v3591_v6 }
 0x38f   : > { %v3449_v58 = vand.u32 2147483647, %v3448_v5  ;;  %v3601_v36 = vshrl.u32 %v7235_v1, %v3592_v27  ;;  %v3590_v43 = vshrl.u32 %v3589_v37, 5  ;;  %v3600_v40 = vshll.u32 %v7246_v12, %v3591_v6 }
 0x390   : > { %v3603_v15 = vshll.u32 %v7235_v1, %v3591_v6  ;;  %v3539_v49 = vsub.s32 0, %v7015_v28  ;;  %v3596_v30 = vor.u32 %v3595_v13, %v3594_v32  ;;  %v3599_v22 = vor.u32 %v3598_v34, %v3597_v3 }
 0x391   : > { %v3452_v62 = vmul.f32 %v3451_v52, %v3449_v58  ;;  %v3604_v26 = vshrl.u32 %v7223_v48, %v3592_v27  ;;  %v3602_v39 = vor.u32 %v3601_v36, %v3600_v40  ;;  %v3606_v17 = vshll.u32 %v7223_v48, %v3591_v6 }
 0x392   : > { %v3607_v63 = vshrl.u32 %v7224_v55, %v3592_v27  ;;  %v3462_v4 = vadd.s32 3, %v3458_v60  ;;  %v4033_v38 = vmin.u32 %v3539_v49, %v7015_v28  ;;  %v3625_v21 = vshll.u32 %v3585_v29, 8 }
 0x393   : > { %v3453_v2 = vxor.u32 2147483648, %v3452_v62  ;;  %v3605_v44 = vor.u32 %v3604_v26, %v3603_v15  ;;  %vm3609_vm12 = vcmp.lt.s32.totalorder %v3590_v43, 1  ;;  %v4040_v37 = vadd.s32 4294967169, %v3685_v33 }
 0x394   : > { %v3608_v16 = vor.u32 %v3607_v63, %v3606_v17  ;;  %v3541_v53 = vclz %v4033_v38  ;;  %v3593_v9 = vshrl.u32 %v7239_v7, %v3592_v27  ;;  %vm3612_vm13 = vcmp.lt.s32.totalorder %v3590_v43, 4 }
 0x395   : > { %v3454_v61 = vsel %vm3371_vm5, %v3453_v2, %v3452_v62  ;;  %vm3610_vm14 = vcmp.lt.s32.totalorder %v3590_v43, 2  ;;  %v3614_v18 = vsel %vm3612_vm13, %v3602_v39, 2102212464  ;;  %v3617_v24 = vsel %vm3609_vm12, %v3596_v30, %v3599_v22 }
 0x396   : > { %v3457_v51 = vsel %vm6988_vm4, %v6621_v59, %v3454_v61  ;;  %v4034_v45 = vadd.s32 4294967294, %v3541_v53  ;;  %vm3611_vm15 = vcmp.lt.s32.totalorder %v3590_v43, 3  ;;  %v3618_v35 = vsel %vm3612_vm13, %v3605_v44, 920167782 }
 0x397   : > { %4356 = vcosq.f32 %v3457_v51  ;;  %v3613_v6 = vsel %vm3609_vm12, %v3593_v9, %v3596_v30  ;;  %v3619_v56 = vsel %vm3611_vm15, %v3602_v39, %v3618_v35  ;;  %v3621_v14 = vsel %vm3609_vm12, %v3599_v22, %v3602_v39 }
 0x398   : > { %4358 = vsinq.f32 %v3457_v51  ;;  %v3622_v31 = vsel %vm3612_vm13, %v3608_v16, 1326507024  ;;  %vm4035_vm0 = vcmp.lt.s32.totalorder %v4034_v45, 0  ;;  %v3615_v57 = vsel %vm3611_vm15, %v3599_v22, %v3614_v18 }
 0x399   : > { %v3620_v47 = vsel %vm3610_vm14, %v3617_v24, %v3619_v56  ;;  %v3623_v20 = vsel %vm3611_vm15, %v3605_v44, %v3622_v31  ;;  %v3544_v27 = vsel %vm4035_vm0, 0, %v4034_v45  ;;  %v3529_v8 = vadd.s32 %v6970_v25, %v6977_v0 }
 0x39a   : > { %v3624_v46 = vsel %vm3610_vm14, %v3621_v14, %v3623_v20  ;;  %v7038_v5 = vmul.u32.u64.low %v3625_v21, %v3620_v47  ;;  %v7039_v60 = vmul.u32.u64.high %v3625_v21, %v3620_v47, %v7038_v5  ;;  %v3545_v54 = vsub.s32 32, %v3544_v27 }
 0x39b   : > { %v3549_v29 = vsub.s32 4294967266, %v3544_v27  ;;  %v3691_v33 = vadd.s32 1, %v4040_v37  ;;  %v3463_v58 = vand.u32 3, %v3462_v4  ;;  %v3616_v52 = vsel %vm3610_vm14, %v3613_v6, %v3615_v57 }
 0x39c   : > { %v7045_v13 = vmul.u32.u64.low %v3625_v21, %v3624_v46  ;;  %v7046_v34 = vmul.u32.u64.high %v3625_v21, %v3624_v46, %v7045_v13  ;;  %v3546_v32 = vshll.u32 %v7015_v28, %v3544_v27  ;;  %v3547_v3 = vshrl.u32 %v3529_v8, %v3545_v54 }
 0x39d   : > { %v3550_v36 = vadd.s32 127, %v3549_v29  ;;  %vm3692_vm1 = vcmp.gt.s32.totalorder %v3691_v33, 0  ;;  %v3559_v62 = vsub.s32 4, %v7006_v42  ;;  %v3635_v40 = vadd.s32 1, %v7039_v60 }
 0x39e   : > { %v3681_v25 = vand.u32 2147483647, %v6980_v23  ;;  %v3693_v0 = vsel %vm3692_vm1, %v3691_v33, 0  ;;  %v3548_v15 = vor.u32 %v3547_v3, %v3546_v32  ;;  %vm3461_vm2 = vweird.f32 %v6621_v59 }
 0x39f   : > { %v3551_v49 = vshll.u32 %v3550_v36, 23  ;;  %v3695_v30 = vand.u32 31, %v3693_v0  ;;  %vm3464_vm3 = vcmp.lt.s32.totalorder %v3463_v58, 2  ;;  %vm3475_vm4 = vcmp.lt.s32.totalorder %v6635_v41, 0 }
 0x3a0   : > { %v3632_v43 = vmul.u32 %v3625_v21, %v3616_v52  ;;  %vm3634_vm5 = vc.u32 %v7046_v34, %v7038_v5  ;;  %vm3465_vm6 = vcmp.eq.s32.totalorder %v3463_v58, 0  ;;  %vm7058_vm7 = vcmp.le.f32.partialorder %v3473_v10, 0.7853982 }
 0x3a1   : > { %v3552_v22 = vor.u32 4788187, %v3551_v49  ;;  %v3636_v26 = vsel %vm3634_vm5, %v3635_v40, %v7039_v60  ;;  %v3696_v2 = vsub.s32 32, %v3695_v30  ;;  %vm3468_vm8 = vcmp.eq.s32.totalorder %v3463_v58, 2 }
 0x3a2   : > { %v3560_v39 = vsel %vm3475_vm4, %v3559_v62, %v7006_v42  ;;  %v3637_v17 = vadd.s32 %v3636_v26, %v3632_v43  ;;  %v3688_v63 = vand.u32 8388607, %v3681_v25  ;;  %v3555_v44 = vcvt.s32.f32 %v3548_v15 }
 0x3a3   : > { %v3553_v38 = vand.u32 2147483647, %v3552_v22  ;;  %v7068_v10 = vshrl.u32 %v3693_v0, 5  ;;  %v3698_v21 = vshll.u32 %v7239_v7, %v3695_v30  ;;  %v3699_v51 = vshrl.u32 %v7269_v50, %v3696_v2 }
 0x3a4   : > { %v4357_v4 = vpop.eup %4356  ;;  %v3638_v37 = vadd.s32 536870912, %v3637_v17  ;;  %v3702_v53 = vshrl.u32 %v7246_v12, %v3696_v2  ;;  %v3701_v18 = vshll.u32 %v7269_v50, %v3695_v30  ;;  %v3704_v24 = vshll.u32 %v7246_v12, %v3695_v30 }
 0x3a5   : > { %v4359_v61 = vpop.eup %4358  ;;  %v3469_v16 = vxor.u32 2147483648, %v4357_v4  ;;  %v3556_v42 = vmul.f32 %v3555_v44, %v3553_v38  ;;  %v3705_v6 = vshrl.u32 %v7235_v1, %v3696_v2  ;;  %v3708_v56 = vshrl.u32 %v7223_v48, %v3696_v2 }
 0x3a6   : > { %v3466_v9 = vxor.u32 2147483648, %v4359_v61  ;;  %v7076_v35 = vshrl.u32 %v3638_v37, 30  ;;  %v3707_v57 = vshll.u32 %v7235_v1, %v3695_v30  ;;  %v3711_v47 = vshrl.u32 %v7224_v55, %v3696_v2 }
 0x3a7   : > { %v3470_v45 = vsel %vm3468_vm8, %v3469_v16, %v4359_v61  ;;  %v3557_v31 = vxor.u32 2147483648, %v3556_v42  ;;  %v3700_v20 = vor.u32 %v3699_v51, %v3698_v21  ;;  %v3703_v27 = vor.u32 %v3702_v53, %v3701_v18 }
 0x3a8   : > { %v3467_v14 = vsel %vm3465_vm6, %v4357_v4, %v3466_v9  ;;  %v3640_v12 = vshll.u32 %v7076_v35, 30  ;;  %v3709_v8 = vor.u32 %v3708_v56, %v3707_v57  ;;  %v3710_v54 = vshll.u32 %v7223_v48, %v3695_v30 }
 0x3a9   : > { %v3471_v50 = vsel %vm3464_vm3, %v3467_v14, %v3470_v45  ;;  %v3558_v60 = vsel %vm3475_vm4, %v3557_v31, %v3556_v42  ;;  %v3706_v29 = vor.u32 %v3705_v6, %v3704_v24  ;;  %v3562_v33 = vsel %vm7058_vm7, 0, %v3560_v39 }
 0x3aa   : > { %v3472_v46 = vsel %vm3461_vm2, nan, %v3471_v50  ;;  %v3561_v1 = vsel %vm7058_vm7, %v6635_v41, %v3558_v60  ;;  %v3641_v55 = vsub.s32 %v3637_v17, %v3640_v12  ;;  %v3689_v58 = vor.u32 8388608, %v3688_v63 }
 0x3ab   : > { %3797 = vst [vmem:[%s4945_s10 + $0xe0] sm:$0xff] %v3472_v46  ;;  %4360 = vcosq.f32 %v3561_v1  ;;  %v3712_v59 = vor.u32 %v3711_v47, %v3710_v54  ;;  %vm3713_vm10 = vcmp.lt.s32.totalorder %v7068_v10, 1  ;;  %vm3716_vm9 = vcmp.lt.s32.totalorder %v7068_v10, 4 }
 0x3ac   : > { %4362 = vsinq.f32 %v3561_v1  ;;  %v3643_v52 = vsub.s32 0, %v3641_v55  ;;  %v3697_v48 = vshrl.u32 %v7239_v7, %v3696_v2  ;;  %vm3715_vm11 = vcmp.lt.s32.totalorder %v7068_v10, 3 }
 0x3ad   : > { %v3721_v13 = vsel %vm3713_vm10, %v3700_v20, %v3703_v27  ;;  %v3722_v32 = vsel %vm3716_vm9, %v3709_v8, 920167782  ;;  %vm3714_vm12 = vcmp.lt.s32.totalorder %v7068_v10, 2  ;;  %v3718_v36 = vsel %vm3716_vm9, %v3706_v29, 2102212464 }
 0x3ae   : > { %v4037_v3 = vmin.u32 %v3643_v52, %v3641_v55  ;;  %v3723_v62 = vsel %vm3715_vm11, %v3706_v29, %v3722_v32  ;;  %v3725_v0 = vsel %vm3713_vm10, %v3703_v27, %v3706_v29  ;;  %v3726_v15 = vsel %vm3716_vm9, %v3712_v59, 1326507024 }
 0x3af   : > { %v3724_v40 = vsel %vm3714_vm12, %v3721_v13, %v3723_v62  ;;  %v3729_v49 = vshll.u32 %v3689_v58, 8  ;;  %v3717_v43 = vsel %vm3713_vm10, %v3697_v48, %v3700_v20  ;;  %v3719_v28 = vsel %vm3715_vm11, %v3703_v27, %v3718_v36 }
 0x3b0   : > { %v3645_v30 = vclz %v4037_v3  ;;  %v3727_v22 = vsel %vm3715_vm11, %v3709_v8, %v3726_v15  ;;  %v3566_v2 = vadd.s32 3, %v3562_v33  ;;  %v3720_v38 = vsel %vm3714_vm12, %v3717_v43, %v3719_v28 }
 0x3b1   : > { %v7103_v7 = vmul.u32.u64.low %v3729_v49, %v3724_v40  ;;  %v7104_v26 = vmul.u32.u64.high %v3729_v49, %v3724_v40, %v7103_v7  ;;  %v3728_v17 = vsel %vm3714_vm12, %v3725_v0, %v3727_v22  ;;  %v3633_v16 = vadd.s32 %v7038_v5, %v7046_v34 }
 0x3b2   : > { %v4038_v39 = vadd.s32 4294967294, %v3645_v30  ;;  %v7108_v63 = vmul.u32.u64.low %v3729_v49, %v3728_v17  ;;  %v7109_v4 = vmul.u32.u64.high %v3729_v49, %v3728_v17, %v7108_v63  ;;  %v3567_v61 = vand.u32 3, %v3566_v2 }
 0x3b3   : > { %v3739_v21 = vadd.s32 1, %v7104_v26  ;;  %v3736_v53 = vmul.u32 %v3729_v49, %v3720_v38  ;;  %vm3565_vm2 = vweird.f32 %v6635_v41  ;;  %vm3579_vm3 = vcmp.lt.s32.totalorder %v6845_v19, 0 }
 0x3b4   : > { %vm4039_vm13 = vcmp.lt.s32.totalorder %v4038_v39, 0  ;;  %vm3738_vm14 = vc.u32 %v7109_v4, %v7103_v7  ;;  %vm3572_vm15 = vcmp.eq.s32.totalorder %v3567_v61, 2  ;;  %vm3569_vm0 = vcmp.eq.s32.totalorder %v3567_v61, 0 }
 0x3b5   : > { %v3648_v44 = vsel %vm4039_vm13, 0, %v4038_v39  ;;  %v3740_v45 = vsel %vm3738_vm14, %v3739_v21, %v7104_v26  ;;  %vm3568_vm1 = vcmp.lt.s32.totalorder %v3567_v61, 2  ;;  %v3663_v29 = vsub.s32 4, %v7076_v35 }
 0x3b6   : > { %v3649_v37 = vsub.s32 32, %v3648_v44  ;;  %v3653_v51 = vsub.s32 4294967266, %v3648_v44  ;;  %v3650_v42 = vshll.u32 %v3641_v55, %v3648_v44  ;;  %v3741_v56 = vadd.s32 %v3740_v45, %v3736_v53 }
 0x3b7   : > { %vm3578_vm4 = vcmp.le.f32.partialorder %v3577_v11, 0.7853982  ;;  %v3664_v52 = vsel %vm3579_vm3, %v3663_v29, %v7076_v35  ;;  %v3737_v62 = vadd.s32 %v7103_v7, %v7109_v4  ;;  %vm3669_vm10 = vweird.f32 %v6845_v19 }
 0x3b8   : > { %v4361_v9 = vpop.eup %4360  ;;  %v3651_v18 = vshrl.u32 %v3633_v16, %v3649_v37  ;;  %v3654_v24 = vadd.s32 127, %v3653_v51  ;;  %v3742_v34 = vadd.s32 536870912, %v3741_v56  ;;  %v3666_v32 = vsel %vm3578_vm4, 0, %v3664_v52 }
 0x3b9   : > { %v4363_v10 = vpop.eup %4362  ;;  %v3573_v6 = vxor.u32 2147483648, %v4361_v9  ;;  %v3670_v36 = vadd.s32 3, %v3666_v32  ;;  %vm3683_vm9 = vcmp.lt.s32.totalorder %v6980_v23, 0  ;;  %vm3682_vm11 = vcmp.le.f32.partialorder %v3681_v25, 0.7853982 }
 0x3ba   : > { %v3570_v14 = vxor.u32 2147483648, %v4363_v10  ;;  %v3652_v31 = vor.u32 %v3651_v18, %v3650_v42  ;;  %v3655_v57 = vshll.u32 %v3654_v24, 23  ;;  %v3743_v20 = vshrl.u32 %v3742_v34, 30 }
 0x3bb   : > { %v3574_v5 = vsel %vm3572_vm15, %v3573_v6, %v4363_v10  ;;  %v3671_v30 = vand.u32 3, %v3670_v36  ;;  %vm3773_vm15 = vweird.f32 %v6980_v23 }
 0x3bc   : > { %v3571_v47 = vsel %vm3569_vm0, %v4361_v9, %v3570_v14  ;;  %v3656_v50 = vor.u32 4788187, %v3655_v57  ;;  %v3659_v60 = vcvt.s32.f32 %v3652_v31  ;;  %v3744_v8 = vshll.u32 %v3743_v20, 30 }
 0x3bd   : > { %v3575_v12 = vsel %vm3568_vm1, %v3571_v47, %v3574_v5  ;;  %vm3676_vm6 = vcmp.eq.s32.totalorder %v3671_v30, 2  ;;  %vm3673_vm7 = vcmp.eq.s32.totalorder %v3671_v30, 0  ;;  %vm3672_vm8 = vcmp.lt.s32.totalorder %v3671_v30, 2 }
 0x3be   : > { %v3576_v27 = vsel %vm3565_vm2, nan, %v3575_v12  ;;  %v3657_v46 = vand.u32 2147483647, %v3656_v50  ;;  %v3745_v1 = vsub.s32 %v3741_v56, %v3744_v8  ;;  %v3767_v16 = vsub.s32 4, %v3743_v20 }
 0x3bf   : > { %3798 = vst [vmem:[%s4945_s10 + $0xe8] sm:$0xff] %v3576_v27 }
 0x3c0   : > { %v3660_v54 = vmul.f32 %v3659_v60, %v3657_v46  ;;  %v3747_v33 = vsub.s32 0, %v3745_v1  ;;  %v3768_v53 = vsel %vm3683_vm9, %v3767_v16, %v3743_v20 }
 0x3c1   : > { %v3770_v9 = vsel %vm3682_vm11, 0, %v3768_v53 }
 0x3c2   : > { %v3661_v55 = vxor.u32 2147483648, %v3660_v54  ;;  %v4041_v59 = vmin.u32 %v3747_v33, %v3745_v1 }
 0x3c4   : > { %v3662_v58 = vsel %vm3579_vm3, %v3661_v55, %v3660_v54  ;;  %v3749_v48 = vclz %v4041_v59 }
 0x3c5   : > { %v3665_v41 = vsel %vm3578_vm4, %v6845_v19, %v3662_v58  ;;  %v3774_v19 = vadd.s32 3, %v3770_v9 }
 0x3c6   : > { %4364 = vcosq.f32 %v3665_v41  ;;  %v4042_v13 = vadd.s32 4294967294, %v3749_v48 }
 0x3c7   : > { %4366 = vsinq.f32 %v3665_v41  ;;  %v3775_v42 = vand.u32 3, %v3774_v19 }
 0x3c8   : > { %vm4043_vm5 = vcmp.lt.s32.totalorder %v4042_v13, 0 }
 0x3c9   : > { %v3752_v3 = vsel %vm4043_vm5, 0, %v4042_v13  ;;  %vm3780_vm12 = vcmp.eq.s32.totalorder %v3775_v42, 2  ;;  %vm3777_vm13 = vcmp.eq.s32.totalorder %v3775_v42, 0  ;;  %vm3776_vm14 = vcmp.lt.s32.totalorder %v3775_v42, 2 }
 0x3ca   : > { %v3753_v40 = vsub.s32 32, %v3752_v3  ;;  %v3757_v0 = vsub.s32 4294967266, %v3752_v3  ;;  %v3754_v15 = vshll.u32 %v3745_v1, %v3752_v3 }
 0x3cc   : > { %v3755_v11 = vshrl.u32 %v3737_v62, %v3753_v40  ;;  %v3758_v49 = vadd.s32 127, %v3757_v0 }
 0x3ce   : > { %v3756_v43 = vor.u32 %v3755_v11, %v3754_v15  ;;  %v3759_v28 = vshll.u32 %v3758_v49, 23 }
 0x3d0   : > { %v3760_v26 = vor.u32 4788187, %v3759_v28  ;;  %v3763_v63 = vcvt.s32.f32 %v3756_v43 }
 0x3d2   : > { %v3761_v17 = vand.u32 2147483647, %v3760_v26 }
 0x3d3   : > { %v4365_v22 = vpop.eup %4364 }
 0x3d4   : > { %v4367_v35 = vpop.eup %4366  ;;  %v3677_v2 = vxor.u32 2147483648, %v4365_v22  ;;  %v3764_v4 = vmul.f32 %v3763_v63, %v3761_v17 }
 0x3d5   : > { %v3674_v39 = vxor.u32 2147483648, %v4367_v35 }
 0x3d6   : > { %v3678_v38 = vsel %vm3676_vm6, %v3677_v2, %v4367_v35  ;;  %v3765_v61 = vxor.u32 2147483648, %v3764_v4 }
 0x3d7   : > { %v3675_v7 = vsel %vm3673_vm7, %v4365_v22, %v3674_v39 }
 0x3d8   : > { %v3679_v44 = vsel %vm3672_vm8, %v3675_v7, %v3678_v38  ;;  %v3766_v37 = vsel %vm3683_vm9, %v3765_v61, %v3764_v4 }
 0x3d9   : > { %v3680_v21 = vsel %vm3669_vm10, nan, %v3679_v44  ;;  %v3769_v51 = vsel %vm3682_vm11, %v6980_v23, %v3766_v37 }
 0x3da   : > { %3799 = vst [vmem:[%s4945_s10 + $0xf0] sm:$0xff] %v3680_v21  ;;  %4368 = vcosq.f32 %v3769_v51 }
 0x3db   : > { %4370 = vsinq.f32 %v3769_v51 }
 0x3e7   : > { %v4369_v18 = vpop.eup %4368 }
 0x3e8   : > { %v4371_v24 = vpop.eup %4370  ;;  %v3781_v45 = vxor.u32 2147483648, %v4369_v18 }
 0x3e9   : > { %v3778_v10 = vxor.u32 2147483648, %v4371_v24 }
 0x3ea   : > { %v3782_v25 = vsel %vm3780_vm12, %v3781_v45, %v4371_v24 }
 0x3eb   : > { %v3779_v6 = vsel %vm3777_vm13, %v4369_v18, %v3778_v10 }
 0x3ec   : > { %v3783_v56 = vsel %vm3776_vm14, %v3779_v6, %v3782_v25 }
 0x3ed   : > { %v3784_v14 = vsel %vm3773_vm15, nan, %v3783_v56 }
 0x3ee   : > { %3800 = vst [vmem:[%s4945_s10 + $0xf8] sm:$0xff] %v3784_v14 }
 0x3ef   : > { %4385 = shalt.err (!%p4382_p5)
}
 0x3f0   : > { %s4386_s7 = scalar_lea.hbm %s7138_s26, 4096  ;;  %s4390_s10 = scalar_lea.hbm %s7195_s4, 8192 }
 0x3f1   : > { %p4387_p6 = scmp.ne.s32.totalorder %s7138_s26, %s4386_s7  ;;  %p4391_p10 = scmp.lt.s32.totalorder %s7138_s26, %s7195_s4 }
 0x3f2   : > { %p4392_p11 = scmp.lt.s32.totalorder %s4390_s10, %s4386_s7 }
 0x3f3   : > { %p4388_p7 = pnand %p4387_p6, %p4525_p4 }
 0x3f4   : > { %p4393_p12 = por %p4392_p11, %p4391_p10 }
 0x3f5   : > { %p4389_p9 = pneg %p4388_p7 }
 0x3f7   : > { %p4394_p13 = pnand %p4393_p12, %p4389_p9 }
 0x3f9   : > { %4397 = shalt.err (!%p4394_p13)
}
 0x3fa   : > { %s4458_s13 = smov 256   ;;  %s4459_s14 = smov 16  }
 0x3fb   : > { %4178 = dma.vmem_to_hbm [thread:$0]  (%p4525_p4), %s7140_s21, 4096, %s7138_s26, %s7146_s18, %s4458_s13, %s4458_s13, %s4459_s14  }
 0x3fc PF: > { %p4184_p0 = scmp.ge.s32.totalorder %s4448_s20, 2  ;;  %s3832_s22 = sand.u32 1, %s4428_s15  }
 0x3fd   : > { %s3833_s24 = scalar_lea.sflag [#allocation3], %s3832_s22 }
 0x3fe   : > { %p4181_p1 = pnand %p4184_p0, %p4532_p8 }
 0x400   : > { %p4182_p2 = pneg %p4181_p1 }
 0x402   : > { %4423 = dma.done.wait (%p4182_p2), %s3833_s24, 4096  }
 0x403   : > { %4425 = vsyncadd (%p4182_p2), %s3833_s24, 4294963200  ;;  %s17_s20 = sadd.s32 1, %s4448_s20   ;;  %s7296_s15 = smov %s4432_s16 }
 0x404   : > { %p14_p3 = scmp.ge.s32.totalorder %s17_s20, 4   ;;  %s7297_s16 = smov %s4436_s17 }
 0x405   : > { %s7298_s17 = smov %s4538_s28  ;;  %s7299_s18 = smov %s4444_s19 }
 0x406   : > { %s7300_s19 = smov %s7302_s23  ;;  %16 = sbr.rel (!%p14_p3) target bundleno = 4 (0x4), region = 74 }
 0x40b   :  { %3838 = vsyncpa [#allocation3], 1 }
 0x40c   :  { %3840 = vsyncpa [#allocation3 + $0x1], 1 }

</bundles_post_ra>
